<compile_context>
chip_gen: v5e
topology: v5e:2x2
jax: 0.10.0
libtpu: 0.0.40
codegen_flags: <defaults>
</compile_context>

<pallas_src>
import jax
import jax.numpy as jnp
from jax import lax
from jax.experimental import pallas as pl
from jax.experimental.pallas import tpu as pltpu

EPS = 1e-5          # nn.BatchNorm1d default eps
NEG_SLOPE = 0.01    # nn.LeakyReLU default negative_slope


def _round_up(x, m):
    return (x + m - 1) // m * m


def _lrelu(v):
    return jnp.where(v > 0, v, NEG_SLOPE * v)


def net_kernel(xc_ref, pool_ref,
               w1_ref, g1_ref, be1_ref,
               w2_ref, g2_ref, be2_ref,
               w3_ref, g3_ref, be3_ref,
               wfc_ref, bfc_ref,
               o_ref,
               h1_pad, h2_pad):
    NL = xc_ref.shape[0]
    N = h1_pad.shape[0]
    L = NL // N
    C1 = h1_pad.shape[2]            # 512
    C2 = h2_pad.shape[2]            # 256
    inv_nl = 1.0 / float(NL)

    def bn_lrelu(acc, g, be):
        """Training-mode BatchNorm (batch stats over all N*L rows) + LeakyReLU.
        acc: (NL, C) f32; g/be: (1, C) f32.  All math stays f32."""
        mean = jnp.sum(acc, axis=0, keepdims=True) * inv_nl
        var = jnp.sum(acc * acc, axis=0, keepdims=True) * inv_nl - mean * mean
        var = jnp.maximum(var, 0.0)          # guard one-pass cancellation
        scale = g * lax.rsqrt(var + EPS)
        shift = be - mean * scale
        y = acc * scale + shift
        return jnp.where(y > 0, y, NEG_SLOPE * y)

    def store_padded(hpad, h, C):
        """Zero only the two halo rows; write the interior (rows 1..L) in bf16."""
        hpad[:, 0:1, :] = jnp.zeros((N, 1, C), jnp.bfloat16)
        hpad[:, L + 1:L + 2, :] = jnp.zeros((N, 1, C), jnp.bfloat16)
        hpad[:, 1:L + 1, :] = h.reshape(N, L, C).astype(jnp.bfloat16)

    def conv_taps(hpad, w_ref, C):
        """kernel_size=3 conv as three full-depth bf16 matmuls accumulated in
        f32 (no im2col concat temporary); the adds are VPU filler under MXU."""
        acc = jnp.dot(hpad[:, 0:L, :].reshape(NL, C), w_ref[0],
                      preferred_element_type=jnp.float32)
        acc += jnp.dot(hpad[:, 1:L + 1, :].reshape(NL, C), w_ref[1],
                       preferred_element_type=jnp.float32)
        acc += jnp.dot(hpad[:, 2:L + 2, :].reshape(NL, C), w_ref[2],
                       preferred_element_type=jnp.float32)
        return acc

    # ---- conv1 + bn1 + leaky_relu (im2col built in wrapper, K = 12) ----
    acc1 = jnp.dot(xc_ref[...], w1_ref[...],
                   preferred_element_type=jnp.float32)            # (NL, 512)
    h1 = bn_lrelu(acc1, g1_ref[...], be1_ref[...])
    store_padded(h1_pad, h1, C1)

    # ---- conv2 + bn2 + leaky_relu (three tap matmuls, K = 512 each) ----
    acc2 = conv_taps(h1_pad, w2_ref, C1)                          # (NL, 256)
    h2 = bn_lrelu(acc2, g2_ref[...], be2_ref[...])
    store_padded(h2_pad, h2, C2)

    # ---- conv3 + bn3 + leaky_relu (three tap matmuls, K = 256 each) ----
    acc3 = conv_taps(h2_pad, w3_ref, C2)                          # (NL, 128)
    h3 = bn_lrelu(acc3, g3_ref[...], be3_ref[...])

    # ---- AdaptiveAvgPool1d(1) as an MXU matmul + fc (bf16 ops, f32 accum) ----
    pooled = jnp.dot(pool_ref[...], h3.astype(jnp.bfloat16),
                     preferred_element_type=jnp.float32)          # (N, 128)
    logits = jnp.dot(pooled.astype(jnp.bfloat16), wfc_ref[...],
                     preferred_element_type=jnp.float32) + bfc_ref[...]
    o_ref[...] = logits.astype(o_ref.dtype)


def net_forward(x_ncl, params):
    """x_ncl: (N, 4, L) float32 (PyTorch NCL). Returns (N, num_class)."""
    (w1, b1, g1, be1, w2, b2, g2, be2, w3, b3, g3, be3, wfc, bfc) = params
    # Conv biases are cancelled by training-mode BN mean subtraction -> drop.
    del b1, b2, b3
    N, cin, L = x_ncl.shape
    num_class = wfc.shape[1]
    C1, C2, C3 = w1.shape[2], w2.shape[2], w3.shape[2]

    # conv1 im2col in the wrapper (K = 3*cin = 12): keeps the lane-sparse
    # (N, L, 4) tensor out of the kernel; one dense MXU matmul inside.
    x_nlc = jnp.transpose(x_ncl, (0, 2, 1))                      # (N, L, 4)
    x_pad = jnp.pad(x_nlc, ((0, 0), (1, 1), (0, 0)))             # (N, L+2, 4)
    x_cols = jnp.concatenate(
        [x_pad[:, 0:L, :], x_pad[:, 1:L + 1, :], x_pad[:, 2:L + 2, :]], axis=-1)
    x_cols = x_cols.reshape(N * L, 3 * cin).astype(jnp.bfloat16)

    # Pool matrix: pooled = pool_mat @ h3_flat (1/L on each example's L rows).
    pool_mat = (jnp.kron(jnp.eye(N, dtype=jnp.float32),
                         jnp.ones((1, L), jnp.float32)) / L).astype(jnp.bfloat16)

    # Weights: conv1 flattened (3*cin, C1); conv2/conv3 kept per-tap (3, Cin, Cout).
    w1f = w1.reshape(3 * cin, C1).astype(jnp.bfloat16)
    w2b = w2.astype(jnp.bfloat16)
    w3b = w3.astype(jnp.bfloat16)

    # fc lane-padded to 128 output columns (dense final store); bf16 operands.
    C_OUT_PAD = 128
    wfc_p = jnp.zeros((C3, C_OUT_PAD), jnp.float32).at[:, :num_class].set(wfc)
    wfc_p = wfc_p.astype(jnp.bfloat16)
    bfc_p = jnp.zeros((1, C_OUT_PAD), jnp.float32).at[:, :num_class].set(bfc)

    args = (x_cols, pool_mat, w1f, g1, be1, w2b, g2, be2, w3b, g3, be3,
            wfc_p, bfc_p)

    # bf16 inter-layer scratch; second-minor (sublane) dim padded to 16.
    Lpad = _round_up(L + 2, 16)
    scratch = [pltpu.VMEM((N, Lpad, C1), jnp.bfloat16),
               pltpu.VMEM((N, Lpad, C2), jnp.bfloat16)]

    # VMEM budget from the actual buffers (inputs double-buffered by default)
    # plus an allowance for f32 accumulators / tile-crossing copies, with a 4x
    # safety factor, clamped to [16 MiB, 64 MiB].
    est = sum(2 * a.size * a.dtype.itemsize for a in args)
    est += sum(N * Lpad * c * 2 for c in (C1, C2))
    est += 6 * N * L * C1 * 4
    vmem_limit = int(min(max(4 * est, 16 * 1024 * 1024), 64 * 1024 * 1024))

    def full_spec(shape):
        nd = len(shape)
        return pl.BlockSpec(shape, lambda i, _nd=nd: (0,) * _nd)

    out = pl.pallas_call(
        net_kernel,
        out_shape=jax.ShapeDtypeStruct((N, C_OUT_PAD), jnp.float32),
        grid=(1,),
        in_specs=[full_spec(a.shape) for a in args],
        out_specs=full_spec((N, C_OUT_PAD)),
        scratch_shapes=scratch,
        compiler_params=pltpu.CompilerParams(
            dimension_semantics=("arbitrary",),
            vmem_limit_bytes=vmem_limit),
    )(*args)
    return out[:, :num_class]


def init_params(key, num_class):
    """Deterministic synthetic parameters (PyTorch-shaped, then re-laid-out)."""
    ks = jax.random.split(key, 8)

    def conv_params(k, cin, cout):
        kw, kb = jax.random.split(k)
        # PyTorch layout (Cout, Cin, 3) -> kernel layout (3, Cin, Cout)
        w_t = 0.1 * jax.random.normal(kw, (cout, cin, 3), jnp.float32)
        w = jnp.transpose(w_t, (2, 1, 0))
        b = 0.1 * jax.random.normal(kb, (1, cout), jnp.float32)
        return w, b

    def bn_params(k, c):
        kg, kb = jax.random.split(k)
        gamma = 1.0 + 0.1 * jax.random.normal(kg, (1, c), jnp.float32)
        beta = 0.1 * jax.random.normal(kb, (1, c), jnp.float32)
        return gamma, beta

    w1, b1 = conv_params(ks[0], 4, 512)
    g1, be1 = bn_params(ks[1], 512)
    w2, b2 = conv_params(ks[2], 512, 256)
    g2, be2 = bn_params(ks[3], 256)
    w3, b3 = conv_params(ks[4], 256, 128)
    g3, be3 = bn_params(ks[5], 128)
    wfc = 0.1 * jax.random.normal(ks[6], (128, num_class), jnp.float32)
    bfc = 0.1 * jax.random.normal(ks[7], (1, num_class), jnp.float32)
    return (w1, b1, g1, be1, w2, b2, g2, be2, w3, b3, g3, be3, wfc, bfc)


def reference_forward(x_ncl, params):
    """Pure-JAX f32 reference (lax conv, biases included, training-mode BN)."""
    (w1, b1, g1, be1, w2, b2, g2, be2, w3, b3, g3, be3, wfc, bfc) = params

    def conv1d(x, w, b):  # x: (N, C, L); w: (3, Cin, Cout)
        wt = jnp.transpose(w, (2, 1, 0))  # (Cout, Cin, 3), PyTorch layout
        y = lax.conv_general_dilated(
            x, wt, window_strides=(1,), padding=((1, 1),),
            dimension_numbers=('NCH', 'OIH', 'NCH'))
        return y + b.reshape(1, -1, 1)

    def bn(x, g, be):
        mean = jnp.mean(x, axis=(0, 2), keepdims=True)
        var = jnp.mean((x - mean) ** 2, axis=(0, 2), keepdims=True)
        return (x - mean) / jnp.sqrt(var + EPS) * g.reshape(1, -1, 1) \
            + be.reshape(1, -1, 1)

    h = _lrelu(bn(conv1d(x_ncl, w1, b1), g1, be1))
    h = _lrelu(bn(conv1d(h, w2, b2), g2, be2))
    h = _lrelu(bn(conv1d(h, w3, b3), g3, be3))
    pooled = jnp.mean(h, axis=2)
    return pooled @ wfc + bfc


if __name__ == "__main__":
    key = jax.random.PRNGKey(0)
    kx, kp = jax.random.split(key)

    N, C_IN, L, NUM_CLASS = 2, 4, 16, 10
    x = jax.random.normal(kx, (N, C_IN, L), jnp.float32)   # PyTorch NCL input
    params = init_params(kp, NUM_CLASS)

    out = net_forward(x, params)
    out = jax.block_until_ready(out)

    ref = jax.block_until_ready(reference_forward(x, params))
    assert out.shape == (N, NUM_CLASS)
    assert jnp.allclose(out, ref, atol=5e-2, rtol=5e-2)

    print("KERNEL_OK")
</pallas_src>

<mosaic_0001>
module attributes {stable_mosaic.version = 11 : i64} {
  func.func @net_kernel(%arg0: i32, %arg1: memref<32x12xbf16, #tpu.memory_space<vmem>>, %arg2: memref<2x32xbf16, #tpu.memory_space<vmem>>, %arg3: memref<12x512xbf16, #tpu.memory_space<vmem>>, %arg4: memref<1x512xf32, #tpu.memory_space<vmem>>, %arg5: memref<1x512xf32, #tpu.memory_space<vmem>>, %arg6: memref<3x512x256xbf16, #tpu.memory_space<vmem>>, %arg7: memref<1x256xf32, #tpu.memory_space<vmem>>, %arg8: memref<1x256xf32, #tpu.memory_space<vmem>>, %arg9: memref<3x256x128xbf16, #tpu.memory_space<vmem>>, %arg10: memref<1x128xf32, #tpu.memory_space<vmem>>, %arg11: memref<1x128xf32, #tpu.memory_space<vmem>>, %arg12: memref<128x128xbf16, #tpu.memory_space<vmem>>, %arg13: memref<1x128xf32, #tpu.memory_space<vmem>>, %arg14: memref<2x128xf32, #tpu.memory_space<vmem>>, %arg15: memref<2x32x512xbf16, #tpu.memory_space<vmem>>, %arg16: memref<2x32x256xbf16, #tpu.memory_space<vmem>>) attributes {dimension_semantics = [#tpu.dimension_semantics<arbitrary>], iteration_bounds = array<i64: 1>, scalar_prefetch = 0 : i64, scratch_operands = 2 : i64, tpu.core_type = #tpu.core_type<tc>, window_params = [{pipeline_mode = #tpu.pipeline_mode<synchronous>, transform_indices = @transform_0, window_bounds = array<i64: 32, 12>}, {pipeline_mode = #tpu.pipeline_mode<synchronous>, transform_indices = @transform_1, window_bounds = array<i64: 2, 32>}, {pipeline_mode = #tpu.pipeline_mode<synchronous>, transform_indices = @transform_2, window_bounds = array<i64: 12, 512>}, {pipeline_mode = #tpu.pipeline_mode<synchronous>, transform_indices = @transform_3, window_bounds = array<i64: 1, 512>}, {pipeline_mode = #tpu.pipeline_mode<synchronous>, transform_indices = @transform_4, window_bounds = array<i64: 1, 512>}, {pipeline_mode = #tpu.pipeline_mode<synchronous>, transform_indices = @transform_5, window_bounds = array<i64: 3, 512, 256>}, {pipeline_mode = #tpu.pipeline_mode<synchronous>, transform_indices = @transform_6, window_bounds = array<i64: 1, 256>}, {pipeline_mode = #tpu.pipeline_mode<synchronous>, transform_indices = @transform_7, window_bounds = array<i64: 1, 256>}, {pipeline_mode = #tpu.pipeline_mode<synchronous>, transform_indices = @transform_8, window_bounds = array<i64: 3, 256, 128>}, {pipeline_mode = #tpu.pipeline_mode<synchronous>, transform_indices = @transform_9, window_bounds = array<i64: 1, 128>}, {pipeline_mode = #tpu.pipeline_mode<synchronous>, transform_indices = @transform_10, window_bounds = array<i64: 1, 128>}, {pipeline_mode = #tpu.pipeline_mode<synchronous>, transform_indices = @transform_11, window_bounds = array<i64: 128, 128>}, {pipeline_mode = #tpu.pipeline_mode<synchronous>, transform_indices = @transform_12, window_bounds = array<i64: 1, 128>}, {pipeline_mode = #tpu.pipeline_mode<synchronous>, transform_indices = @transform_13, window_bounds = array<i64: 2, 128>}]} {
    %c0 = arith.constant 0 : index
    %c0_0 = arith.constant 0 : index
    %0 = vector.load %arg1[%c0, %c0_0] : memref<32x12xbf16, #tpu.memory_space<vmem>>, vector<32x12xbf16>
    %c0_1 = arith.constant 0 : index
    %c0_2 = arith.constant 0 : index
    %1 = vector.load %arg3[%c0_1, %c0_2] : memref<12x512xbf16, #tpu.memory_space<vmem>>, vector<12x512xbf16>
    %cst = arith.constant dense<0.000000e+00> : vector<32x512xf32>
    %2 = tpu.matmul %0, %1, %cst {dimension_numbers = #tpu.dot_dimension_numbers<[1], [0], [0], [1], [0, 0, 1, 1], [], []>} : vector<32x12xbf16>, vector<12x512xbf16>, vector<32x512xf32> -> vector<32x512xf32>
    %c0_3 = arith.constant 0 : index
    %c0_4 = arith.constant 0 : index
    %3 = vector.load %arg4[%c0_3, %c0_4] : memref<1x512xf32, #tpu.memory_space<vmem>>, vector<1x512xf32>
    %c0_5 = arith.constant 0 : index
    %c0_6 = arith.constant 0 : index
    %4 = vector.load %arg5[%c0_5, %c0_6] : memref<1x512xf32, #tpu.memory_space<vmem>>, vector<1x512xf32>
    %cst_7 = arith.constant dense<0.000000e+00> : vector<512xf32>
    %5 = vector.multi_reduction <add>, %2, %cst_7 [0] : vector<32x512xf32> to vector<512xf32>
    %6 = vector.shape_cast %5 : vector<512xf32> to vector<1x512xf32>
    %cst_8 = arith.constant 3.125000e-02 : f32
    %7 = vector.broadcast %cst_8 : f32 to vector<1x512xf32>
    %8 = arith.mulf %6, %7 : vector<1x512xf32>
    %9 = arith.mulf %2, %2 : vector<32x512xf32>
    %cst_9 = arith.constant dense<0.000000e+00> : vector<512xf32>
    %10 = vector.multi_reduction <add>, %9, %cst_9 [0] : vector<32x512xf32> to vector<512xf32>
    %11 = vector.shape_cast %10 : vector<512xf32> to vector<1x512xf32>
    %cst_10 = arith.constant 3.125000e-02 : f32
    %12 = vector.broadcast %cst_10 : f32 to vector<1x512xf32>
    %13 = arith.mulf %11, %12 : vector<1x512xf32>
    %14 = arith.mulf %8, %8 : vector<1x512xf32>
    %15 = arith.subf %13, %14 : vector<1x512xf32>
    %cst_11 = arith.constant 0.000000e+00 : f32
    %16 = vector.broadcast %cst_11 : f32 to vector<1x512xf32>
    %17 = arith.maximumf %15, %16 : vector<1x512xf32>
    %cst_12 = arith.constant 9.99999974E-6 : f32
    %18 = vector.broadcast %cst_12 : f32 to vector<1x512xf32>
    %19 = arith.addf %17, %18 : vector<1x512xf32>
    %20 = math.rsqrt %19 : vector<1x512xf32>
    %21 = arith.mulf %3, %20 : vector<1x512xf32>
    %22 = arith.mulf %8, %21 : vector<1x512xf32>
    %23 = arith.subf %4, %22 : vector<1x512xf32>
    %24 = vector.broadcast %21 : vector<1x512xf32> to vector<32x512xf32>
    %25 = arith.mulf %2, %24 : vector<32x512xf32>
    %26 = vector.broadcast %23 : vector<1x512xf32> to vector<32x512xf32>
    %27 = arith.addf %25, %26 : vector<32x512xf32>
    %cst_13 = arith.constant 0.000000e+00 : f32
    %28 = vector.broadcast %cst_13 : f32 to vector<32x512xf32>
    %29 = arith.cmpf ogt, %27, %28 : vector<32x512xf32>
    %cst_14 = arith.constant 0.00999999977 : f32
    %30 = vector.broadcast %cst_14 : f32 to vector<32x512xf32>
    %31 = arith.mulf %30, %27 : vector<32x512xf32>
    %32 = arith.select %29, %27, %31 : vector<32x512xi1>, vector<32x512xf32>
    %cst_15 = arith.constant 0.000000e+00 : bf16
    %33 = vector.broadcast %cst_15 : bf16 to vector<2x1x512xbf16>
    %c0_16 = arith.constant 0 : index
    %c0_17 = arith.constant 0 : index
    %c0_18 = arith.constant 0 : index
    %34 = vector.load %arg15[%c0_16, %c0_17, %c0_18] : memref<2x32x512xbf16, #tpu.memory_space<vmem>>, vector<2x1x512xbf16>
    tpu.vector_store %arg15[%c0_16, %c0_17, %c0_18], %33 {strides = array<i32>} : memref<2x32x512xbf16, #tpu.memory_space<vmem>>, vector<2x1x512xbf16>,
    %cst_19 = arith.constant 0.000000e+00 : bf16
    %35 = vector.broadcast %cst_19 : bf16 to vector<2x1x512xbf16>
    %c0_20 = arith.constant 0 : index
    %c17 = arith.constant 17 : index
    %c0_21 = arith.constant 0 : index
    %36 = vector.load %arg15[%c0_20, %c17, %c0_21] : memref<2x32x512xbf16, #tpu.memory_space<vmem>>, vector<2x1x512xbf16>
    tpu.vector_store %arg15[%c0_20, %c17, %c0_21], %35 {strides = array<i32>} : memref<2x32x512xbf16, #tpu.memory_space<vmem>>, vector<2x1x512xbf16>,
    %37 = vector.shape_cast %32 : vector<32x512xf32> to vector<2x16x512xf32>
    %38 = arith.truncf %37 : vector<2x16x512xf32> to vector<2x16x512xbf16>
    %c0_22 = arith.constant 0 : index
    %c1 = arith.constant 1 : index
    %c0_23 = arith.constant 0 : index
    %39 = vector.load %arg15[%c0_22, %c1, %c0_23] : memref<2x32x512xbf16, #tpu.memory_space<vmem>>, vector<2x16x512xbf16>
    tpu.vector_store %arg15[%c0_22, %c1, %c0_23], %38 {strides = array<i32>} : memref<2x32x512xbf16, #tpu.memory_space<vmem>>, vector<2x16x512xbf16>,
    %c0_24 = arith.constant 0 : index
    %c0_25 = arith.constant 0 : index
    %c0_26 = arith.constant 0 : index
    %40 = vector.load %arg15[%c0_24, %c0_25, %c0_26] : memref<2x32x512xbf16, #tpu.memory_space<vmem>>, vector<2x16x512xbf16>
    %41 = vector.shape_cast %40 : vector<2x16x512xbf16> to vector<32x512xbf16>
    %c0_27 = arith.constant 0 : index
    %c0_28 = arith.constant 0 : index
    %c0_29 = arith.constant 0 : index
    %42 = vector.load %arg6[%c0_27, %c0_28, %c0_29] : memref<3x512x256xbf16, #tpu.memory_space<vmem>>, vector<1x512x256xbf16>
    %43 = vector.shape_cast %42 : vector<1x512x256xbf16> to vector<512x256xbf16>
    %cst_30 = arith.constant dense<0.000000e+00> : vector<32x256xf32>
    %44 = tpu.matmul %41, %43, %cst_30 {dimension_numbers = #tpu.dot_dimension_numbers<[1], [0], [0], [1], [0, 0, 1, 1], [], []>} : vector<32x512xbf16>, vector<512x256xbf16>, vector<32x256xf32> -> vector<32x256xf32>
    %c0_31 = arith.constant 0 : index
    %c1_32 = arith.constant 1 : index
    %c0_33 = arith.constant 0 : index
    %45 = vector.load %arg15[%c0_31, %c1_32, %c0_33] : memref<2x32x512xbf16, #tpu.memory_space<vmem>>, vector<2x16x512xbf16>
    %46 = vector.shape_cast %45 : vector<2x16x512xbf16> to vector<32x512xbf16>
    %c1_34 = arith.constant 1 : index
    %c0_35 = arith.constant 0 : index
    %c0_36 = arith.constant 0 : index
    %47 = vector.load %arg6[%c1_34, %c0_35, %c0_36] : memref<3x512x256xbf16, #tpu.memory_space<vmem>>, vector<1x512x256xbf16>
    %48 = vector.shape_cast %47 : vector<1x512x256xbf16> to vector<512x256xbf16>
    %cst_37 = arith.constant dense<0.000000e+00> : vector<32x256xf32>
    %49 = tpu.matmul %46, %48, %cst_37 {dimension_numbers = #tpu.dot_dimension_numbers<[1], [0], [0], [1], [0, 0, 1, 1], [], []>} : vector<32x512xbf16>, vector<512x256xbf16>, vector<32x256xf32> -> vector<32x256xf32>
    %50 = arith.addf %44, %49 : vector<32x256xf32>
    %c0_38 = arith.constant 0 : index
    %c2 = arith.constant 2 : index
    %c0_39 = arith.constant 0 : index
    %51 = vector.load %arg15[%c0_38, %c2, %c0_39] : memref<2x32x512xbf16, #tpu.memory_space<vmem>>, vector<2x16x512xbf16>
    %52 = vector.shape_cast %51 : vector<2x16x512xbf16> to vector<32x512xbf16>
    %c2_40 = arith.constant 2 : index
    %c0_41 = arith.constant 0 : index
    %c0_42 = arith.constant 0 : index
    %53 = vector.load %arg6[%c2_40, %c0_41, %c0_42] : memref<3x512x256xbf16, #tpu.memory_space<vmem>>, vector<1x512x256xbf16>
    %54 = vector.shape_cast %53 : vector<1x512x256xbf16> to vector<512x256xbf16>
    %cst_43 = arith.constant dense<0.000000e+00> : vector<32x256xf32>
    %55 = tpu.matmul %52, %54, %cst_43 {dimension_numbers = #tpu.dot_dimension_numbers<[1], [0], [0], [1], [0, 0, 1, 1], [], []>} : vector<32x512xbf16>, vector<512x256xbf16>, vector<32x256xf32> -> vector<32x256xf32>
    %56 = arith.addf %50, %55 : vector<32x256xf32>
    %c0_44 = arith.constant 0 : index
    %c0_45 = arith.constant 0 : index
    %57 = vector.load %arg7[%c0_44, %c0_45] : memref<1x256xf32, #tpu.memory_space<vmem>>, vector<1x256xf32>
    %c0_46 = arith.constant 0 : index
    %c0_47 = arith.constant 0 : index
    %58 = vector.load %arg8[%c0_46, %c0_47] : memref<1x256xf32, #tpu.memory_space<vmem>>, vector<1x256xf32>
    %cst_48 = arith.constant dense<0.000000e+00> : vector<256xf32>
    %59 = vector.multi_reduction <add>, %56, %cst_48 [0] : vector<32x256xf32> to vector<256xf32>
    %60 = vector.shape_cast %59 : vector<256xf32> to vector<1x256xf32>
    %cst_49 = arith.constant 3.125000e-02 : f32
    %61 = vector.broadcast %cst_49 : f32 to vector<1x256xf32>
    %62 = arith.mulf %60, %61 : vector<1x256xf32>
    %63 = arith.mulf %56, %56 : vector<32x256xf32>
    %cst_50 = arith.constant dense<0.000000e+00> : vector<256xf32>
    %64 = vector.multi_reduction <add>, %63, %cst_50 [0] : vector<32x256xf32> to vector<256xf32>
    %65 = vector.shape_cast %64 : vector<256xf32> to vector<1x256xf32>
    %cst_51 = arith.constant 3.125000e-02 : f32
    %66 = vector.broadcast %cst_51 : f32 to vector<1x256xf32>
    %67 = arith.mulf %65, %66 : vector<1x256xf32>
    %68 = arith.mulf %62, %62 : vector<1x256xf32>
    %69 = arith.subf %67, %68 : vector<1x256xf32>
    %cst_52 = arith.constant 0.000000e+00 : f32
    %70 = vector.broadcast %cst_52 : f32 to vector<1x256xf32>
    %71 = arith.maximumf %69, %70 : vector<1x256xf32>
    %cst_53 = arith.constant 9.99999974E-6 : f32
    %72 = vector.broadcast %cst_53 : f32 to vector<1x256xf32>
    %73 = arith.addf %71, %72 : vector<1x256xf32>
    %74 = math.rsqrt %73 : vector<1x256xf32>
    %75 = arith.mulf %57, %74 : vector<1x256xf32>
    %76 = arith.mulf %62, %75 : vector<1x256xf32>
    %77 = arith.subf %58, %76 : vector<1x256xf32>
    %78 = vector.broadcast %75 : vector<1x256xf32> to vector<32x256xf32>
    %79 = arith.mulf %56, %78 : vector<32x256xf32>
    %80 = vector.broadcast %77 : vector<1x256xf32> to vector<32x256xf32>
    %81 = arith.addf %79, %80 : vector<32x256xf32>
    %cst_54 = arith.constant 0.000000e+00 : f32
    %82 = vector.broadcast %cst_54 : f32 to vector<32x256xf32>
    %83 = arith.cmpf ogt, %81, %82 : vector<32x256xf32>
    %cst_55 = arith.constant 0.00999999977 : f32
    %84 = vector.broadcast %cst_55 : f32 to vector<32x256xf32>
    %85 = arith.mulf %84, %81 : vector<32x256xf32>
    %86 = arith.select %83, %81, %85 : vector<32x256xi1>, vector<32x256xf32>
    %cst_56 = arith.constant 0.000000e+00 : bf16
    %87 = vector.broadcast %cst_56 : bf16 to vector<2x1x256xbf16>
    %c0_57 = arith.constant 0 : index
    %c0_58 = arith.constant 0 : index
    %c0_59 = arith.constant 0 : index
    %88 = vector.load %arg16[%c0_57, %c0_58, %c0_59] : memref<2x32x256xbf16, #tpu.memory_space<vmem>>, vector<2x1x256xbf16>
    tpu.vector_store %arg16[%c0_57, %c0_58, %c0_59], %87 {strides = array<i32>} : memref<2x32x256xbf16, #tpu.memory_space<vmem>>, vector<2x1x256xbf16>,
    %cst_60 = arith.constant 0.000000e+00 : bf16
    %89 = vector.broadcast %cst_60 : bf16 to vector<2x1x256xbf16>
    %c0_61 = arith.constant 0 : index
    %c17_62 = arith.constant 17 : index
    %c0_63 = arith.constant 0 : index
    %90 = vector.load %arg16[%c0_61, %c17_62, %c0_63] : memref<2x32x256xbf16, #tpu.memory_space<vmem>>, vector<2x1x256xbf16>
    tpu.vector_store %arg16[%c0_61, %c17_62, %c0_63], %89 {strides = array<i32>} : memref<2x32x256xbf16, #tpu.memory_space<vmem>>, vector<2x1x256xbf16>,
    %91 = vector.shape_cast %86 : vector<32x256xf32> to vector<2x16x256xf32>
    %92 = arith.truncf %91 : vector<2x16x256xf32> to vector<2x16x256xbf16>
    %c0_64 = arith.constant 0 : index
    %c1_65 = arith.constant 1 : index
    %c0_66 = arith.constant 0 : index
    %93 = vector.load %arg16[%c0_64, %c1_65, %c0_66] : memref<2x32x256xbf16, #tpu.memory_space<vmem>>, vector<2x16x256xbf16>
    tpu.vector_store %arg16[%c0_64, %c1_65, %c0_66], %92 {strides = array<i32>} : memref<2x32x256xbf16, #tpu.memory_space<vmem>>, vector<2x16x256xbf16>,
    %c0_67 = arith.constant 0 : index
    %c0_68 = arith.constant 0 : index
    %c0_69 = arith.constant 0 : index
    %94 = vector.load %arg16[%c0_67, %c0_68, %c0_69] : memref<2x32x256xbf16, #tpu.memory_space<vmem>>, vector<2x16x256xbf16>
    %95 = vector.shape_cast %94 : vector<2x16x256xbf16> to vector<32x256xbf16>
    %c0_70 = arith.constant 0 : index
    %c0_71 = arith.constant 0 : index
    %c0_72 = arith.constant 0 : index
    %96 = vector.load %arg9[%c0_70, %c0_71, %c0_72] : memref<3x256x128xbf16, #tpu.memory_space<vmem>>, vector<1x256x128xbf16>
    %97 = vector.shape_cast %96 : vector<1x256x128xbf16> to vector<256x128xbf16>
    %cst_73 = arith.constant dense<0.000000e+00> : vector<32x128xf32>
    %98 = tpu.matmul %95, %97, %cst_73 {dimension_numbers = #tpu.dot_dimension_numbers<[1], [0], [0], [1], [0, 0, 1, 1], [], []>} : vector<32x256xbf16>, vector<256x128xbf16>, vector<32x128xf32> -> vector<32x128xf32>
    %c0_74 = arith.constant 0 : index
    %c1_75 = arith.constant 1 : index
    %c0_76 = arith.constant 0 : index
    %99 = vector.load %arg16[%c0_74, %c1_75, %c0_76] : memref<2x32x256xbf16, #tpu.memory_space<vmem>>, vector<2x16x256xbf16>
    %100 = vector.shape_cast %99 : vector<2x16x256xbf16> to vector<32x256xbf16>
    %c1_77 = arith.constant 1 : index
    %c0_78 = arith.constant 0 : index
    %c0_79 = arith.constant 0 : index
    %101 = vector.load %arg9[%c1_77, %c0_78, %c0_79] : memref<3x256x128xbf16, #tpu.memory_space<vmem>>, vector<1x256x128xbf16>
    %102 = vector.shape_cast %101 : vector<1x256x128xbf16> to vector<256x128xbf16>
    %cst_80 = arith.constant dense<0.000000e+00> : vector<32x128xf32>
    %103 = tpu.matmul %100, %102, %cst_80 {dimension_numbers = #tpu.dot_dimension_numbers<[1], [0], [0], [1], [0, 0, 1, 1], [], []>} : vector<32x256xbf16>, vector<256x128xbf16>, vector<32x128xf32> -> vector<32x128xf32>
    %104 = arith.addf %98, %103 : vector<32x128xf32>
    %c0_81 = arith.constant 0 : index
    %c2_82 = arith.constant 2 : index
    %c0_83 = arith.constant 0 : index
    %105 = vector.load %arg16[%c0_81, %c2_82, %c0_83] : memref<2x32x256xbf16, #tpu.memory_space<vmem>>, vector<2x16x256xbf16>
    %106 = vector.shape_cast %105 : vector<2x16x256xbf16> to vector<32x256xbf16>
    %c2_84 = arith.constant 2 : index
    %c0_85 = arith.constant 0 : index
    %c0_86 = arith.constant 0 : index
    %107 = vector.load %arg9[%c2_84, %c0_85, %c0_86] : memref<3x256x128xbf16, #tpu.memory_space<vmem>>, vector<1x256x128xbf16>
    %108 = vector.shape_cast %107 : vector<1x256x128xbf16> to vector<256x128xbf16>
    %cst_87 = arith.constant dense<0.000000e+00> : vector<32x128xf32>
    %109 = tpu.matmul %106, %108, %cst_87 {dimension_numbers = #tpu.dot_dimension_numbers<[1], [0], [0], [1], [0, 0, 1, 1], [], []>} : vector<32x256xbf16>, vector<256x128xbf16>, vector<32x128xf32> -> vector<32x128xf32>
    %110 = arith.addf %104, %109 : vector<32x128xf32>
    %c0_88 = arith.constant 0 : index
    %c0_89 = arith.constant 0 : index
    %111 = vector.load %arg10[%c0_88, %c0_89] : memref<1x128xf32, #tpu.memory_space<vmem>>, vector<1x128xf32>
    %c0_90 = arith.constant 0 : index
    %c0_91 = arith.constant 0 : index
    %112 = vector.load %arg11[%c0_90, %c0_91] : memref<1x128xf32, #tpu.memory_space<vmem>>, vector<1x128xf32>
    %cst_92 = arith.constant dense<0.000000e+00> : vector<128xf32>
    %113 = vector.multi_reduction <add>, %110, %cst_92 [0] : vector<32x128xf32> to vector<128xf32>
    %114 = vector.shape_cast %113 : vector<128xf32> to vector<1x128xf32>
    %cst_93 = arith.constant 3.125000e-02 : f32
    %115 = vector.broadcast %cst_93 : f32 to vector<1x128xf32>
    %116 = arith.mulf %114, %115 : vector<1x128xf32>
    %117 = arith.mulf %110, %110 : vector<32x128xf32>
    %cst_94 = arith.constant dense<0.000000e+00> : vector<128xf32>
    %118 = vector.multi_reduction <add>, %117, %cst_94 [0] : vector<32x128xf32> to vector<128xf32>
    %119 = vector.shape_cast %118 : vector<128xf32> to vector<1x128xf32>
    %cst_95 = arith.constant 3.125000e-02 : f32
    %120 = vector.broadcast %cst_95 : f32 to vector<1x128xf32>
    %121 = arith.mulf %119, %120 : vector<1x128xf32>
    %122 = arith.mulf %116, %116 : vector<1x128xf32>
    %123 = arith.subf %121, %122 : vector<1x128xf32>
    %cst_96 = arith.constant 0.000000e+00 : f32
    %124 = vector.broadcast %cst_96 : f32 to vector<1x128xf32>
    %125 = arith.maximumf %123, %124 : vector<1x128xf32>
    %cst_97 = arith.constant 9.99999974E-6 : f32
    %126 = vector.broadcast %cst_97 : f32 to vector<1x128xf32>
    %127 = arith.addf %125, %126 : vector<1x128xf32>
    %128 = math.rsqrt %127 : vector<1x128xf32>
    %129 = arith.mulf %111, %128 : vector<1x128xf32>
    %130 = arith.mulf %116, %129 : vector<1x128xf32>
    %131 = arith.subf %112, %130 : vector<1x128xf32>
    %132 = vector.broadcast %129 : vector<1x128xf32> to vector<32x128xf32>
    %133 = arith.mulf %110, %132 : vector<32x128xf32>
    %134 = vector.broadcast %131 : vector<1x128xf32> to vector<32x128xf32>
    %135 = arith.addf %133, %134 : vector<32x128xf32>
    %cst_98 = arith.constant 0.000000e+00 : f32
    %136 = vector.broadcast %cst_98 : f32 to vector<32x128xf32>
    %137 = arith.cmpf ogt, %135, %136 : vector<32x128xf32>
    %cst_99 = arith.constant 0.00999999977 : f32
    %138 = vector.broadcast %cst_99 : f32 to vector<32x128xf32>
    %139 = arith.mulf %138, %135 : vector<32x128xf32>
    %140 = arith.select %137, %135, %139 : vector<32x128xi1>, vector<32x128xf32>
    %c0_100 = arith.constant 0 : index
    %c0_101 = arith.constant 0 : index
    %141 = vector.load %arg2[%c0_100, %c0_101] : memref<2x32xbf16, #tpu.memory_space<vmem>>, vector<2x32xbf16>
    %142 = arith.truncf %140 : vector<32x128xf32> to vector<32x128xbf16>
    %cst_102 = arith.constant dense<0.000000e+00> : vector<2x128xf32>
    %143 = tpu.matmul %141, %142, %cst_102 {dimension_numbers = #tpu.dot_dimension_numbers<[1], [0], [0], [1], [0, 0, 1, 1], [], []>} : vector<2x32xbf16>, vector<32x128xbf16>, vector<2x128xf32> -> vector<2x128xf32>
    %144 = arith.truncf %143 : vector<2x128xf32> to vector<2x128xbf16>
    %c0_103 = arith.constant 0 : index
    %c0_104 = arith.constant 0 : index
    %145 = vector.load %arg12[%c0_103, %c0_104] : memref<128x128xbf16, #tpu.memory_space<vmem>>, vector<128x128xbf16>
    %cst_105 = arith.constant dense<0.000000e+00> : vector<2x128xf32>
    %146 = tpu.matmul %144, %145, %cst_105 {dimension_numbers = #tpu.dot_dimension_numbers<[1], [0], [0], [1], [0, 0, 1, 1], [], []>} : vector<2x128xbf16>, vector<128x128xbf16>, vector<2x128xf32> -> vector<2x128xf32>
    %c0_106 = arith.constant 0 : index
    %c0_107 = arith.constant 0 : index
    %147 = vector.load %arg13[%c0_106, %c0_107] : memref<1x128xf32, #tpu.memory_space<vmem>>, vector<1x128xf32>
    %148 = vector.broadcast %147 : vector<1x128xf32> to vector<2x128xf32>
    %149 = arith.addf %146, %148 : vector<2x128xf32>
    %c0_108 = arith.constant 0 : index
    %c0_109 = arith.constant 0 : index
    %150 = vector.load %arg14[%c0_108, %c0_109] : memref<2x128xf32, #tpu.memory_space<vmem>>, vector<2x128xf32>
    tpu.vector_store %arg14[%c0_108, %c0_109], %149 {strides = array<i32>} : memref<2x128xf32, #tpu.memory_space<vmem>>, vector<2x128xf32>,
    return
  }
  func.func @transform_0(%arg0: i32) -> (i32, i32) {
    %c0_i32 = arith.constant 0 : i32
    %c0_i32_0 = arith.constant 0 : i32
    %c0_i32_1 = arith.constant 0 : i32
    return %c0_i32, %c0_i32_0 : i32, i32
  }
  func.func @transform_1(%arg0: i32) -> (i32, i32) {
    %c0_i32 = arith.constant 0 : i32
    %c0_i32_0 = arith.constant 0 : i32
    %c0_i32_1 = arith.constant 0 : i32
    return %c0_i32, %c0_i32_0 : i32, i32
  }
  func.func @transform_2(%arg0: i32) -> (i32, i32) {
    %c0_i32 = arith.constant 0 : i32
    %c0_i32_0 = arith.constant 0 : i32
    %c0_i32_1 = arith.constant 0 : i32
    return %c0_i32, %c0_i32_0 : i32, i32
  }
  func.func @transform_3(%arg0: i32) -> (i32, i32) {
    %c0_i32 = arith.constant 0 : i32
    %c0_i32_0 = arith.constant 0 : i32
    %c0_i32_1 = arith.constant 0 : i32
    return %c0_i32, %c0_i32_0 : i32, i32
  }
  func.func @transform_4(%arg0: i32) -> (i32, i32) {
    %c0_i32 = arith.constant 0 : i32
    %c0_i32_0 = arith.constant 0 : i32
    %c0_i32_1 = arith.constant 0 : i32
    return %c0_i32, %c0_i32_0 : i32, i32
  }
  func.func @transform_5(%arg0: i32) -> (i32, i32, i32) {
    %c0_i32 = arith.constant 0 : i32
    %c0_i32_0 = arith.constant 0 : i32
    %c0_i32_1 = arith.constant 0 : i32
    %c0_i32_2 = arith.constant 0 : i32
    return %c0_i32, %c0_i32_0, %c0_i32_1 : i32, i32, i32
  }
  func.func @transform_6(%arg0: i32) -> (i32, i32) {
    %c0_i32 = arith.constant 0 : i32
    %c0_i32_0 = arith.constant 0 : i32
    %c0_i32_1 = arith.constant 0 : i32
    return %c0_i32, %c0_i32_0 : i32, i32
  }
  func.func @transform_7(%arg0: i32) -> (i32, i32) {
    %c0_i32 = arith.constant 0 : i32
    %c0_i32_0 = arith.constant 0 : i32
    %c0_i32_1 = arith.constant 0 : i32
    return %c0_i32, %c0_i32_0 : i32, i32
  }
  func.func @transform_8(%arg0: i32) -> (i32, i32, i32) {
    %c0_i32 = arith.constant 0 : i32
    %c0_i32_0 = arith.constant 0 : i32
    %c0_i32_1 = arith.constant 0 : i32
    %c0_i32_2 = arith.constant 0 : i32
    return %c0_i32, %c0_i32_0, %c0_i32_1 : i32, i32, i32
  }
  func.func @transform_9(%arg0: i32) -> (i32, i32) {
    %c0_i32 = arith.constant 0 : i32
    %c0_i32_0 = arith.constant 0 : i32
    %c0_i32_1 = arith.constant 0 : i32
    return %c0_i32, %c0_i32_0 : i32, i32
  }
  func.func @transform_10(%arg0: i32) -> (i32, i32) {
    %c0_i32 = arith.constant 0 : i32
    %c0_i32_0 = arith.constant 0 : i32
    %c0_i32_1 = arith.constant 0 : i32
    return %c0_i32, %c0_i32_0 : i32, i32
  }
  func.func @transform_11(%arg0: i32) -> (i32, i32) {
    %c0_i32 = arith.constant 0 : i32
    %c0_i32_0 = arith.constant 0 : i32
    %c0_i32_1 = arith.constant 0 : i32
    return %c0_i32, %c0_i32_0 : i32, i32
  }
  func.func @transform_12(%arg0: i32) -> (i32, i32) {
    %c0_i32 = arith.constant 0 : i32
    %c0_i32_0 = arith.constant 0 : i32
    %c0_i32_1 = arith.constant 0 : i32
    return %c0_i32, %c0_i32_0 : i32, i32
  }
  func.func @transform_13(%arg0: i32) -> (i32, i32) {
    %c0_i32 = arith.constant 0 : i32
    %c0_i32_0 = arith.constant 0 : i32
    %c0_i32_1 = arith.constant 0 : i32
    return %c0_i32, %c0_i32_0 : i32, i32
  }
}

</mosaic_0001>

<bundles_post_ra>
// kernel: tpu_custom_call.1
= control target key start
LH: loop header
LB: loop body
LE: loop exit
PB: predicated region body
PF: predicated region fallthrough
CT: control target
= control target key end

     0   :  { %18 = vsyncpa [#allocation5], 0  ;;  %s6038_s0 = inlined_call_operand.vmem [shape: bf16[32,12], index: 0, kind: input, shape index: {}]   ;;  %s6039_s1 = inlined_call_operand.vmem [shape: bf16[2,32], index: 1, kind: input, shape index: {}]   ;;  %s6040_s2 = inlined_call_operand.hbm [shape: bf16[12,512], index: 2, kind: input, shape index: {}]   ;;  %s6041_s3 = inlined_call_operand.vmem [shape: f32[1,512], index: 3, kind: input, shape index: {}]   ;;  %s6042_s4 = inlined_call_operand.vmem [shape: f32[1,512], index: 4, kind: input, shape index: {}]   ;;  %s6043_s5 = inlined_call_operand.hbm [shape: bf16[3,512,256], index: 5, kind: input, shape index: {}]   ;;  %s6044_s6 = inlined_call_operand.vmem [shape: f32[1,256], index: 6, kind: input, shape index: {}]   ;;  %s6045_s7 = inlined_call_operand.vmem [shape: f32[1,256], index: 7, kind: input, shape index: {}]   ;;  %s6046_s8 = inlined_call_operand.hbm [shape: bf16[3,256,128], index: 8, kind: input, shape index: {}]   ;;  %s6047_s9 = inlined_call_operand.vmem [shape: f32[1,128], index: 9, kind: input, shape index: {}]   ;;  %s6048_s10 = inlined_call_operand.vmem [shape: f32[1,128], index: 10, kind: input, shape index: {}]   ;;  %s6049_s11 = inlined_call_operand.hbm [shape: bf16[128,128], index: 11, kind: input, shape index: {}]   ;;  %s6050_s12 = inlined_call_operand.vmem [shape: f32[1,128], index: 12, kind: input, shape index: {}]   ;;  %s6051_s13 = inlined_call_operand.hbm [shape: f32[2,128], index: 13, kind: output, shape index: {}]  }
   0x1   :  { %19 = vsyncpa [#allocation8], 0 }
   0x2   :  { %20 = vsyncpa [#allocation11], 0  ;;  %s47_s27 = sshll.u32 %s6043_s5, 4  ;;  %s48_s27 = int_to_ptr.hbm [resolvable:$true] %s47_s27 }
   0x3   :  { %21 = vsyncpa [#allocation6], 0  ;;  %s5097_s28 = smov [#allocation7]   ;;  %s30_s15 = sshll.u32 %s6040_s2, 4  ;;  %s31_s15 = int_to_ptr.hbm [resolvable:$true] %s30_s15 }
   0x4   :  { %s49_s29 = sshll.u32 %s5097_s28, 4  ;;  %s5098_s16 = smov 128   ;;  %s50_s29 = int_to_ptr.vmem [resolvable:$true] %s49_s29 }
   0x5   :  { %s5099_s17 = smov 8   ;;  %s5100_s18 = smov [#allocation4]  }
   0x6   :  { %55 = dma.hbm_to_vmem [thread:$0]  %s48_s27, 24576, %s50_s29, [#allocation8], %s5098_s16, %s5098_s16, %s5099_s17  }
   0x7   :  { %s32_s19 = sshll.u32 %s5100_s18, 4  ;;  %s5101_s20 = smov 256   ;;  %s33_s19 = int_to_ptr.vmem [resolvable:$true] %s32_s19 }
   0x8   :  { %s5102_s21 = smov 16   ;;  %s64_s23 = sshll.u32 %s6046_s8, 4  ;;  %s65_s23 = int_to_ptr.hbm [resolvable:$true] %s64_s23 }
   0x9   :  { %38 = dma.hbm_to_vmem [thread:$0]  %s31_s15, 512, %s33_s19, [#allocation5], %s5101_s20, %s5101_s20, %s5102_s21  }
   0xa   :  { %s5103_s24 = smov [#allocation9]   ;;  %s81_s28 = sshll.u32 %s6049_s11, 4  ;;  %s82_s28 = int_to_ptr.hbm [resolvable:$true] %s81_s28 }
   0xb   :  { %s66_s25 = sshll.u32 %s5103_s24, 4  ;;  %s5104_s27 = smov 64   ;;  %s67_s25 = int_to_ptr.vmem [resolvable:$true] %s66_s25 }
   0xc   :  { %s5105_s29 = smov 4   ;;  %s5106_s30 = smov [#allocation10]  }
   0xd   :  { %72 = dma.hbm_to_vmem [thread:$0]  %s65_s23, 6144, %s67_s25, [#allocation8], %s5104_s27, %s5104_s27, %s5105_s29  }
   0xe   :  { %s83_s14 = sshll.u32 %s5106_s30, 4  ;;  %s84_s14 = int_to_ptr.vmem [resolvable:$true] %s83_s14 }
   0xf   :  { %89 = dma.hbm_to_vmem [thread:$0]  %s82_s28, 1024, %s84_s14, [#allocation11], %s5104_s27, %s5104_s27, %s5105_s29  }
  0x10   :  { %5089 = dma.done.wait [#allocation5], 512  }
  0x11   :  { %5090 = vsyncadd [#allocation5], 4294966784 }
  0x12   :  { %5091 = dma.done.wait [#allocation8], 30720  }
  0x13   :  { %5092 = vsyncadd [#allocation8], 4294936576 }
  0x14   :  { %5093 = dma.done.wait [#allocation11], 1024  }
  0x15   :  { %5094 = vsyncadd [#allocation11], 4294966272  ;;  %vm150_vm0 = vcmask 1045504   ;;  %v3600_v0 = vld [vmem:[#allocation4] sm:$0xf]  ;;  %vm143_vm1 = vcmask 97280  }
  0x16   :  { %v4673_v1 = vld [vmem:[#allocation4 + $0xc] sm:$0x30]  ;;  %v4671_v2 = vld [vmem:[#allocation4 + $0x4] sm:$0xf]  ;;  %v3602_v4 = vld [vmem:[#allocation4 + $0x10] sm:$0x30] }
  0x17   :  { %v3601_v3 = vor.u32 %v4673_v1, %v3600_v0  ;;  %v3608_v5 = vld [vmem:[#allocation4 + $0x8] sm:$0xf]  ;;  %v4674_v6 = vld [vmem:[#allocation4 + $0x14] sm:$0x30]  ;;  %v3605_v7 = vor.u32 %v4671_v2, %v3602_v4  ;;  %v4672_v9 = vld [vmem:[#allocation4 + $0xc] sm:$0xf] }
  0x18   :  { %v3609_v8 = vor.u32 %v4674_v6, %v3608_v5  ;;  %v3610_v10 = vld [vmem:[#allocation4 + $0x18] sm:$0x30]  ;;  %v4669_v13 = vld [vmem:[%s6038_s0] sm:$0xff]  ;;  %v4670_v17 = vld [vmem:[%s6038_s0 + $0x8] sm:$0xff]  ;;  %vm6052_vm11 = vcmask 1040384   ;;  %vm402_vm14 = vcmask 1042434  }
  0x19   :  { %v152_v11 = vsel %vm150_vm0, %v3601_v3, 0  ;;  %v3613_v12 = vor.u32 %v4672_v9, %v3610_v10  ;;  %v155_v14 = vsel %vm150_vm0, %v3605_v7, 0  ;;  %s5107_s25 = smov [#allocation12]   ;;  %s3578_s27 = sshll.u32 %s6051_s13, 4  ;;  %s3579_s27 = int_to_ptr.hbm [resolvable:$true] %s3578_s27 }
  0x1a   :  { %170 = vmatpush.bf16.msra.mxu0 %v152_v11  ;;  %v158_v15 = vsel %vm150_vm0, %v3609_v8, 0  ;;  %189 = vmatpush.bf16.msra.mxu1 %v155_v14  ;;  %s3576_s26 = sshll.u32 %s5107_s25, 4  ;;  %s3577_s26 = int_to_ptr.vmem [resolvable:$true] %s3576_s26 }
  0x1b   :  { %208 = vmatpush.bf16.msra.mxu2 %v158_v15  ;;  %v161_v16 = vsel %vm150_vm0, %v3613_v12, 0  ;;  %vm6053_vm0 = vsmask.f32 256 }
  0x1c   :  { %227 = vmatpush.bf16.msra.mxu3 %v161_v16 }
  0x1d   :  { %3614 = vmatmul.msk.bf16.vlgmr.msra.gmra.mxu0 %vm143_vm1, %v4669_v13  ;;  %3616 = vmatmul.msk.bf16.vlgmr.msra.gmra.mxu1 %vm143_vm1, %v4669_v13 }
  0x1e   :  { %3618 = vmatmul.msk.bf16.vlgmr.msra.gmra.mxu2 %vm143_vm1, %v4669_v13 }
  0x1f   :  { %3620 = vmatmul.msk.bf16.vlgmr.msra.gmra.mxu3 %vm143_vm1, %v4669_v13 }
  0x2d   :  { %3615 = vmatmul.msk.bf16.gmra.mxu0 %vm143_vm1, %v4670_v17  ;;  %3617 = vmatmul.msk.bf16.gmra.mxu1 %vm143_vm1, %v4670_v17 }
  0x2e   :  { %3619 = vmatmul.msk.bf16.gmra.mxu2 %vm143_vm1, %v4670_v17 }
  0x2f   :  { %3621 = vmatmul.msk.bf16.gmra.mxu3 %vm143_vm1, %v4670_v17  ;;  %vm525_vm1 = vcmask 1044484  }
  0x9a   :  { %v5200_v18 = vpop.f32.mrf.mxu0  ;;  %v5202_v19 = vpop.f32.mrf.mxu1 }
  0x9b   :  { %v281_v28 = vmul.f32 %v5200_v18, %v5200_v18  ;;  %v282_v33 = vmul.f32 %v5202_v19, %v5202_v19 }
  0xa1   :  { %v5204_v20 = vpop.f32.mrf.mxu2 }
  0xa2   :  { %v5206_v21 = vpop.f32.mrf.mxu3  ;;  %v5208_v22 = vpop.f32.mrf.mxu0  ;;  %v283_v39 = vmul.f32 %v5204_v20, %v5204_v20 }
  0xa3   :  { %v5210_v23 = vpop.f32.mrf.mxu1  ;;  %v285_v29 = vmul.f32 %v5208_v22, %v5208_v22  ;;  %v241_v31 = vadd.f32 %v5208_v22, %v5200_v18  ;;  %v284_v50 = vmul.f32 %v5206_v21, %v5206_v21 }
  0xa4   :  { %v286_v30 = vmul.f32 %v5210_v23, %v5210_v23  ;;  %v250_v34 = vadd.f32 %v5210_v23, %v5202_v19 }
  0xa5   :  { %v297_v37 = vadd.f32 %v285_v29, %v281_v28 }
  0xa6   :  { %v306_v42 = vadd.f32 %v286_v30, %v282_v33 }
  0xa9   :  { %v5212_v24 = vpop.f32.mrf.mxu2 }
  0xaa   :  { %v5214_v25 = vpop.f32.mrf.mxu3  ;;  %v5216_v26 = vpop.f32.mrf.mxu0  ;;  %v287_v40 = vmul.f32 %v5212_v24, %v5212_v24  ;;  %v259_v58 = vadd.f32 %v5212_v24, %v5204_v20 }
  0xab   :  { %v5218_v27 = vpop.f32.mrf.mxu1  ;;  %v289_v32 = vmul.f32 %v5216_v26, %v5216_v26  ;;  %v242_v36 = vadd.f32 %v241_v31, %v5216_v26  ;;  %v288_v45 = vmul.f32 %v5214_v25, %v5214_v25  ;;  %v268_v59 = vadd.f32 %v5214_v25, %v5206_v21 }
  0xac   :  { %v290_v35 = vmul.f32 %v5218_v27, %v5218_v27  ;;  %v251_v41 = vadd.f32 %v250_v34, %v5218_v27  ;;  %v315_v62 = vadd.f32 %v287_v40, %v283_v39 }
  0xad   :  { %v298_v46 = vadd.f32 %v297_v37, %v289_v32  ;;  %v324_v63 = vadd.f32 %v288_v45, %v284_v50 }
  0xae   :  { %v307_v51 = vadd.f32 %v306_v42, %v290_v35 }
  0xb1   :  { %v5237_v38 = vpop.f32.mrf.mxu2 }
  0xb2   :  { %v5244_v43 = vpop.f32.mrf.mxu3  ;;  %v5246_v44 = vpop.f32.mrf.mxu0  ;;  %v291_v54 = vmul.f32 %v5237_v38, %v5237_v38  ;;  %v260_v2 = vadd.f32 %v259_v58, %v5237_v38 }
  0xb3   :  { %v243_v47 = vadd.f32 %v242_v36, %v5246_v44  ;;  %v293_v48 = vmul.f32 %v5246_v44, %v5246_v44  ;;  %v5253_v49 = vpop.f32.mrf.mxu1  ;;  %v292_v55 = vmul.f32 %v5244_v43, %v5244_v43  ;;  %v269_v3 = vadd.f32 %v268_v59, %v5244_v43 }
  0xb4   :  { %v252_v52 = vadd.f32 %v251_v41, %v5253_v49  ;;  %v294_v53 = vmul.f32 %v5253_v49, %v5253_v49  ;;  %v316_v6 = vadd.f32 %v315_v62, %v291_v54 }
  0xb5   :  { %v244_v56 = vrot.slane %v243_v47, 4  ;;  %v299_v57 = vadd.f32 %v298_v46, %v293_v48  ;;  %v325_v7 = vadd.f32 %v324_v63, %v292_v55 }
  0xb6   :  { %v253_v60 = vrot.slane %v252_v52, 4  ;;  %v308_v61 = vadd.f32 %v307_v51, %v294_v53 }
  0xb7   :  { %v245_v0 = vadd.f32 %v244_v56, %v243_v47  ;;  %v300_v1 = vrot.slane %v299_v57, 4 }
  0xb8   :  { %v254_v4 = vadd.f32 %v253_v60, %v252_v52  ;;  %v309_v5 = vrot.slane %v308_v61, 4 }
  0xb9   :  { %v246_v8 = vrot.slane %v245_v0, 2  ;;  %v301_v9 = vadd.f32 %v300_v1, %v299_v57  ;;  %v5270_v10 = vpop.f32.mrf.mxu2 }
  0xba   :  { %v255_v11 = vrot.slane %v254_v4, 2  ;;  %v310_v12 = vadd.f32 %v309_v5, %v308_v61  ;;  %v261_v13 = vadd.f32 %v260_v2, %v5270_v10  ;;  %v295_v14 = vmul.f32 %v5270_v10, %v5270_v10  ;;  %v5275_v15 = vpop.f32.mrf.mxu3 }
  0xbb   :  { %v247_v16 = vadd.f32 %v246_v8, %v245_v0  ;;  %v302_v17 = vrot.slane %v301_v9, 2  ;;  %v270_v28 = vadd.f32 %v269_v3, %v5275_v15  ;;  %v296_v29 = vmul.f32 %v5275_v15, %v5275_v15 }
  0xbc   :  { %v256_v30 = vadd.f32 %v255_v11, %v254_v4  ;;  %v311_v31 = vrot.slane %v310_v12, 2  ;;  %v262_v32 = vrot.slane %v261_v13, 4  ;;  %v317_v33 = vadd.f32 %v316_v6, %v295_v14 }
  0xbd   :  { %v248_v34 = vrot.slane %v247_v16, 1  ;;  %v303_v35 = vadd.f32 %v302_v17, %v301_v9  ;;  %v271_v36 = vrot.slane %v270_v28, 4  ;;  %v326_v37 = vadd.f32 %v325_v7, %v296_v29 }
  0xbe   :  { %v257_v39 = vrot.slane %v256_v30, 1  ;;  %v312_v40 = vadd.f32 %v311_v31, %v310_v12  ;;  %v263_v41 = vadd.f32 %v262_v32, %v261_v13  ;;  %v318_v42 = vrot.slane %v317_v33, 4 }
  0xbf   :  { %v249_v45 = vadd.f32 %v248_v34, %v247_v16  ;;  %v304_v46 = vrot.slane %v303_v35, 1  ;;  %v272_v47 = vadd.f32 %v271_v36, %v270_v28  ;;  %v327_v48 = vrot.slane %v326_v37, 4 }
  0xc0   :  { %v258_v50 = vadd.f32 %v257_v39, %v256_v30  ;;  %v313_v51 = vrot.slane %v312_v40, 1  ;;  %v264_v52 = vrot.slane %v263_v41, 2  ;;  %v319_v53 = vadd.f32 %v318_v42, %v317_v33 }
  0xc1   :  { %v5280_v54 = vmul.f32 0.03125, %v249_v45  ;;  %v305_v55 = vadd.f32 %v304_v46, %v303_v35  ;;  %v273_v56 = vrot.slane %v272_v47, 2  ;;  %v328_v57 = vadd.f32 %v327_v48, %v326_v37 }
  0xc2   :  { %v5282_v58 = vmul.f32 0.03125, %v258_v50  ;;  %v314_v59 = vadd.f32 %v313_v51, %v312_v40  ;;  %v265_v60 = vadd.f32 %v264_v52, %v263_v41  ;;  %v320_v61 = vrot.slane %v319_v53, 2 }
  0xc3   :  { %v333_v62 = vmul.f32 0.03125, %v305_v55  ;;  %v337_v63 = vmul.f32 %v5280_v54, %v5280_v54  ;;  %v274_v0 = vadd.f32 %v273_v56, %v272_v47  ;;  %v329_v1 = vrot.slane %v328_v57, 2 }
  0xc4   :  { %v334_v2 = vmul.f32 0.03125, %v314_v59  ;;  %v338_v3 = vmul.f32 %v5282_v58, %v5282_v58  ;;  %v266_v4 = vrot.slane %v265_v60, 1  ;;  %v321_v5 = vadd.f32 %v320_v61, %v319_v53 }
  0xc5   :  { %v341_v6 = vsub.f32 %v333_v62, %v337_v63  ;;  %v275_v7 = vrot.slane %v274_v0, 1  ;;  %v330_v8 = vadd.f32 %v329_v1, %v328_v57 }
  0xc6   :  { %v342_v9 = vsub.f32 %v334_v2, %v338_v3  ;;  %v267_v11 = vadd.f32 %v266_v4, %v265_v60  ;;  %v322_v12 = vrot.slane %v321_v5, 1 }
  0xc7   :  { %v345_v13 = vmax.f32 %v341_v6, 0.0  ;;  %v276_v14 = vadd.f32 %v275_v7, %v274_v0  ;;  %v331_v16 = vrot.slane %v330_v8, 1 }
  0xc8   :  { %v346_v17 = vmax.f32 %v342_v9, 0.0  ;;  %v5288_v28 = vmul.f32 0.03125, %v267_v11  ;;  %v323_v29 = vadd.f32 %v322_v12, %v321_v5 }
  0xc9   :  { %v349_v30 = vadd.f32 1e-05, %v345_v13  ;;  %v5290_v31 = vmul.f32 0.03125, %v276_v14  ;;  %v332_v32 = vadd.f32 %v331_v16, %v330_v8 }
  0xca   :  { %v350_v33 = vadd.f32 1e-05, %v346_v17  ;;  %v335_v34 = vmul.f32 0.03125, %v323_v29  ;;  %v339_v35 = vmul.f32 %v5288_v28, %v5288_v28  ;;  %v239_v17 = vld [vmem:[%s6041_s3] sm:$0xf] }
  0xcb   :  { %4947 = vrsqrt.f32 %v349_v30  ;;  %v336_v36 = vmul.f32 0.03125, %v332_v32  ;;  %v340_v37 = vmul.f32 %v5290_v31, %v5290_v31  ;;  %vm359_vm12 = vweird.f32 %v349_v30 }
  0xcc   :  { %4949 = vrsqrt.f32 %v350_v33  ;;  %v343_v39 = vsub.f32 %v335_v34, %v339_v35  ;;  %vm369_vm3 = vweird.f32 %v350_v33  ;;  %v532_v34 = vld [vmem:[#allocation2 + $0x8] sm:$0x11] }
  0xcd   :  { %v344_v40 = vsub.f32 %v336_v36, %v340_v37  ;;  %v6062_v37 = vmov 0 }
  0xce   :  { %v347_v41 = vmax.f32 %v343_v39, 0.0  ;;  %v535_v39 = vld [vmem:[#allocation2 + $0x40] sm:$0x11] }
  0xcf   :  { %v348_v42 = vmax.f32 %v344_v40, 0.0  ;;  %v538_v40 = vld [vmem:[#allocation2 + $0x48] sm:$0x11] }
  0xd0   :  { %v351_v45 = vadd.f32 1e-05, %v347_v41 }
  0xd1   :  { %v4948_v46 = vpop.eup %4947  ;;  %v352_v47 = vadd.f32 1e-05, %v348_v42 }
  0xd2   :  { %v4950_v48 = vpop.eup %4949  ;;  %v354_v50 = vmul.f32 %v4948_v46, %v349_v30  ;;  %4951 = vrsqrt.f32 %v351_v45  ;;  %vm360_vm7 = vweird.f32 %v4948_v46  ;;  %vm379_vm8 = vweird.f32 %v351_v45 }
  0xd3   :  { %v364_v51 = vmul.f32 %v4950_v48, %v350_v33  ;;  %4953 = vrsqrt.f32 %v352_v47  ;;  %vm370_vm2 = vweird.f32 %v4950_v48  ;;  %vm389_vm10 = vweird.f32 %v352_v47  ;;  %vm5296_vm15 = vmor %vm359_vm12, %vm360_vm7  ;;  %v529_v33 = vld [vmem:[#allocation2] sm:$0x11] }
  0xd4   :  { %v355_v53 = vmul.f32 %v4948_v46, %v354_v50  ;;  %vm371_vm4 = vmor %vm369_vm3, %vm370_vm2  ;;  %vm404_vm2 = vcmask 1041408   ;;  %vm6054_vm7 = vsmask.f32 7954 }
  0xd5   :  { %v365_v52 = vmul.f32 %v4950_v48, %v364_v51  ;;  %vm524_vm3 = vmand %vm6052_vm11, %vm6053_vm0  ;;  %v549_v51 = vld [vmem:[#allocation2 + $0x28] sm:$0x11] }
  0xd6   :  { %v356_v61 = vmul.f32 0.5, %v355_v53  ;;  %v552_v53 = vld [vmem:[#allocation2 + $0x60] sm:$0x11] }
  0xd7   :  { %v366_v55 = vmul.f32 0.5, %v365_v52  ;;  %v6064_v52 = vmov 0 }
  0xd8   :  { %v4952_v56 = vpop.eup %4951  ;;  %v357_v3 = vsub.f32 1.5, %v356_v61 }
  0xd9   :  { %v4954_v57 = vpop.eup %4953  ;;  %v367_v59 = vsub.f32 1.5, %v366_v55  ;;  %v374_v60 = vmul.f32 %v4952_v56, %v351_v45  ;;  %vm380_vm5 = vweird.f32 %v4952_v56  ;;  %v555_v55 = vld [vmem:[#allocation2 + $0x68] sm:$0x11] }
  0xda   :  { %v384_v62 = vmul.f32 %v4954_v57, %v352_v47  ;;  %vm390_vm6 = vweird.f32 %v4954_v57  ;;  %v358_v9 = vmul.f32 %v4948_v46, %v357_v3  ;;  %vm381_vm9 = vmor %vm379_vm8, %vm380_vm5  ;;  %vm6055_vm5 = vsmask.f32 7938  ;;  %v546_v47 = vld [vmem:[#allocation2 + $0x20] sm:$0x11] }
  0xdb   :  { %v375_v63 = vmul.f32 %v4952_v56, %v374_v60  ;;  %v368_v0 = vmul.f32 %v4950_v48, %v367_v59  ;;  %vm391_vm13 = vmor %vm389_vm10, %vm390_vm6 }
  0xdc   :  { %v385_v1 = vmul.f32 %v4954_v57, %v384_v62  ;;  %v362_v30 = vsel %vm5296_vm15, %v4948_v46, %v358_v9  ;;  %vm544_vm10 = vmand %vm525_vm1, %vm6054_vm7  ;;  %v3680_v9 = vld [vmem:[#allocation7 + $0x270] sm:$0xf] }
  0xdd   :  { %v376_v2 = vmul.f32 0.5, %v375_v63  ;;  %v372_v6 = vsel %vm371_vm4, %v4950_v48, %v368_v0  ;;  %vm526_vm4 = vsmask.f32 4352 }
  0xde   :  { %v386_v4 = vmul.f32 0.5, %v385_v1  ;;  %v397_v12 = vrot.slane %v372_v6, 7  ;;  %vm527_vm6 = vmand %vm525_vm1, %vm526_vm4 }
  0xdf   :  { %v377_v5 = vsub.f32 1.5, %v376_v2  ;;  %vm5310_vm8 = vmor %vm527_vm6, %vm524_vm3 }
  0xe0   :  { %v387_v7 = vsub.f32 1.5, %v386_v4  ;;  %v401_v35 = vsel %vm6052_vm11, %v362_v30, %v397_v12  ;;  %v6063_v37 = vsel %vm5310_vm8, 4294967295, %v6062_v37  ;;  %v530_v42 = vsel %vm5310_vm8, 0, %v529_v33  ;;  %v240_v4 = vld [vmem:[%s6042_s4] sm:$0xf] }
  0xe1   :  { %v378_v8 = vmul.f32 %v4952_v56, %v377_v5  ;;  %v533_v45 = vsel %vm5310_vm8, 0, %v532_v34  ;;  %v536_v46 = vsel %vm5310_vm8, 0, %v535_v39  ;;  %531 = vst [vmem:[#allocation2] sm:$0x11] %v530_v42  ;;  %v539_v50 = vsel %vm5310_vm8, 0, %v538_v40 }
  0xe2   :  { %v388_v11 = vmul.f32 %v4954_v57, %v387_v7  ;;  %534 = vst [vmem:[#allocation2 + $0x8] sm:$0x11] %v533_v45  ;;  %v3744_v12 = vld [vmem:[#allocation7 + $0x2f0] sm:$0xf]  ;;  %v4794_v30 = vld [vmem:[#allocation7 + $0x374] sm:$0xf0] }
  0xe3   :  { %v382_v13 = vsel %vm381_vm9, %v4952_v56, %v378_v8  ;;  %vm542_vm9 = vmand %vm6052_vm11, %vm6055_vm5  ;;  %537 = vst [vmem:[#allocation2 + $0x40] sm:$0x11] %v536_v46  ;;  %v3872_v33 = vld [vmem:[#allocation7 + $0x3f0] sm:$0xf]  ;;  %v4776_v42 = vld [vmem:[#allocation7 + $0x2e4] sm:$0xf0] }
  0xe4   :  { %v398_v16 = vrot.slane %v382_v13, 6  ;;  %v392_v29 = vsel %vm391_vm13, %v4954_v57, %v388_v11  ;;  %vm5327_vm12 = vmor %vm544_vm10, %vm542_vm9  ;;  %540 = vst [vmem:[#allocation2 + $0x48] sm:$0x11] %v539_v50  ;;  %v4762_v11 = vld [vmem:[#allocation7 + $0x274] sm:$0xf0] }
  0xe5   :  { %v399_v32 = vrot.slane %v392_v29, 5  ;;  %v6065_v52 = vsel %vm5327_vm12, 4294967295, %v6064_v52  ;;  %v547_v61 = vsel %vm5327_vm12, 0, %v546_v47  ;;  %v550_v62 = vsel %vm5327_vm12, 0, %v549_v51 }
  0xe6   :  { %v556_v63 = vsel %vm5327_vm12, 0, %v555_v55  ;;  %548 = vst [vmem:[#allocation2 + $0x20] sm:$0x11] %v547_v61  ;;  %v553_v3 = vsel %vm5327_vm12, 0, %v552_v53  ;;  %v3681_v45 = vor.u32 %v4762_v11, %v3680_v9 }
  0xe7   :  { %v403_v36 = vsel %vm402_vm14, %v398_v16, %v399_v32  ;;  %551 = vst [vmem:[#allocation2 + $0x28] sm:$0x11] %v550_v62  ;;  %v3808_v16 = vld [vmem:[#allocation7 + $0x370] sm:$0xf] }
  0xe8   :  { %v405_v41 = vsel %vm404_vm2, %v401_v35, %v403_v36  ;;  %557 = vst [vmem:[#allocation2 + $0x68] sm:$0x11] %v556_v63  ;;  %v3672_v35 = vld [vmem:[#allocation7 + $0x260] sm:$0xf]  ;;  %v3809_v47 = vor.u32 %v4794_v30, %v3808_v16  ;;  %1273 = vmatpush.bf16.msrb.mxu0 %v3681_v45 }
  0xe9   :  { %v407_v48 = vmul.f32 %v405_v41, %v239_v17  ;;  %554 = vst [vmem:[#allocation2 + $0x60] sm:$0x11] %v553_v3  ;;  %v3736_v41 = vld [vmem:[#allocation7 + $0x2e0] sm:$0xf] }
  0xea   :  { %v3737_v53 = vor.u32 %v4776_v42, %v3736_v41  ;;  %1311 = vmatpush.bf16.msrb.mxu2 %v3809_v47 }
  0xeb   :  { %v409_v56 = vperm.slane %v407_v48, 0  ;;  %v410_v57 = vperm.slane %v407_v48, 1  ;;  %v411_v59 = vperm.slane %v407_v48, 2  ;;  %v412_v60 = vperm.slane %v407_v48, 3 }
  0xed   :  { %v418_v0 = vmul.f32 %v410_v57, %v5282_v58  ;;  %v419_v1 = vmul.f32 %v411_v59, %v5288_v28  ;;  %v420_v2 = vmul.f32 %v412_v60, %v5290_v31  ;;  %v417_v5 = vmul.f32 %v409_v56, %v5280_v54 }
  0xee   :  { %v433_v6 = vmul.f32 %v409_v56, %v5200_v18  ;;  %v434_v7 = vmul.f32 %v410_v57, %v5202_v19  ;;  %v435_v31 = vmul.f32 %v411_v59, %v5204_v20  ;;  %v436_v13 = vmul.f32 %v412_v60, %v5206_v21  ;;  %v4778_v19 = vld [vmem:[#allocation7 + $0x2f4] sm:$0xf0] }
  0xef   :  { %v425_v58 = vrot.slane %v418_v0, 7  ;;  %v426_v8 = vrot.slane %v419_v1, 6  ;;  %v427_v28 = vrot.slane %v420_v2, 5  ;;  %v437_v14 = vmul.f32 %v409_v56, %v5208_v22  ;;  %v4810_v21 = vld [vmem:[#allocation7 + $0x3f4] sm:$0xf0] }
  0xf0   :  { %v438_v54 = vmul.f32 %v410_v57, %v5210_v23  ;;  %v439_v18 = vmul.f32 %v411_v59, %v5212_v24  ;;  %v440_v20 = vmul.f32 %v412_v60, %v5214_v25  ;;  %v441_v32 = vmul.f32 %v409_v56, %v5216_v26  ;;  %v4760_v26 = vld [vmem:[#allocation7 + $0x264] sm:$0xf0] }
  0xf1   :  { %v428_v17 = vsel %vm6052_vm11, %v417_v5, %v425_v58  ;;  %v429_v29 = vsel %vm402_vm14, %v426_v8, %v427_v28  ;;  %v442_v23 = vmul.f32 %v410_v57, %v5218_v27  ;;  %v443_v24 = vmul.f32 %v411_v59, %v5237_v38  ;;  %v3800_v5 = vld [vmem:[#allocation7 + $0x360] sm:$0xf]  ;;  %v4808_v58 = vld [vmem:[#allocation7 + $0x3e4] sm:$0xf0] }
  0xf2   :  { %v430_v22 = vsel %vm404_vm2, %v428_v17, %v429_v29  ;;  %v444_v34 = vmul.f32 %v412_v60, %v5244_v43  ;;  %v445_v39 = vmul.f32 %v409_v56, %v5246_v44  ;;  %v446_v40 = vmul.f32 %v410_v57, %v5253_v49 }
  0xf3   :  { %v432_v36 = vsub.f32 %v240_v4, %v430_v22  ;;  %v447_v25 = vmul.f32 %v411_v59, %v5270_v10  ;;  %v3745_v46 = vor.u32 %v4778_v19, %v3744_v12  ;;  %v3873_v48 = vor.u32 %v4810_v21, %v3872_v33 }
  0xf4   :  { %v448_v43 = vmul.f32 %v412_v60, %v5275_v15  ;;  %v3673_v44 = vor.u32 %v4760_v26, %v3672_v35 }
  0xf5   :  { %v450_v27 = vperm.slane %v432_v36, 0  ;;  %v451_v50 = vperm.slane %v432_v36, 1  ;;  %v452_v38 = vperm.slane %v432_v36, 2  ;;  %v453_v51 = vperm.slane %v432_v36, 3  ;;  %1292 = vmatpush.bf16.msrb.mxu1 %v3745_v46  ;;  %1330 = vmatpush.bf16.msrb.mxu3 %v3873_v48 }
  0xf6   :  { %1274 = vmatpush.bf16.msrb.mxu0 %v3673_v44 }
  0xf7   :  { %v458_v49 = vadd.f32 %v450_v27, %v433_v6  ;;  %v459_v55 = vadd.f32 %v451_v50, %v434_v7  ;;  %v460_v10 = vadd.f32 %v452_v38, %v435_v31  ;;  %v461_v56 = vadd.f32 %v453_v51, %v436_v13  ;;  %v4792_v6 = vld [vmem:[#allocation7 + $0x364] sm:$0xf0]  ;;  %v3864_v7 = vld [vmem:[#allocation7 + $0x3e0] sm:$0xf] }
  0xf8   :  { %v462_v57 = vadd.f32 %v450_v27, %v437_v14  ;;  %v463_v59 = vadd.f32 %v451_v50, %v438_v54  ;;  %v464_v61 = vadd.f32 %v452_v38, %v439_v18  ;;  %v465_v62 = vadd.f32 %v453_v51, %v440_v20 }
  0xf9   :  { %v466_v63 = vadd.f32 %v450_v27, %v441_v32  ;;  %v467_v0 = vadd.f32 %v451_v50, %v442_v23  ;;  %v468_v1 = vadd.f32 %v452_v38, %v443_v24  ;;  %v469_v2 = vadd.f32 %v453_v51, %v444_v34  ;;  %1293 = vmatpush.bf16.msrb.mxu1 %v3737_v53 }
  0xfa   :  { %v470_v3 = vadd.f32 %v450_v27, %v445_v39  ;;  %v471_v15 = vadd.f32 %v451_v50, %v446_v40  ;;  %v472_v60 = vadd.f32 %v452_v38, %v447_v25  ;;  %v473_v4 = vadd.f32 %v453_v51, %v448_v43 }
  0xfb   :  { %vm474_vm13 = vcmp.gt.f32.partialorder %v458_v49, 0.0  ;;  %vm475_vm14 = vcmp.gt.f32.partialorder %v459_v55, 0.0  ;;  %vm476_vm15 = vcmp.gt.f32.partialorder %v460_v10, 0.0  ;;  %vm477_vm1 = vcmp.gt.f32.partialorder %v461_v56, 0.0 }
  0xfc   :  { %vm478_vm2 = vcmp.gt.f32.partialorder %v462_v57, 0.0  ;;  %vm480_vm4 = vcmp.gt.f32.partialorder %v464_v61, 0.0  ;;  %vm481_vm6 = vcmp.gt.f32.partialorder %v465_v62, 0.0  ;;  %vm482_vm9 = vcmp.gt.f32.partialorder %v466_v63, 0.0 }
  0xfd   :  { %vm483_vm10 = vcmp.gt.f32.partialorder %v467_v0, 0.0  ;;  %vm484_vm11 = vcmp.gt.f32.partialorder %v468_v1, 0.0  ;;  %vm485_vm0 = vcmp.gt.f32.partialorder %v469_v2, 0.0  ;;  %vm486_vm7 = vcmp.gt.f32.partialorder %v470_v3, 0.0 }
  0xfe   :  { %vm487_vm5 = vcmp.gt.f32.partialorder %v471_v15, 0.0  ;;  %vm488_vm12 = vcmp.gt.f32.partialorder %v472_v60, 0.0  ;;  %vm489_vm8 = vcmp.gt.f32.partialorder %v473_v4, 0.0  ;;  %v490_v8 = vmul.f32 0.01, %v458_v49 }
  0xff   :  { %v491_v28 = vmul.f32 0.01, %v459_v55  ;;  %v492_v31 = vmul.f32 0.01, %v460_v10  ;;  %v3801_v9 = vor.u32 %v4792_v6, %v3800_v5  ;;  %v493_v11 = vmul.f32 0.01, %v461_v56 }
 0x100   :  { %v494_v12 = vmul.f32 0.01, %v462_v57  ;;  %v495_v13 = vmul.f32 0.01, %v463_v59  ;;  %v3865_v14 = vor.u32 %v4808_v58, %v3864_v7  ;;  %v496_v54 = vmul.f32 0.01, %v464_v61 }
 0x101   :  { %v497_v18 = vmul.f32 0.01, %v465_v62  ;;  %v498_v19 = vmul.f32 0.01, %v466_v63  ;;  %v506_v16 = vsel %vm474_vm13, %v458_v49, %v490_v8  ;;  %1312 = vmatpush.bf16.msrb.mxu2 %v3801_v9  ;;  %v499_v17 = vmul.f32 0.01, %v467_v0 }
 0x102   :  { %v500_v29 = vmul.f32 0.01, %v468_v1  ;;  %v501_v20 = vmul.f32 0.01, %v469_v2  ;;  %v507_v32 = vsel %vm475_vm14, %v459_v55, %v491_v28  ;;  %1331 = vmatpush.bf16.msrb.mxu3 %v3865_v14  ;;  %v502_v30 = vmul.f32 0.01, %v470_v3 }
 0x103   :  { %v503_v33 = vmul.f32 0.01, %v471_v15  ;;  %v504_v21 = vmul.f32 0.01, %v472_v60  ;;  %v508_v22 = vsel %vm476_vm15, %v460_v10, %v492_v31  ;;  %v505_v23 = vmul.f32 0.01, %v473_v4 }
 0x104   :  { %v509_v24 = vsel %vm477_vm1, %v461_v56, %v493_v11  ;;  %v510_v34 = vsel %vm478_vm2, %v462_v57, %v494_v12  ;;  %vm6066_vm3 = vcmp.gt.f32.partialorder %v463_v59, 0.0  ;;  %v512_v36 = vsel %vm480_vm4, %v464_v61, %v496_v54  ;;  %v656_v14 = vld [vmem:[#allocation2 + $0x8] sm:$0xff] }
 0x105   :  { %v511_v35 = vsel %vm6066_vm3, %v463_v59, %v495_v13  ;;  %v513_v39 = vsel %vm481_vm6, %v465_v62, %v497_v18  ;;  %v514_v40 = vsel %vm482_vm9, %v466_v63, %v498_v19  ;;  %v515_v25 = vsel %vm483_vm10, %v467_v0, %v499_v17  ;;  %v653_v13 = vld [vmem:[#allocation2] sm:$0xff]  ;;  %v664_v17 = vld [vmem:[#allocation2 + $0x28] sm:$0x11] }
 0x106   :  { %v516_v26 = vsel %vm484_vm11, %v468_v1, %v500_v29  ;;  %v517_v41 = vsel %vm485_vm0, %v469_v2, %v501_v20  ;;  %v518_v42 = vsel %vm486_vm7, %v470_v3, %v502_v30  ;;  %v519_v45 = vsel %vm487_vm5, %v471_v15, %v503_v33  ;;  %v670_v29 = vld [vmem:[#allocation2 + $0x48] sm:$0xff]  ;;  %v3664_v20 = vld [vmem:[#allocation7 + $0x250] sm:$0xf] }
 0x107   :  { %v520_v46 = vsel %vm488_vm12, %v472_v60, %v504_v21  ;;  %v521_v47 = vsel %vm489_vm8, %v473_v4, %v505_v23  ;;  %v558_v48 = vpack.c.bf16 %v507_v32, %v506_v16  ;;  %v559_v27 = vpack.c.bf16 %v509_v24, %v508_v22  ;;  %v4758_v32 = vld [vmem:[#allocation7 + $0x254] sm:$0xf0]  ;;  %v3728_v23 = vld [vmem:[#allocation7 + $0x2d0] sm:$0xf] }
 0x108   :  { %v560_v50 = vpack.c.bf16 %v511_v35, %v510_v34  ;;  %v561_v38 = vpack.c.bf16 %v513_v39, %v512_v36  ;;  %v5381_v51 = vpack.c.bf16 %v515_v25, %v514_v40  ;;  %v563_v43 = vpack.c.bf16 %v517_v41, %v516_v26  ;;  %v4774_v24 = vld [vmem:[#allocation7 + $0x2d4] sm:$0xf0]  ;;  %v3792_v34 = vld [vmem:[#allocation7 + $0x350] sm:$0xf] }
 0x109   :  { %v5383_v44 = vpack.c.bf16 %v519_v45, %v518_v42  ;;  %vm566_vm11 = vsmask.f32 4368  ;;  %v569_v53 = vshrl.u32 %v558_v48, 16  ;;  %vm650_vm0 = vcmask 1047556   ;;  %v4790_v35 = vld [vmem:[#allocation7 + $0x354] sm:$0xf0] }
 0x10a   :  { %v5385_v49 = vpack.c.bf16 %v521_v47, %v520_v46  ;;  %v572_v55 = vshll.u32 %v558_v48, 16  ;;  %v576_v10 = vshrl.u32 %v559_v27, 16  ;;  %v584_v56 = vshrl.u32 %v560_v50, 16  ;;  %v5428_v36 = vld [vmem:[#allocation7 + $0x3d0] sm:$0xf] }
 0x10b   :  { %v571_v57 = vrot.slane %v569_v53, 7  ;;  %v579_v59 = vshll.u32 %v559_v27, 16  ;;  %v593_v61 = vshrl.u32 %v561_v38, 16  ;;  %v603_v62 = vshrl.u32 %v5381_v51, 16  ;;  %v5430_v39 = vld [vmem:[#allocation7 + $0x3d4] sm:$0xf0] }
 0x10c   :  { %vm6067_vm5 = vsmask.f32 7938  ;;  %vm6068_vm7 = vcmask 1043456   ;;  %v578_v0 = vrot.slane %v576_v10, 7  ;;  %v5394_v1 = vrot.slane %v584_v56, 7 }
 0x10d   :  { %vm5390_vm8 = vmand %vm6068_vm7, %vm6067_vm5  ;;  %v587_v2 = vshll.u32 %v560_v50, 16  ;;  %v610_v3 = vshrl.u32 %v563_v43, 16  ;;  %vm6071_vm12 = vsmask.f32 7954  ;;  %vm6072_vm14 = vsmask.f32 256 }
 0x10e   :  { %vm651_vm13 = vmand %vm650_vm0, %vm6071_vm12  ;;  %v582_v60 = vrot.slane %v571_v57, 4  ;;  %v595_v4 = vrot.slane %v593_v61, 7  ;;  %v596_v5 = vshll.u32 %v561_v38, 16  ;;  %v5403_v6 = vrot.slane %v603_v62, 7  ;;  %v678_v42 = vld [vmem:[#allocation2 + $0x68] sm:$0x11] }
 0x10f   :  { %vm5399_vm15 = vmor %vm6072_vm14, %vm566_vm11  ;;  %v574_v7 = vor.u32 %v572_v55, %v571_v57  ;;  %v589_v58 = vor.u32 %v587_v2, %v5394_v1  ;;  %v591_v8 = vrot.slane %v578_v0, 4  ;;  %v581_v28 = vor.u32 %v579_v59, %v578_v0  ;;  %v2699_v45 = vld [vmem:[#allocation3] sm:$0x11]  ;;  %v5443_v47 = vld [vmem:[#allocation7 + $0x244] sm:$0xf0] }
 0x110   :  { %v598_v31 = vor.u32 %v596_v5, %v595_v4  ;;  %v601_v9 = vrot.slane %v595_v4, 4  ;;  %v5406_v11 = vrot.slane %v610_v3, 7  ;;  %vm5410_vm1 = vmor %vm651_vm13, %vm5390_vm8  ;;  %v606_v18 = vshll.u32 %v5381_v51, 16  ;;  %v5441_v46 = vld [vmem:[#allocation7 + $0x240] sm:$0xf] }
 0x111   :  { %v5416_v54 = vsel %vm5399_vm15, %v582_v60, %v589_v58  ;;  %v613_v19 = vshll.u32 %v563_v43, 16  ;;  %v618_v16 = vshrl.u32 %v5383_v44, 16  ;;  %v616_v33 = vrot.slane %v5403_v6, 4  ;;  %v2705_v51 = vld [vmem:[#allocation3 + $0x10] sm:$0x11]  ;;  %v667_v4 = vld [vmem:[#allocation2 + $0x40] sm:$0xff] }
 0x112   :  { %v5422_v30 = vsel %vm5399_vm15, %v591_v8, %v598_v31  ;;  %v621_v21 = vshll.u32 %v5383_v44, 16  ;;  %v627_v22 = vshrl.u32 %v5385_v49, 16  ;;  %659 = vst [vmem:[#allocation2 + $0x10] sm:$0xff] %v5416_v54  ;;  %v625_v26 = vrot.slane %v5406_v11, 4  ;;  %v5453_v43 = vld [vmem:[#allocation7 + $0x2c0] sm:$0xf] }
 0x113   :  { %v615_v40 = vor.u32 %v613_v19, %v5406_v11  ;;  %v5433_v25 = vrot.slane %v618_v16, 7  ;;  %v5438_v41 = vsel %vm5410_vm1, %v574_v7, %v653_v13  ;;  %660 = vst [vmem:[#allocation2 + $0x18] sm:$0xff] %v5422_v30  ;;  %v630_v27 = vshll.u32 %v5385_v49, 16  ;;  %v5455_v44 = vld [vmem:[#allocation7 + $0x2c4] sm:$0xf0] }
 0x114   :  { %v629_v48 = vrot.slane %v627_v22, 7  ;;  %v5448_v50 = vsel %vm5410_vm1, %v581_v28, %v656_v14  ;;  %vm6077_vm2 = vnez %v6063_v37  ;;  %655 = vst [vmem:[#allocation2] sm:$0xff] %v5438_v41  ;;  %v5457_v53 = vld [vmem:[#allocation7 + $0x340] sm:$0xf]  ;;  %v4788_v55 = vld [vmem:[#allocation7 + $0x344] sm:$0xf0]  ;;  %v608_v61 = vor.u32 %v606_v18, %v5403_v6 }
 0x115   :  { %v665_v38 = vsel %vm6077_vm2, %v601_v9, %v664_v17  ;;  %v600_v10 = vrot.slane %v5394_v1, 4  ;;  %v623_v49 = vor.u32 %v621_v21, %v5433_v25  ;;  %658 = vst [vmem:[#allocation2 + $0x8] sm:$0xff] %v5448_v50  ;;  %v5464_v56 = vsel %vm5410_vm1, %v615_v40, %v670_v29  ;;  %v3848_v57 = vld [vmem:[#allocation7 + $0x3c0] sm:$0xf]  ;;  %v4804_v59 = vld [vmem:[#allocation7 + $0x3c4] sm:$0xf0] }
 0x116   :  { %v632_v62 = vor.u32 %v630_v27, %v629_v48  ;;  %v635_v63 = vrot.slane %v629_v48, 4  ;;  %666 = vst [vmem:[#allocation2 + $0x28] sm:$0x11] %v665_v38  ;;  %v3665_v0 = vor.u32 %v4758_v32, %v3664_v20  ;;  %v5467_v2 = vld [vmem:[#allocation7 + $0x230] sm:$0xf]  ;;  %v3729_v5 = vor.u32 %v4774_v24, %v3728_v23 }
 0x117   :  { %v5469_v3 = vld [vmem:[#allocation7 + $0x234] sm:$0xf0]  ;;  %v5473_v60 = vsel %vm5399_vm15, %v616_v33, %v623_v49  ;;  %672 = vst [vmem:[#allocation2 + $0x48] sm:$0xff] %v5464_v56  ;;  %v3793_v7 = vor.u32 %v4790_v35, %v3792_v34  ;;  %v3857_v6 = vor.u32 %v5430_v39, %v5428_v36  ;;  %v5478_v58 = vld [vmem:[#allocation7 + $0x2b0] sm:$0xf]  ;;  %v2700_v18 = vsel %vm6077_vm2, 0, %v2699_v45 }
 0x118   :  { %v5480_v8 = vld [vmem:[#allocation7 + $0x2b4] sm:$0xf0]  ;;  %v5482_v28 = vld [vmem:[#allocation7 + $0x330] sm:$0xf]  ;;  %v5492_v13 = vsel %vm5399_vm15, %v625_v26, %v632_v62  ;;  %673 = vst [vmem:[#allocation2 + $0x50] sm:$0xff] %v5473_v60  ;;  %v679_v14 = vsel %vm6077_vm2, %v635_v63, %v678_v42  ;;  %1275 = vmatpush.bf16.msrb.mxu0 %v3665_v0  ;;  %v3657_v19 = vor.u32 %v5443_v47, %v5441_v46  ;;  %v761_v26 = vshrl.u32 %v5438_v41, 16 }
 0x119   :  { %v5484_v31 = vld [vmem:[#allocation7 + $0x334] sm:$0xf0]  ;;  %v5486_v9 = vld [vmem:[#allocation7 + $0x3b0] sm:$0xf]  ;;  %v5501_v16 = vld [vmem:[#allocation7 + $0x220] sm:$0xf]  ;;  %vm6078_vm3 = vnez %v6065_v52  ;;  %1294 = vmatpush.bf16.msrb.mxu1 %v3729_v5  ;;  %1313 = vmatpush.bf16.msrb.mxu2 %v3793_v7  ;;  %v3721_v33 = vor.u32 %v5455_v44, %v5453_v43  ;;  %v3785_v21 = vor.u32 %v4788_v55, %v5457_v53  ;;  %v5521_v24 = vsel %vm5410_vm1, %v608_v61, %v667_v4 }
 0x11a   :  { %v5488_v11 = vld [vmem:[#allocation7 + $0x3b4] sm:$0xf0]  ;;  %v5503_v17 = vld [vmem:[#allocation7 + $0x224] sm:$0xf0]  ;;  %v5505_v29 = vld [vmem:[#allocation7 + $0x2a0] sm:$0xf]  ;;  %1332 = vmatpush.bf16.msrb.mxu3 %v3857_v6  ;;  %v3849_v34 = vor.u32 %v4804_v59, %v3848_v57  ;;  %v3649_v39 = vor.u32 %v5469_v3, %v5467_v2  ;;  %v3713_v45 = vor.u32 %v5480_v8, %v5478_v58  ;;  %v3777_v46 = vor.u32 %v5484_v31, %v5482_v28 }
 0x11b   :  { %v5507_v20 = vld [vmem:[#allocation7 + $0x2a4] sm:$0xf0]  ;;  %674 = vst [vmem:[#allocation2 + $0x58] sm:$0xff] %v5492_v13  ;;  %v2706_v32 = vsel %vm6078_vm3, 0, %v2705_v51  ;;  %v5515_v22 = vld [vmem:[#allocation7 + $0x320] sm:$0xf]  ;;  %v3841_v47 = vor.u32 %v5488_v11, %v5486_v9  ;;  %v3641_v48 = vor.u32 %v5503_v17, %v5501_v16 }
 0x11c   :  { %v5517_v23 = vld [vmem:[#allocation7 + $0x324] sm:$0xf0]  ;;  %680 = vst [vmem:[#allocation2 + $0x68] sm:$0x11] %v679_v14  ;;  %v5523_v35 = vld [vmem:[#allocation7 + $0x3a0] sm:$0xf]  ;;  %1276 = vmatpush.bf16.msrb.mxu0 %v3657_v19  ;;  %v3705_v27 = vor.u32 %v5507_v20, %v5505_v29 }
 0x11d   :  { %v5525_v36 = vld [vmem:[#allocation7 + $0x3a4] sm:$0xf0]  ;;  %2701 = vst [vmem:[#allocation3] sm:$0x11] %v2700_v18  ;;  %v661_v40 = vld [vmem:[#allocation2 + $0x20] sm:$0x11]  ;;  %1295 = vmatpush.bf16.msrb.mxu1 %v3721_v33  ;;  %1314 = vmatpush.bf16.msrb.mxu2 %v3785_v21  ;;  %v3769_v38 = vor.u32 %v5517_v23, %v5515_v22 }
 0x11e   :  { %v634_v42 = vrot.slane %v5433_v25, 4  ;;  %2707 = vst [vmem:[#allocation3 + $0x10] sm:$0x11] %v2706_v32  ;;  %1333 = vmatpush.bf16.msrb.mxu3 %v3849_v34  ;;  %v3833_v51 = vor.u32 %v5525_v36, %v5523_v35  ;;  %v5546_v43 = vld [vmem:[#allocation7 + $0x210] sm:$0xf]  ;;  %v662_v53 = vsel %vm6077_vm2, %v600_v10, %v661_v40  ;;  %v763_v49 = vrot.slane %v761_v26, 4 }
 0x11f   :  { %669 = vst [vmem:[#allocation2 + $0x40] sm:$0xff] %v5521_v24  ;;  %v5548_v44 = vld [vmem:[#allocation7 + $0x214] sm:$0xf0]  ;;  %vm757_vm4 = vsmask.f32 3328  ;;  %v764_v57 = vshll.u32 %v5438_v41, 16 }
 0x120   :  { %vm758_vm6 = vsmask.f32 7440  ;;  %v754_v55 = vld [vmem:[#allocation2 + $0x28] sm:$0x11]  ;;  %663 = vst [vmem:[#allocation2 + $0x20] sm:$0x11] %v662_v53  ;;  %1277 = vmatpush.bf16.msrb.mxu0 %v3649_v39  ;;  %v3633_v20 = vor.u32 %v5548_v44, %v5546_v43 }
 0x121   :  { %v770_v59 = vshll.u32 %v5416_v54, 16  ;;  %v788_v61 = vshrl.u32 %v5416_v54, 16  ;;  %v5557_v62 = vld [vmem:[#allocation7 + $0x290] sm:$0xf]  ;;  %v5559_v63 = vld [vmem:[#allocation7 + $0x294] sm:$0xf0]  ;;  %1296 = vmatpush.bf16.msrb.mxu1 %v3713_v45  ;;  %1315 = vmatpush.bf16.msrb.mxu2 %v3777_v46  ;;  %vm5611_vm9 = vmor %vm757_vm4, %vm758_vm6 }
 0x122   :  { %v5561_v1 = vld [vmem:[#allocation7 + $0x310] sm:$0xf]  ;;  %v5563_v0 = vld [vmem:[#allocation7 + $0x314] sm:$0xf0]  ;;  %v775_v3 = vshrl.u32 %v5448_v50, 16  ;;  %v778_v41 = vshll.u32 %v5448_v50, 16  ;;  %1334 = vmatpush.bf16.msrb.mxu3 %v3841_v47  ;;  %v3697_v46 = vor.u32 %v5559_v63, %v5557_v62 }
 0x123   :  { %v5565_v10 = vld [vmem:[#allocation7 + $0x390] sm:$0xf]  ;;  %v5567_v2 = vld [vmem:[#allocation7 + $0x394] sm:$0xf0]  ;;  %v784_v4 = vshll.u32 %v5422_v30, 16  ;;  %v798_v54 = vshrl.u32 %v5422_v30, 16  ;;  %v3761_v47 = vor.u32 %v5563_v0, %v5561_v1 }
 0x124   :  { %v5573_v5 = vld [vmem:[#allocation7 + $0x200] sm:$0xf]  ;;  %v5575_v7 = vld [vmem:[#allocation7 + $0x204] sm:$0xf0]  ;;  %v766_v8 = vrot.slane %v764_v57, 5  ;;  %v772_v28 = vrot.slane %v770_v59, 5  ;;  %1278 = vmatpush.bf16.msrb.mxu0 %v3641_v48  ;;  %v3825_v43 = vor.u32 %v5567_v2, %v5565_v10 }
 0x125   :  { %v5577_v6 = vld [vmem:[#allocation7 + $0x280] sm:$0xf]  ;;  %v5579_v58 = vld [vmem:[#allocation7 + $0x284] sm:$0xf0]  ;;  %v790_v31 = vrot.slane %v788_v61, 4  ;;  %v804_v9 = vshll.u32 %v754_v55, 16  ;;  %1297 = vmatpush.bf16.msrb.mxu1 %v3705_v27  ;;  %1316 = vmatpush.bf16.msrb.mxu2 %v3769_v38  ;;  %v3625_v55 = vor.u32 %v5575_v7, %v5573_v5 }
 0x126   :  { %v5581_v50 = vld [vmem:[#allocation7 + $0x300] sm:$0xf]  ;;  %v5583_v11 = vld [vmem:[#allocation7 + $0x304] sm:$0xf0]  ;;  %v777_v18 = vrot.slane %v775_v3, 4  ;;  %v780_v19 = vrot.slane %v778_v41, 5  ;;  %v767_v32 = vor.u32 %v766_v8, %v763_v49  ;;  %1335 = vmatpush.bf16.msrb.mxu3 %v3833_v51  ;;  %v3689_v49 = vor.u32 %v5579_v58, %v5577_v6 }
 0x127   :  { %v5585_v30 = vld [vmem:[#allocation7 + $0x380] sm:$0xf]  ;;  %v5587_v14 = vld [vmem:[#allocation7 + $0x384] sm:$0xf0]  ;;  %v786_v16 = vrot.slane %v784_v4, 5  ;;  %v800_v17 = vrot.slane %v798_v54, 4  ;;  %v791_v23 = vor.u32 %v790_v31, %v772_v28  ;;  %v3753_v63 = vor.u32 %v5583_v11, %v5581_v50 }
 0x128   :  { %v5589_v29 = vld [vmem:[#allocation7 + $0x274] sm:$0xf]  ;;  %v5593_v33 = vld [vmem:[#allocation7 + $0x278] sm:$0xf0]  ;;  %v781_v34 = vor.u32 %v780_v19, %v777_v18  ;;  %v806_v40 = vrot.slane %v804_v9, 5  ;;  %v768_v44 = vrot.slane %v767_v32, 4  ;;  %v3817_v1 = vor.u32 %v5587_v14, %v5585_v30  ;;  %1279 = vmatpush.bf16.msrb.mxu0 %v3633_v20 }
 0x129   :  { %v5595_v21 = vld [vmem:[#allocation7 + $0x2f4] sm:$0xf]  ;;  %v5597_v22 = vld [vmem:[#allocation7 + $0x2f8] sm:$0xf0]  ;;  %v801_v39 = vor.u32 %v800_v17, %v786_v16  ;;  %v5619_v38 = vld [vmem:[#allocation7 + $0x264] sm:$0xf]  ;;  %v3685_v35 = vor.u32 %v5589_v29, %v5593_v33  ;;  %1298 = vmatpush.bf16.msrb.mxu1 %v3697_v46  ;;  %1317 = vmatpush.bf16.msrb.mxu2 %v3761_v47 }
 0x12a   :  { %v5599_v26 = vld [vmem:[#allocation7 + $0x374] sm:$0xf]  ;;  %v5601_v45 = vld [vmem:[#allocation7 + $0x378] sm:$0xf0]  ;;  %v753_v57 = vld [vmem:[#allocation2 + $0x20] sm:$0x11]  ;;  %v3749_v41 = vor.u32 %v5595_v21, %v5597_v22  ;;  %v773_v5 = vsel %vm5611_vm9, %v768_v44, %v772_v28  ;;  %1336 = vmatpush.bf16.msrb.mxu3 %v3825_v43 }
 0x12b   :  { %v5615_v53 = vld [vmem:[#allocation7 + $0x3f4] sm:$0xf]  ;;  %v5617_v27 = vld [vmem:[#allocation7 + $0x3f8] sm:$0xf0]  ;;  %v782_v59 = vrot.slane %v781_v34, 4  ;;  %v802_v61 = vrot.slane %v801_v39, 4  ;;  %v3813_v58 = vor.u32 %v5599_v26, %v5601_v45  ;;  %v921_v29 = vunpack.c.l.b16 %v773_v5 }
 0x12c   :  { %v5628_v62 = vld [vmem:[#allocation7 + $0x268] sm:$0xf0]  ;;  %v794_v0 = vshll.u32 %v753_v57, 16  ;;  %v5636_v36 = vld [vmem:[#allocation7 + $0x2e4] sm:$0xf]  ;;  %v792_v10 = vrot.slane %v791_v23, 4  ;;  %v3877_v31 = vor.u32 %v5615_v53, %v5617_v27  ;;  %1280 = vmatpush.bf16.msrb.mxu0 %v3625_v55  ;;  %v922_v32 = vunpack.c.h.b16 %v773_v5 }
 0x12d   :  { %v5638_v51 = vld [vmem:[#allocation7 + $0x2e8] sm:$0xf0]  ;;  %v787_v2 = vsel %vm5611_vm9, %v782_v59, %v786_v16  ;;  %v807_v3 = vsel %vm5611_vm9, %v802_v61, %v806_v40  ;;  %v5646_v4 = vld [vmem:[#allocation7 + $0x364] sm:$0xf]  ;;  %v3677_v9 = vor.u32 %v5619_v38, %v5628_v62  ;;  %v5668_v16 = vld [vmem:[#allocation7 + $0x254] sm:$0xf]  ;;  %1299 = vmatpush.bf16.msrb.mxu1 %v3689_v49  ;;  %1318 = vmatpush.bf16.msrb.mxu2 %v3753_v63 }
 0x12e   :  { %v5648_v54 = vld [vmem:[#allocation7 + $0x368] sm:$0xf0]  ;;  %v796_v7 = vrot.slane %v794_v0, 5  ;;  %v927_v6 = vunpack.c.l.b16 %v807_v3  ;;  %v928_v8 = vunpack.c.h.b16 %v807_v3  ;;  %v3741_v50 = vor.u32 %v5636_v36, %v5638_v51  ;;  %v5660_v11 = vld [vmem:[#allocation7 + $0x3e4] sm:$0xf]  ;;  %1337 = vmatpush.bf16.msrb.mxu3 %v3817_v1 }
 0x12f   :  { %v5662_v30 = vld [vmem:[#allocation7 + $0x3e8] sm:$0xf0]  ;;  %v923_v14 = vunpack.c.l.b16 %v787_v2  ;;  %v924_v18 = vunpack.c.h.b16 %v787_v2  ;;  %v3805_v19 = vor.u32 %v5646_v4, %v5648_v54  ;;  %v5670_v17 = vld [vmem:[#allocation7 + $0x258] sm:$0xf0]  ;;  %v675_v34 = vld [vmem:[#allocation2 + $0x60] sm:$0x11] }
 0x130   :  { %v797_v28 = vsel %vm5611_vm9, %v792_v10, %v796_v7  ;;  %v3869_v23 = vor.u32 %v5660_v11, %v5662_v30  ;;  %1349 = vmatpush.bf16.msra.mxu0 %v3685_v35  ;;  %v3669_v26 = vor.u32 %v5668_v16, %v5670_v17  ;;  %v4773_v45 = vld [vmem:[#allocation7 + $0x2d4] sm:$0xf]  ;;  %v3730_v46 = vld [vmem:[#allocation7 + $0x2d8] sm:$0xf0]  ;;  %v809_v44 = vshrl.u32 %v5521_v24, 16 }
 0x131   :  { %v925_v20 = vunpack.c.l.b16 %v797_v28  ;;  %v926_v33 = vunpack.c.h.b16 %v797_v28  ;;  %v5672_v21 = vpack.c.b16 %v927_v6, %v923_v14  ;;  %v5674_v22 = vpack.c.b16 %v928_v8, %v924_v18  ;;  %v4789_v47 = vld [vmem:[#allocation7 + $0x354] sm:$0xf]  ;;  %v3794_v43 = vld [vmem:[#allocation7 + $0x358] sm:$0xf0]  ;;  %1368 = vmatpush.bf16.msra.mxu1 %v3749_v41  ;;  %1387 = vmatpush.bf16.msra.mxu2 %v3813_v58  ;;  %v756_v49 = vld [vmem:[#allocation2 + $0x68] sm:$0x11] }
 0x132   :  { %v676_v53 = vsel %vm6077_vm2, %v634_v42, %v675_v34  ;;  %v812_v27 = vshll.u32 %v5521_v24, 16  ;;  %v818_v38 = vshll.u32 %v5473_v60, 16  ;;  %v836_v55 = vshrl.u32 %v5473_v60, 16  ;;  %v4805_v24 = vld [vmem:[#allocation7 + $0x3d4] sm:$0xf]  ;;  %1406 = vmatpush.bf16.msra.mxu3 %v3877_v31 }
 0x133   :  { %v5678_v39 = vpack.c.b16 %v925_v20, %v921_v29  ;;  %v5680_v40 = vpack.c.b16 %v926_v33, %v922_v32  ;;  %677 = vst [vmem:[#allocation2 + $0x60] sm:$0x11] %v676_v53  ;;  %v811_v57 = vrot.slane %v809_v44, 4  ;;  %v823_v59 = vshrl.u32 %v5464_v56, 16  ;;  %1319 = vmatmul.bf16.vlgmr.msrb.gmra.mxu2 %v5672_v21  ;;  %1338 = vmatmul.bf16.vlgmr.msrb.gmra.mxu3 %v5674_v22  ;;  %v3858_v42 = vld [vmem:[#allocation7 + $0x3d8] sm:$0xf0] }
 0x134   :  { %v826_v25 = vshll.u32 %v5464_v56, 16  ;;  %v832_v61 = vshll.u32 %v5492_v13, 16  ;;  %v4755_v60 = vld [vmem:[#allocation7 + $0x244] sm:$0xf]  ;;  %v814_v62 = vrot.slane %v812_v27, 5  ;;  %v820_v63 = vrot.slane %v818_v38, 5  ;;  %1350 = vmatpush.bf16.msra.mxu0 %v3677_v9 }
 0x135   :  { %1281 = vmatmul.bf16.vlgmr.msrb.gmra.mxu0 %v5678_v39  ;;  %1300 = vmatmul.bf16.vlgmr.msrb.gmra.mxu1 %v5680_v40  ;;  %v838_v1 = vrot.slane %v836_v55, 4  ;;  %v846_v0 = vshrl.u32 %v5492_v13, 16  ;;  %v3658_v35 = vld [vmem:[#allocation7 + $0x248] sm:$0xf0]  ;;  %v825_v36 = vrot.slane %v823_v59, 4  ;;  %v852_v10 = vshll.u32 %v756_v49, 16 }
 0x136   :  { %v828_v51 = vrot.slane %v826_v25, 5  ;;  %v834_v56 = vrot.slane %v832_v61, 5  ;;  %1369 = vmatpush.bf16.msra.mxu1 %v3741_v50  ;;  %1388 = vmatpush.bf16.msra.mxu2 %v3805_v19  ;;  %v3733_v2 = vor.u32 %v4773_v45, %v3730_v46  ;;  %v3797_v3 = vor.u32 %v4789_v47, %v3794_v43  ;;  %v4771_v41 = vld [vmem:[#allocation7 + $0x2c4] sm:$0xf]  ;;  %v3722_v4 = vld [vmem:[#allocation7 + $0x2c8] sm:$0xf0] }
 0x137   :  { %v815_v54 = vor.u32 %v814_v62, %v811_v57  ;;  %v848_v5 = vrot.slane %v846_v0, 4  ;;  %v4787_v7 = vld [vmem:[#allocation7 + $0x344] sm:$0xf]  ;;  %v3786_v6 = vld [vmem:[#allocation7 + $0x348] sm:$0xf0]  ;;  %v854_v9 = vrot.slane %v852_v10, 5  ;;  %1407 = vmatpush.bf16.msra.mxu3 %v3869_v23  ;;  %v3861_v30 = vor.u32 %v4805_v24, %v3858_v42 }
 0x138   :  { %v4803_v58 = vld [vmem:[#allocation7 + $0x3c4] sm:$0xf]  ;;  %v829_v8 = vor.u32 %v828_v51, %v825_v36  ;;  %v3850_v13 = vld [vmem:[#allocation7 + $0x3c8] sm:$0xf0]  ;;  %v4753_v11 = vld [vmem:[#allocation7 + $0x234] sm:$0xf]  ;;  %1351 = vmatpush.bf16.msra.mxu0 %v3669_v26  ;;  %v3661_v28 = vor.u32 %v4755_v60, %v3658_v35  ;;  %v839_v14 = vor.u32 %v838_v1, %v820_v63  ;;  %v3725_v16 = vor.u32 %v4771_v41, %v3722_v4 }
 0x139   :  { %v849_v31 = vor.u32 %v848_v5, %v834_v56  ;;  %v816_v50 = vrot.slane %v815_v54, 4  ;;  %v3650_v18 = vld [vmem:[#allocation7 + $0x238] sm:$0xf0]  ;;  %v4769_v19 = vld [vmem:[#allocation7 + $0x2b4] sm:$0xf]  ;;  %v3789_v17 = vor.u32 %v4787_v7, %v3786_v6  ;;  %v3853_v47 = vor.u32 %v4803_v58, %v3850_v13 }
 0x13a   :  { %1370 = vmatpush.bf16.msra.mxu1 %v3733_v2  ;;  %1389 = vmatpush.bf16.msra.mxu2 %v3797_v3  ;;  %v755_v29 = vld [vmem:[#allocation2 + $0x60] sm:$0x11]  ;;  %v830_v20 = vrot.slane %v829_v8, 4  ;;  %v3714_v33 = vld [vmem:[#allocation7 + $0x2b8] sm:$0xf0]  ;;  %v840_v43 = vrot.slane %v839_v14, 4  ;;  %v3653_v53 = vor.u32 %v4753_v11, %v3650_v18 }
 0x13b   :  { %v850_v32 = vrot.slane %v849_v31, 4  ;;  %v842_v34 = vshll.u32 %v755_v29, 16  ;;  %v4785_v45 = vld [vmem:[#allocation7 + $0x334] sm:$0xf]  ;;  %v3778_v46 = vld [vmem:[#allocation7 + $0x338] sm:$0xf0]  ;;  %1408 = vmatpush.bf16.msra.mxu3 %v3861_v30  ;;  %v821_v26 = vsel %vm5611_vm9, %v816_v50, %v820_v63  ;;  %v3717_v38 = vor.u32 %v4769_v19, %v3714_v33 }
 0x13c   :  { %1352 = vmatpush.bf16.msra.mxu0 %v3661_v28  ;;  %v835_v27 = vsel %vm5611_vm9, %v830_v20, %v834_v56  ;;  %v3781_v55 = vor.u32 %v4785_v45, %v3778_v46  ;;  %v4801_v49 = vld [vmem:[#allocation7 + $0x3b4] sm:$0xf]  ;;  %v3842_v57 = vld [vmem:[#allocation7 + $0x3b8] sm:$0xf0]  ;;  %v4751_v24 = vld [vmem:[#allocation7 + $0x224] sm:$0xf]  ;;  %v929_v62 = vunpack.c.l.b16 %v821_v26  ;;  %v930_v1 = vunpack.c.h.b16 %v821_v26 }
 0x13d   :  { %v855_v23 = vsel %vm5611_vm9, %v850_v32, %v854_v9  ;;  %v844_v44 = vrot.slane %v842_v34, 5  ;;  %v3642_v42 = vld [vmem:[#allocation7 + $0x228] sm:$0xf0]  ;;  %v4767_v60 = vld [vmem:[#allocation7 + $0x2a4] sm:$0xf]  ;;  %v931_v56 = vunpack.c.l.b16 %v835_v27  ;;  %v932_v10 = vunpack.c.h.b16 %v835_v27 }
 0x13e   :  { %1371 = vmatpush.bf16.msra.mxu1 %v3725_v16  ;;  %1390 = vmatpush.bf16.msra.mxu2 %v3789_v17  ;;  %v935_v25 = vunpack.c.l.b16 %v855_v23  ;;  %v936_v61 = vunpack.c.h.b16 %v855_v23  ;;  %v3706_v35 = vld [vmem:[#allocation7 + $0x2a8] sm:$0xf0]  ;;  %v4783_v36 = vld [vmem:[#allocation7 + $0x324] sm:$0xf]  ;;  %v3845_v2 = vor.u32 %v4801_v49, %v3842_v57  ;;  %v3645_v4 = vor.u32 %v4751_v24, %v3642_v42  ;;  %v4749_v13 = vld [vmem:[#allocation7 + $0x214] sm:$0xf] }
 0x13f   :  { %v845_v59 = vsel %vm5611_vm9, %v840_v43, %v844_v44  ;;  %v3770_v51 = vld [vmem:[#allocation7 + $0x328] sm:$0xf0]  ;;  %1409 = vmatpush.bf16.msra.mxu3 %v3853_v47  ;;  %v4799_v54 = vld [vmem:[#allocation7 + $0x3a4] sm:$0xf]  ;;  %v3709_v58 = vor.u32 %v4767_v60, %v3706_v35  ;;  %v3634_v31 = vld [vmem:[#allocation7 + $0x218] sm:$0xf0] }
 0x140   :  { %v933_v63 = vunpack.c.l.b16 %v845_v59  ;;  %v934_v0 = vunpack.c.h.b16 %v845_v59  ;;  %1353 = vmatpush.bf16.msra.mxu0 %v3653_v53  ;;  %v3834_v5 = vld [vmem:[#allocation7 + $0x3a8] sm:$0xf0]  ;;  %v5712_v7 = vpack.c.b16 %v935_v25, %v931_v56  ;;  %v5714_v6 = vpack.c.b16 %v936_v61, %v932_v10  ;;  %v4765_v9 = vld [vmem:[#allocation7 + $0x294] sm:$0xf]  ;;  %v3698_v11 = vld [vmem:[#allocation7 + $0x298] sm:$0xf0] }
 0x141   :  { %v3773_v8 = vor.u32 %v4783_v36, %v3770_v51  ;;  %v4781_v30 = vld [vmem:[#allocation7 + $0x314] sm:$0xf]  ;;  %v3762_v28 = vld [vmem:[#allocation7 + $0x318] sm:$0xf0]  ;;  %v3837_v50 = vor.u32 %v4799_v54, %v3834_v5  ;;  %v3637_v14 = vor.u32 %v4749_v13, %v3634_v31  ;;  %v4747_v16 = vld [vmem:[#allocation7 + $0x204] sm:$0xf]  ;;  %v3701_v17 = vor.u32 %v4765_v9, %v3698_v11 }
 0x142   :  { %v5708_v3 = vpack.c.b16 %v933_v63, %v929_v62  ;;  %v5710_v41 = vpack.c.b16 %v934_v0, %v930_v1  ;;  %1372 = vmatpush.bf16.msra.mxu1 %v3717_v38  ;;  %1391 = vmatpush.bf16.msra.mxu2 %v3781_v55  ;;  %v4797_v18 = vld [vmem:[#allocation7 + $0x394] sm:$0xf]  ;;  %v3826_v19 = vld [vmem:[#allocation7 + $0x398] sm:$0xf0]  ;;  %v3765_v29 = vor.u32 %v4781_v30, %v3762_v28  ;;  %v3626_v20 = vld [vmem:[#allocation7 + $0x208] sm:$0xf0] }
 0x143   :  { %1324 = vmatmul.bf16.gmra.mxu2 %v5712_v7  ;;  %1343 = vmatmul.bf16.gmra.mxu3 %v5714_v6  ;;  %v4763_v32 = vld [vmem:[#allocation7 + $0x284] sm:$0xf]  ;;  %v3690_v33 = vld [vmem:[#allocation7 + $0x288] sm:$0xf0]  ;;  %v3968_v46 = vld [vmem:[#allocation7 + $0x70] sm:$0xf]  ;;  %v3829_v43 = vor.u32 %v4797_v18, %v3826_v19  ;;  %v3629_v44 = vor.u32 %v4747_v16, %v3626_v20 }
 0x144   :  { %1410 = vmatpush.bf16.msra.mxu3 %v3845_v2  ;;  %1354 = vmatpush.bf16.msra.mxu0 %v3645_v4  ;;  %v4779_v34 = vld [vmem:[#allocation7 + $0x304] sm:$0xf]  ;;  %v3754_v45 = vld [vmem:[#allocation7 + $0x308] sm:$0xf0]  ;;  %v4698_v47 = vld [vmem:[#allocation7 + $0x74] sm:$0xf0]  ;;  %v3693_v38 = vor.u32 %v4763_v32, %v3690_v33 }
 0x145   :  { %1286 = vmatmul.bf16.gmra.mxu0 %v5708_v3  ;;  %1305 = vmatmul.bf16.gmra.mxu1 %v5710_v41  ;;  %v4032_v23 = vld [vmem:[#allocation7 + $0xf0] sm:$0xf]  ;;  %v4714_v26 = vld [vmem:[#allocation7 + $0xf4] sm:$0xf0]  ;;  %v3757_v55 = vor.u32 %v4779_v34, %v3754_v45  ;;  %v4795_v49 = vld [vmem:[#allocation7 + $0x384] sm:$0xf]  ;;  %v3969_v59 = vor.u32 %v4698_v47, %v3968_v46 }
 0x146   :  { %1373 = vmatpush.bf16.msra.mxu1 %v3709_v58  ;;  %1392 = vmatpush.bf16.msra.mxu2 %v3773_v8  ;;  %v4096_v53 = vld [vmem:[#allocation7 + $0x170] sm:$0xf]  ;;  %v4730_v27 = vld [vmem:[#allocation7 + $0x174] sm:$0xf0]  ;;  %v3818_v57 = vld [vmem:[#allocation7 + $0x388] sm:$0xf0]  ;;  %v4033_v25 = vor.u32 %v4714_v26, %v4032_v23 }
 0x147   :  { %v4160_v61 = vld [vmem:[#allocation7 + $0x1f0] sm:$0xf]  ;;  %v4746_v24 = vld [vmem:[#allocation7 + $0x1f4] sm:$0xf0]  ;;  %v4097_v42 = vor.u32 %v4730_v27, %v4096_v53  ;;  %v3821_v60 = vor.u32 %v4795_v49, %v3818_v57  ;;  %v3960_v62 = vld [vmem:[#allocation7 + $0x60] sm:$0xf] }
 0x148   :  { %1411 = vmatpush.bf16.msra.mxu3 %v3837_v50  ;;  %1355 = vmatpush.bf16.msra.mxu0 %v3637_v14  ;;  %v4696_v63 = vld [vmem:[#allocation7 + $0x64] sm:$0xf0]  ;;  %v4161_v1 = vor.u32 %v4746_v24, %v4160_v61  ;;  %v4024_v0 = vld [vmem:[#allocation7 + $0xe0] sm:$0xf]  ;;  %v3952_v54 = vld [vmem:[#allocation7 + $0x50] sm:$0xf] }
 0x149   :  { %v4712_v35 = vld [vmem:[#allocation7 + $0xe4] sm:$0xf0]  ;;  %v4088_v36 = vld [vmem:[#allocation7 + $0x160] sm:$0xf]  ;;  %v3961_v2 = vor.u32 %v4696_v63, %v3960_v62  ;;  %v4694_v5 = vld [vmem:[#allocation7 + $0x54] sm:$0xf0] }
 0x14a   :  { %1374 = vmatpush.bf16.msra.mxu1 %v3701_v17  ;;  %1393 = vmatpush.bf16.msra.mxu2 %v3765_v29  ;;  %v4728_v51 = vld [vmem:[#allocation7 + $0x164] sm:$0xf0]  ;;  %v4152_v56 = vld [vmem:[#allocation7 + $0x1e0] sm:$0xf]  ;;  %v4025_v4 = vor.u32 %v4712_v35, %v4024_v0  ;;  %v4016_v13 = vld [vmem:[#allocation7 + $0xd0] sm:$0xf]  ;;  %v3953_v50 = vor.u32 %v4694_v5, %v3952_v54 }
 0x14b   :  { %v4744_v10 = vld [vmem:[#allocation7 + $0x1e4] sm:$0xf0]  ;;  %v4089_v58 = vor.u32 %v4728_v51, %v4088_v36  ;;  %v4710_v31 = vld [vmem:[#allocation7 + $0xd4] sm:$0xf0]  ;;  %v4080_v9 = vld [vmem:[#allocation7 + $0x150] sm:$0xf] }
 0x14c   :  { %1412 = vmatpush.bf16.msra.mxu3 %v3829_v43  ;;  %1356 = vmatpush.bf16.msra.mxu0 %v3629_v44  ;;  %v4153_v8 = vor.u32 %v4744_v10, %v4152_v56  ;;  %v4726_v11 = vld [vmem:[#allocation7 + $0x154] sm:$0xf0]  ;;  %v4144_v30 = vld [vmem:[#allocation7 + $0x1d0] sm:$0xf]  ;;  %v4017_v14 = vor.u32 %v4710_v31, %v4016_v13  ;;  %v3944_v18 = vld [vmem:[#allocation7 + $0x40] sm:$0xf] }
 0x14d   :  { %v4742_v28 = vld [vmem:[#allocation7 + $0x1d4] sm:$0xf0]  ;;  %v4692_v19 = vld [vmem:[#allocation7 + $0x44] sm:$0xf0]  ;;  %v4081_v16 = vor.u32 %v4726_v11, %v4080_v9  ;;  %v4136_v32 = vld [vmem:[#allocation7 + $0x1c0] sm:$0xf] }
 0x14e   :  { %1375 = vmatpush.bf16.msra.mxu1 %v3693_v38  ;;  %1394 = vmatpush.bf16.msra.mxu2 %v3757_v55  ;;  %v4145_v17 = vor.u32 %v4742_v28, %v4144_v30  ;;  %v4708_v29 = vld [vmem:[#allocation7 + $0xc4] sm:$0xf0]  ;;  %v3936_v34 = vld [vmem:[#allocation7 + $0x30] sm:$0xf]  ;;  %v4690_v45 = vld [vmem:[#allocation7 + $0x34] sm:$0xf0] }
 0x14f   :  { %v4724_v20 = vld [vmem:[#allocation7 + $0x144] sm:$0xf0]  ;;  %v4000_v23 = vld [vmem:[#allocation7 + $0xb0] sm:$0xf]  ;;  %v4706_v26 = vld [vmem:[#allocation7 + $0xb4] sm:$0xf0]  ;;  %v3937_v38 = vor.u32 %v4690_v45, %v3936_v34 }
 0x150   :  { %1785 = vmatpush.bf16.msrb.mxu0 %v3969_v59  ;;  %1413 = vmatpush.bf16.msra.mxu3 %v3821_v60  ;;  %v4740_v33 = vld [vmem:[#allocation7 + $0x1c4] sm:$0xf0]  ;;  %v4064_v43 = vld [vmem:[#allocation7 + $0x130] sm:$0xf]  ;;  %v4722_v44 = vld [vmem:[#allocation7 + $0x134] sm:$0xf0]  ;;  %v4001_v55 = vor.u32 %v4706_v26, %v4000_v23 }
 0x151   :  { %v4137_v47 = vor.u32 %v4740_v33, %v4136_v32  ;;  %v4128_v53 = vld [vmem:[#allocation7 + $0x1b0] sm:$0xf]  ;;  %v4738_v27 = vld [vmem:[#allocation7 + $0x1b4] sm:$0xf0]  ;;  %v3928_v49 = vld [vmem:[#allocation7 + $0x20] sm:$0xf]  ;;  %v4065_v59 = vor.u32 %v4722_v44, %v4064_v43 }
 0x152   :  { %1804 = vmatpush.bf16.msrb.mxu1 %v4033_v25  ;;  %1823 = vmatpush.bf16.msrb.mxu2 %v4097_v42  ;;  %v4688_v57 = vld [vmem:[#allocation7 + $0x24] sm:$0xf0]  ;;  %v4129_v25 = vor.u32 %v4738_v27, %v4128_v53  ;;  %v3992_v61 = vld [vmem:[#allocation7 + $0xa0] sm:$0xf]  ;;  %v3920_v35 = vld [vmem:[#allocation7 + $0x10] sm:$0xf] }
 0x153   :  { %1395 = vmatmul.bf16.vlgmr.msra.gmra.mxu2 %v5672_v21  ;;  %1414 = vmatmul.bf16.vlgmr.msra.gmra.mxu3 %v5674_v22  ;;  %v3945_v21 = vor.u32 %v4692_v19, %v3944_v18  ;;  %v4704_v24 = vld [vmem:[#allocation7 + $0xa4] sm:$0xf0]  ;;  %v4056_v42 = vld [vmem:[#allocation7 + $0x120] sm:$0xf]  ;;  %v4686_v36 = vld [vmem:[#allocation7 + $0x14] sm:$0xf0] }
 0x154   :  { %1842 = vmatpush.bf16.msrb.mxu3 %v4161_v1  ;;  %1786 = vmatpush.bf16.msrb.mxu0 %v3961_v2  ;;  %v4720_v60 = vld [vmem:[#allocation7 + $0x124] sm:$0xf0]  ;;  %v4120_v62 = vld [vmem:[#allocation7 + $0x1a0] sm:$0xf]  ;;  %v3929_v1 = vor.u32 %v4688_v57, %v3928_v49  ;;  %v3993_v0 = vor.u32 %v4704_v24, %v3992_v61  ;;  %v3984_v10 = vld [vmem:[#allocation7 + $0x90] sm:$0xf]  ;;  %v3921_v13 = vor.u32 %v4686_v36, %v3920_v35 }
 0x155   :  { %1357 = vmatmul.bf16.vlgmr.msra.gmra.mxu0 %v5678_v39  ;;  %1376 = vmatmul.bf16.vlgmr.msra.gmra.mxu1 %v5680_v40  ;;  %v4008_v39 = vld [vmem:[#allocation7 + $0xc0] sm:$0xf]  ;;  %v4736_v63 = vld [vmem:[#allocation7 + $0x1a4] sm:$0xf0]  ;;  %v4057_v51 = vor.u32 %v4720_v60, %v4056_v42  ;;  %v4702_v2 = vld [vmem:[#allocation7 + $0x94] sm:$0xf0] }
 0x156   :  { %1805 = vmatpush.bf16.msrb.mxu1 %v4025_v4  ;;  %1824 = vmatpush.bf16.msrb.mxu2 %v4089_v58  ;;  %v4072_v40 = vld [vmem:[#allocation7 + $0x140] sm:$0xf]  ;;  %v4009_v22 = vor.u32 %v4708_v29, %v4008_v39  ;;  %v4121_v56 = vor.u32 %v4736_v63, %v4120_v62  ;;  %v4048_v4 = vld [vmem:[#allocation7 + $0x110] sm:$0xf]  ;;  %v4718_v54 = vld [vmem:[#allocation7 + $0x114] sm:$0xf0]  ;;  %v3985_v31 = vor.u32 %v4702_v2, %v3984_v10 }
 0x157   :  { %v4073_v46 = vor.u32 %v4724_v20, %v4072_v40  ;;  %v4112_v5 = vld [vmem:[#allocation7 + $0x190] sm:$0xf]  ;;  %v4734_v58 = vld [vmem:[#allocation7 + $0x194] sm:$0xf0]  ;;  %v4684_v9 = vld [vmem:[#allocation7 + $0x4] sm:$0xf0] }
 0x158   :  { %1843 = vmatpush.bf16.msrb.mxu3 %v4153_v8  ;;  %1787 = vmatpush.bf16.msrb.mxu0 %v3953_v50  ;;  %v3912_v8 = vld [vmem:[#allocation7] sm:$0xf]  ;;  %v4700_v30 = vld [vmem:[#allocation7 + $0x84] sm:$0xf0]  ;;  %v4113_v28 = vor.u32 %v4734_v58, %v4112_v5  ;;  %v4697_v19 = vld [vmem:[#allocation7 + $0x74] sm:$0xf] }
 0x159   :  { %v3976_v11 = vld [vmem:[#allocation7 + $0x80] sm:$0xf]  ;;  %v4716_v50 = vld [vmem:[#allocation7 + $0x104] sm:$0xf0]  ;;  %v3913_v39 = vor.u32 %v4684_v9, %v3912_v8  ;;  %v4098_v40 = vld [vmem:[#allocation7 + $0x178] sm:$0xf0] }
 0x15a   :  { %1806 = vmatpush.bf16.msrb.mxu1 %v4017_v14  ;;  %1825 = vmatpush.bf16.msrb.mxu2 %v4081_v16  ;;  %v4104_v14 = vld [vmem:[#allocation7 + $0x180] sm:$0xf]  ;;  %v4732_v18 = vld [vmem:[#allocation7 + $0x184] sm:$0xf0]  ;;  %v4713_v16 = vld [vmem:[#allocation7 + $0xf4] sm:$0xf]  ;;  %v3977_v29 = vor.u32 %v4700_v30, %v3976_v11 }
 0x15b   :  { %v4745_v20 = vld [vmem:[#allocation7 + $0x1f4] sm:$0xf]  ;;  %v4162_v32 = vld [vmem:[#allocation7 + $0x1f8] sm:$0xf0]  ;;  %v3880_v45 = vld [vmem:[#allocation2] sm:$0xf] }
 0x15c   :  { %1844 = vmatpush.bf16.msrb.mxu3 %v4145_v17  ;;  %1788 = vmatpush.bf16.msrb.mxu0 %v3945_v21  ;;  %v4729_v17 = vld [vmem:[#allocation7 + $0x174] sm:$0xf]  ;;  %v4105_v21 = vor.u32 %v4732_v18, %v4104_v14  ;;  %v4165_v43 = vor.u32 %v4745_v20, %v4162_v32  ;;  %v3888_v44 = vld [vmem:[#allocation2 + $0x8] sm:$0xf]  ;;  %v4678_v53 = vld [vmem:[#allocation2 + $0x14] sm:$0xf0] }
 0x15d   :  { %v3882_v23 = vld [vmem:[#allocation2 + $0x10] sm:$0xf0]  ;;  %v4101_v26 = vor.u32 %v4729_v17, %v4098_v40  ;;  %v4676_v27 = vld [vmem:[#allocation2 + $0xc] sm:$0xf]  ;;  %v4711_v57 = vld [vmem:[#allocation7 + $0xe4] sm:$0xf]  ;;  %v5732_v36 = vor.u32 %v4678_v53, %v3888_v44 }
 0x15e   :  { %1807 = vmatpush.bf16.msrb.mxu1 %v4009_v22  ;;  %1826 = vmatpush.bf16.msrb.mxu2 %v4073_v46  ;;  %v4677_v46 = vld [vmem:[#allocation2 + $0xc] sm:$0xf0]  ;;  %v3962_v49 = vld [vmem:[#allocation7 + $0x68] sm:$0xf0]  ;;  %v4743_v24 = vld [vmem:[#allocation7 + $0x1e4] sm:$0xf] }
 0x15f   :  { %v4090_v61 = vld [vmem:[#allocation7 + $0x168] sm:$0xf0]  ;;  %v5728_v60 = vor.u32 %v4677_v46, %v3880_v45  ;;  %v3954_v35 = vld [vmem:[#allocation7 + $0x58] sm:$0xf0]  ;;  %v4709_v2 = vld [vmem:[#allocation7 + $0xd4] sm:$0xf] }
 0x160   :  { %1845 = vmatpush.bf16.msrb.mxu3 %v4137_v47  ;;  %1789 = vmatpush.bf16.msrb.mxu0 %v3937_v38  ;;  %v4675_v47 = vld [vmem:[#allocation2 + $0x4] sm:$0xf]  ;;  %v3890_v38 = vld [vmem:[#allocation2 + $0x18] sm:$0xf0]  ;;  %v4154_v42 = vld [vmem:[#allocation7 + $0x1e8] sm:$0xf0] }
 0x161   :  { %v5730_v62 = vor.u32 %v4675_v47, %v3882_v23  ;;  %v4157_v10 = vor.u32 %v4743_v24, %v4154_v42  ;;  %v4082_v5 = vld [vmem:[#allocation7 + $0x158] sm:$0xf0]  ;;  %v4741_v58 = vld [vmem:[#allocation7 + $0x1d4] sm:$0xf]  ;;  %v4691_v9 = vld [vmem:[#allocation7 + $0x44] sm:$0xf] }
 0x162   :  { %1808 = vmatpush.bf16.msrb.mxu1 %v4001_v55  ;;  %1827 = vmatpush.bf16.msrb.mxu2 %v4065_v59  ;;  %v4695_v55 = vld [vmem:[#allocation7 + $0x64] sm:$0xf]  ;;  %v4026_v59 = vld [vmem:[#allocation7 + $0xe8] sm:$0xf0]  ;;  %v4146_v8 = vld [vmem:[#allocation7 + $0x1d8] sm:$0xf0] }
 0x163   :  { %1400 = vmatmul.bf16.gmra.mxu2 %v5712_v7  ;;  %1419 = vmatmul.bf16.gmra.mxu3 %v5714_v6  ;;  %v3970_v7 = vld [vmem:[#allocation7 + $0x78] sm:$0xf0]  ;;  %v3965_v63 = vor.u32 %v4695_v55, %v3962_v49  ;;  %v3946_v11 = vld [vmem:[#allocation7 + $0x48] sm:$0xf0]  ;;  %v4739_v18 = vld [vmem:[#allocation7 + $0x1c4] sm:$0xf] }
 0x164   :  { %1846 = vmatpush.bf16.msrb.mxu3 %v4129_v25  ;;  %1790 = vmatpush.bf16.msrb.mxu0 %v3929_v1  ;;  %v4034_v6 = vld [vmem:[#allocation7 + $0xf8] sm:$0xf0]  ;;  %v3973_v22 = vor.u32 %v4697_v19, %v3970_v7  ;;  %v4727_v25 = vld [vmem:[#allocation7 + $0x164] sm:$0xf]  ;;  %v4029_v1 = vor.u32 %v4711_v57, %v4026_v59  ;;  %v4074_v14 = vld [vmem:[#allocation7 + $0x148] sm:$0xf0]  ;;  %v3949_v7 = vor.u32 %v4691_v9, %v3946_v11 }
 0x165   :  { %1362 = vmatmul.bf16.gmra.mxu0 %v5708_v3  ;;  %1381 = vmatmul.bf16.gmra.mxu1 %v5710_v41  ;;  %v4049_v3 = vor.u32 %v4718_v54, %v4048_v4  ;;  %v4040_v41 = vld [vmem:[#allocation7 + $0x100] sm:$0xf]  ;;  %v4037_v34 = vor.u32 %v4713_v16, %v4034_v6  ;;  %v4018_v4 = vld [vmem:[#allocation7 + $0xd8] sm:$0xf0]  ;;  %v4725_v54 = vld [vmem:[#allocation7 + $0x154] sm:$0xf] }
 0x166   :  { %1809 = vmatpush.bf16.msrb.mxu1 %v3993_v0  ;;  %1828 = vmatpush.bf16.msrb.mxu2 %v4057_v51  ;;  %v4041_v33 = vor.u32 %v4716_v50, %v4040_v41  ;;  %v4693_v0 = vld [vmem:[#allocation7 + $0x54] sm:$0xf]  ;;  %v5734_v51 = vor.u32 %v4676_v27, %v3890_v38  ;;  %v4085_v30 = vor.u32 %v4725_v54, %v4082_v5  ;;  %v4010_v41 = vld [vmem:[#allocation7 + $0xc8] sm:$0xf0]  ;;  %v4723_v50 = vld [vmem:[#allocation7 + $0x144] sm:$0xf] }
 0x167   :  { %v4138_v19 = vld [vmem:[#allocation7 + $0x1c8] sm:$0xf0]  ;;  %v4689_v6 = vld [vmem:[#allocation7 + $0x34] sm:$0xf]  ;;  %v3938_v17 = vld [vmem:[#allocation7 + $0x38] sm:$0xf0] }
 0x168   :  { %1847 = vmatpush.bf16.msrb.mxu3 %v4121_v56  ;;  %1791 = vmatpush.bf16.msrb.mxu0 %v3921_v13  ;;  %v4093_v56 = vor.u32 %v4727_v25, %v4090_v61  ;;  %v3957_v13 = vor.u32 %v4693_v0, %v3954_v35  ;;  %v4705_v40 = vld [vmem:[#allocation7 + $0xb4] sm:$0xf]  ;;  %v4002_v20 = vld [vmem:[#allocation7 + $0xb8] sm:$0xf0]  ;;  %v3904_v23 = vld [vmem:[#allocation2 + $0x48] sm:$0xf]  ;;  %v3941_v53 = vor.u32 %v4689_v6, %v3938_v17 }
 0x169   :  { %v4721_v32 = vld [vmem:[#allocation7 + $0x134] sm:$0xf]  ;;  %v4130_v46 = vld [vmem:[#allocation7 + $0x1b8] sm:$0xf0]  ;;  %v4005_v27 = vor.u32 %v4705_v40, %v4002_v20  ;;  %v4687_v38 = vld [vmem:[#allocation7 + $0x24] sm:$0xf] }
 0x16a   :  { %1810 = vmatpush.bf16.msrb.mxu1 %v3985_v31  ;;  %1829 = vmatpush.bf16.msrb.mxu2 %v4049_v3  ;;  %v4021_v31 = vor.u32 %v4709_v2, %v4018_v4  ;;  %v4149_v3 = vor.u32 %v4741_v58, %v4146_v8  ;;  %v4737_v45 = vld [vmem:[#allocation7 + $0x1b4] sm:$0xf]  ;;  %v3906_v44 = vld [vmem:[#allocation2 + $0x58] sm:$0xf0]  ;;  %v3930_v55 = vld [vmem:[#allocation7 + $0x28] sm:$0xf0] }
 0x16b   :  { %v3898_v47 = vld [vmem:[#allocation2 + $0x50] sm:$0xf0]  ;;  %v4133_v57 = vor.u32 %v4737_v45, %v4130_v46  ;;  %v4703_v59 = vld [vmem:[#allocation7 + $0xa4] sm:$0xf]  ;;  %v3994_v25 = vld [vmem:[#allocation7 + $0xa8] sm:$0xf0] }
 0x16c   :  { %1848 = vmatpush.bf16.msrb.mxu3 %v4113_v28  ;;  %1792 = vmatpush.bf16.msrb.mxu0 %v3913_v39  ;;  %v4707_v28 = vld [vmem:[#allocation7 + $0xc4] sm:$0xf]  ;;  %v4077_v39 = vor.u32 %v4723_v50, %v4074_v14  ;;  %v4058_v24 = vld [vmem:[#allocation7 + $0x128] sm:$0xf0]  ;;  %v4685_v2 = vld [vmem:[#allocation7 + $0x14] sm:$0xf] }
 0x16d   :  { %v4013_v16 = vor.u32 %v4707_v28, %v4010_v41  ;;  %v4719_v61 = vld [vmem:[#allocation7 + $0x124] sm:$0xf]  ;;  %v3922_v4 = vld [vmem:[#allocation7 + $0x18] sm:$0xf0]  ;;  %v4701_v8 = vld [vmem:[#allocation7 + $0x94] sm:$0xf] }
 0x16e   :  { %1811 = vmatpush.bf16.msrb.mxu1 %v3977_v29  ;;  %1830 = vmatpush.bf16.msrb.mxu2 %v4041_v33  ;;  %v4141_v29 = vor.u32 %v4739_v18, %v4138_v19  ;;  %v3896_v33 = vld [vmem:[#allocation2 + $0x40] sm:$0xf]  ;;  %v4735_v42 = vld [vmem:[#allocation7 + $0x1a4] sm:$0xf]  ;;  %v4061_v5 = vor.u32 %v4719_v61, %v4058_v24  ;;  %v4050_v9 = vld [vmem:[#allocation7 + $0x118] sm:$0xf0]  ;;  %v3925_v28 = vor.u32 %v4685_v2, %v3922_v4 }
 0x16f   :  { %v4733_v11 = vld [vmem:[#allocation7 + $0x194] sm:$0xf]  ;;  %v3914_v50 = vld [vmem:[#allocation7 + $0x8] sm:$0xf0]  ;;  %v4699_v14 = vld [vmem:[#allocation7 + $0x84] sm:$0xf] }
 0x170   :  { %1849 = vmatpush.bf16.msrb.mxu3 %v4105_v21  ;;  %1861 = vmatpush.bf16.msra.mxu0 %v3973_v22  ;;  %v4681_v21 = vld [vmem:[#allocation2 + $0x4c] sm:$0xf0]  ;;  %v4679_v22 = vld [vmem:[#allocation2 + $0x44] sm:$0xf]  ;;  %v3978_v18 = vld [vmem:[#allocation7 + $0x88] sm:$0xf0] }
 0x171   :  { %v5742_v0 = vor.u32 %v4679_v22, %v3898_v47  ;;  %v4042_v6 = vld [vmem:[#allocation7 + $0x108] sm:$0xf0]  ;;  %v4731_v17 = vld [vmem:[#allocation7 + $0x184] sm:$0xf]  ;;  %v4826_v40 = vld [vmem:[#allocation7 + $0x474] sm:$0xf0]  ;;  %v3981_v22 = vor.u32 %v4699_v14, %v3978_v18 }
 0x172   :  { %1880 = vmatpush.bf16.msra.mxu1 %v4037_v34  ;;  %1899 = vmatpush.bf16.msra.mxu2 %v4101_v26  ;;  %v4066_v34 = vld [vmem:[#allocation7 + $0x138] sm:$0xf0]  ;;  %v4682_v26 = vld [vmem:[#allocation2 + $0x54] sm:$0xf0]  ;;  %v4292_v20 = vld [vmem:[#allocation7 + $0x4f0] sm:$0xf] }
 0x173   :  { %1831 = vmatmul.bf16.vlgmr.msrb.gmra.mxu2 %v5732_v36  ;;  %1850 = vmatmul.bf16.vlgmr.msrb.gmra.mxu3 %v5734_v51  ;;  %v4069_v49 = vor.u32 %v4721_v32, %v4066_v34  ;;  %v5744_v35 = vor.u32 %v4682_v26, %v3904_v23  ;;  %v4842_v32 = vld [vmem:[#allocation7 + $0x4f4] sm:$0xf0]  ;;  %v4420_v45 = vld [vmem:[#allocation7 + $0x5f0] sm:$0xf]  ;;  %v4872_v61 = vld [vmem:[#allocation7 + $0x5e4] sm:$0xf0] }
 0x174   :  { %1918 = vmatpush.bf16.msra.mxu3 %v4165_v43  ;;  %1862 = vmatpush.bf16.msra.mxu0 %v3965_v63  ;;  %v4680_v43 = vld [vmem:[#allocation2 + $0x4c] sm:$0xf]  ;;  %v4858_v34 = vld [vmem:[#allocation7 + $0x574] sm:$0xf0]  ;;  %v4276_v4 = vld [vmem:[#allocation7 + $0x4d0] sm:$0xf] }
 0x175   :  { %1793 = vmatmul.bf16.vlgmr.msrb.gmra.mxu0 %v5728_v60  ;;  %1812 = vmatmul.bf16.vlgmr.msrb.gmra.mxu1 %v5730_v62  ;;  %v4122_v63 = vld [vmem:[#allocation7 + $0x1a8] sm:$0xf0]  ;;  %v5746_v54 = vor.u32 %v4680_v43, %v3906_v44  ;;  %v4874_v46 = vld [vmem:[#allocation7 + $0x5f4] sm:$0xf0]  ;;  %v4293_v43 = vor.u32 %v4842_v32, %v4292_v20  ;;  %v4852_v14 = vld [vmem:[#allocation7 + $0x544] sm:$0xf0] }
 0x176   :  { %1881 = vmatpush.bf16.msra.mxu1 %v4029_v1  ;;  %1900 = vmatpush.bf16.msra.mxu2 %v4093_v56  ;;  %v5740_v1 = vor.u32 %v4681_v21, %v3896_v33  ;;  %v3933_v56 = vor.u32 %v4687_v38, %v3930_v55  ;;  %v4125_v58 = vor.u32 %v4735_v42, %v4122_v63  ;;  %v4356_v33 = vld [vmem:[#allocation7 + $0x570] sm:$0xf]  ;;  %v4824_v38 = vld [vmem:[#allocation7 + $0x464] sm:$0xf0]  ;;  %v4284_v55 = vld [vmem:[#allocation7 + $0x4e0] sm:$0xf] }
 0x177   :  { %v4357_v44 = vor.u32 %v4858_v34, %v4356_v33  ;;  %v4212_v63 = vld [vmem:[#allocation7 + $0x450] sm:$0xf]  ;;  %v4396_v18 = vld [vmem:[#allocation7 + $0x5c0] sm:$0xf]  ;;  %v4850_v20 = vld [vmem:[#allocation7 + $0x534] sm:$0xf0] }
 0x178   :  { %1919 = vmatpush.bf16.msra.mxu3 %v4157_v10  ;;  %1863 = vmatpush.bf16.msra.mxu0 %v3957_v13  ;;  %v3997_v10 = vor.u32 %v4703_v59, %v3994_v25  ;;  %v3986_v13 = vld [vmem:[#allocation7 + $0x98] sm:$0xf0]  ;;  %v4856_v59 = vld [vmem:[#allocation7 + $0x564] sm:$0xf0]  ;;  %v4412_v25 = vld [vmem:[#allocation7 + $0x5e0] sm:$0xf] }
 0x179   :  { %v3989_v41 = vor.u32 %v4701_v8, %v3986_v13  ;;  %v4413_v2 = vor.u32 %v4872_v61, %v4412_v25  ;;  %v4854_v8 = vld [vmem:[#allocation7 + $0x554] sm:$0xf0]  ;;  %v4404_v13 = vld [vmem:[#allocation7 + $0x5d0] sm:$0xf]  ;;  %v5759_v34 = vld [vmem:[#allocation2 + $0x28] sm:$0x11] }
 0x17a   :  { %1882 = vmatpush.bf16.msra.mxu1 %v4021_v31  ;;  %1901 = vmatpush.bf16.msra.mxu2 %v4085_v30  ;;  %v4717_v31 = vld [vmem:[#allocation7 + $0x114] sm:$0xf]  ;;  %v4114_v30 = vld [vmem:[#allocation7 + $0x198] sm:$0xf0]  ;;  %v4388_v32 = vld [vmem:[#allocation7 + $0x5b0] sm:$0xf] }
 0x17b   :  { %v4053_v19 = vor.u32 %v4717_v31, %v4050_v9  ;;  %v4870_v31 = vld [vmem:[#allocation7 + $0x5d4] sm:$0xf0]  ;;  %vm1949_vm10 = vcmask 1042432   ;;  %vm1950_vm11 = vcmask 1046532   ;;  %v4963_v25 = vld [vmem:[#allocation2 + $0x10] sm:$0xff]  ;;  %vm6083_vm4 = vcmask 1040384  }
 0x17c   :  { %1920 = vmatpush.bf16.msra.mxu3 %v4149_v3  ;;  %1864 = vmatpush.bf16.msra.mxu0 %v3949_v7  ;;  %v4683_v3 = vld [vmem:[#allocation7 + $0x4] sm:$0xf]  ;;  %v4117_v7 = vor.u32 %v4733_v11, %v4114_v30  ;;  %v4204_v30 = vld [vmem:[#allocation7 + $0x440] sm:$0xf]  ;;  %v4866_v33 = vld [vmem:[#allocation7 + $0x5b4] sm:$0xf0] }
 0x17d   :  { %v3917_v21 = vor.u32 %v4683_v3, %v3914_v50  ;;  %v4820_v3 = vld [vmem:[#allocation7 + $0x444] sm:$0xf0]  ;;  %v1954_v61 = vrot.slane %v4963_v25, 5  ;;  %vm5771_vm0 = vmor %vm1949_vm10, %vm1950_vm11 }
 0x17e   :  { %1883 = vmatpush.bf16.msra.mxu1 %v4013_v16  ;;  %1902 = vmatpush.bf16.msra.mxu2 %v4077_v39  ;;  %v4715_v16 = vld [vmem:[#allocation7 + $0x104] sm:$0xf]  ;;  %v4106_v39 = vld [vmem:[#allocation7 + $0x188] sm:$0xf0]  ;;  %v4836_v50 = vld [vmem:[#allocation7 + $0x4c4] sm:$0xf0] }
 0x17f   :  { %v4045_v47 = vor.u32 %v4715_v16, %v4042_v6  ;;  %v4109_v23 = vor.u32 %v4731_v17, %v4106_v39  ;;  %v4818_v16 = vld [vmem:[#allocation7 + $0x434] sm:$0xf0]  ;;  %v4260_v39 = vld [vmem:[#allocation7 + $0x4b0] sm:$0xf] }
 0x180   :  { %1921 = vmatpush.bf16.msra.mxu3 %v4141_v29  ;;  %1865 = vmatpush.bf16.msra.mxu0 %v3941_v53  ;;  %v4228_v29 = vld [vmem:[#allocation7 + $0x470] sm:$0xf]  ;;  %v4421_v53 = vor.u32 %v4874_v46, %v4420_v45  ;;  %v1964_v45 = vrot.slane %v5759_v34, 5 }
 0x181   :  { %v4229_v26 = vor.u32 %v4826_v40, %v4228_v29  ;;  %v4834_v29 = vld [vmem:[#allocation7 + $0x4b4] sm:$0xf0]  ;;  %v4324_v40 = vld [vmem:[#allocation7 + $0x530] sm:$0xf] }
 0x182   :  { %1884 = vmatpush.bf16.msra.mxu1 %v4005_v27  ;;  %1903 = vmatpush.bf16.msra.mxu2 %v4069_v49  ;;  %v4220_v27 = vld [vmem:[#allocation7 + $0x460] sm:$0xf]  ;;  %v4840_v49 = vld [vmem:[#allocation7 + $0x4e4] sm:$0xf0] }
 0x183   :  { %1836 = vmatmul.bf16.gmra.mxu2 %v5744_v35  ;;  %1855 = vmatmul.bf16.gmra.mxu3 %v5746_v54  ;;  %v4221_v24 = vor.u32 %v4824_v38, %v4220_v27  ;;  %v4285_v42 = vor.u32 %v4840_v49, %v4284_v55  ;;  %v4832_v27 = vld [vmem:[#allocation7 + $0x4a4] sm:$0xf0]  ;;  %v4316_v38 = vld [vmem:[#allocation7 + $0x520] sm:$0xf] }
 0x184   :  { %1922 = vmatpush.bf16.msra.mxu3 %v4133_v57  ;;  %1866 = vmatpush.bf16.msra.mxu0 %v3933_v56  ;;  %v4348_v57 = vld [vmem:[#allocation7 + $0x560] sm:$0xf]  ;;  %v4822_v56 = vld [vmem:[#allocation7 + $0x454] sm:$0xf0]  ;;  %v4848_v55 = vld [vmem:[#allocation7 + $0x524] sm:$0xf0] }
 0x185   :  { %1798 = vmatmul.bf16.gmra.mxu0 %v5740_v1  ;;  %1817 = vmatmul.bf16.gmra.mxu1 %v5742_v0  ;;  %v4213_v9 = vor.u32 %v4822_v56, %v4212_v63  ;;  %v4380_v49 = vld [vmem:[#allocation7 + $0x5a0] sm:$0xf] }
 0x186   :  { %1885 = vmatpush.bf16.msra.mxu1 %v3997_v10  ;;  %1904 = vmatpush.bf16.msra.mxu2 %v4061_v5  ;;  %v4349_v10 = vor.u32 %v4856_v59, %v4348_v57  ;;  %v4838_v5 = vld [vmem:[#allocation7 + $0x4d4] sm:$0xf0]  ;;  %v4864_v57 = vld [vmem:[#allocation7 + $0x5a4] sm:$0xf0]  ;;  %v1937_v59 = vld [vmem:[#allocation2] sm:$0xee] }
 0x187   :  { %v4277_v11 = vor.u32 %v4838_v5, %v4276_v4  ;;  %v1938_v4 = vld [vmem:[#allocation2 + $0x8] sm:$0xee]  ;;  %v4317_v5 = vor.u32 %v4848_v55, %v4316_v38 }
 0x188   :  { %1923 = vmatpush.bf16.msra.mxu3 %v4125_v58  ;;  %1867 = vmatpush.bf16.msra.mxu0 %v3925_v28  ;;  %v4340_v58 = vld [vmem:[#allocation7 + $0x550] sm:$0xf] }
 0x189   :  { %v4341_v28 = vor.u32 %v4854_v8, %v4340_v58  ;;  %v4381_v58 = vor.u32 %v4864_v57, %v4380_v49  ;;  %v4244_v8 = vld [vmem:[#allocation7 + $0x490] sm:$0xf] }
 0x18a   :  { %1886 = vmatpush.bf16.msra.mxu1 %v3989_v41  ;;  %1905 = vmatpush.bf16.msra.mxu2 %v4053_v19  ;;  %v4405_v41 = vor.u32 %v4870_v31, %v4404_v13  ;;  %v4868_v19 = vld [vmem:[#allocation7 + $0x5c4] sm:$0xf0]  ;;  %v4830_v13 = vld [vmem:[#allocation7 + $0x494] sm:$0xf0]  ;;  %v4308_v31 = vld [vmem:[#allocation7 + $0x510] sm:$0xf] }
 0x18b   :  { %v4397_v17 = vor.u32 %v4868_v19, %v4396_v18  ;;  %v4236_v18 = vld [vmem:[#allocation7 + $0x480] sm:$0xf] }
 0x18c   :  { %1924 = vmatpush.bf16.msra.mxu3 %v4117_v7  ;;  %1868 = vmatpush.bf16.msra.mxu0 %v3917_v21  ;;  %v4196_v7 = vld [vmem:[#allocation7 + $0x430] sm:$0xf]  ;;  %v5756_v21 = vld [vmem:[#allocation2 + $0x20] sm:$0x11] }
 0x18d   :  { %v4197_v46 = vor.u32 %v4818_v16, %v4196_v7  ;;  %v4364_v7 = vld [vmem:[#allocation7 + $0x580] sm:$0xf]  ;;  %v4860_v16 = vld [vmem:[#allocation7 + $0x584] sm:$0xf0] }
 0x18e   :  { %1887 = vmatpush.bf16.msra.mxu1 %v3981_v22  ;;  %1906 = vmatpush.bf16.msra.mxu2 %v4045_v47  ;;  %v1961_v22 = vrot.slane %v5756_v21, 5  ;;  %v4261_v47 = vor.u32 %v4834_v29, %v4260_v39  ;;  %v4841_v39 = vld [vmem:[#allocation7 + $0x4f4] sm:$0xf]  ;;  %v4294_v29 = vld [vmem:[#allocation7 + $0x4f8] sm:$0xf0] }
 0x18f   :  { %v4297_v55 = vor.u32 %v4841_v39, %v4294_v29  ;;  %v4406_v39 = vld [vmem:[#allocation7 + $0x5d8] sm:$0xf0] }
 0x190   :  { %1925 = vmatpush.bf16.msra.mxu3 %v4109_v23  ;;  %2397 = vmatpush.bf16.msrb.mxu0 %v4229_v26  ;;  %v4188_v23 = vld [vmem:[#allocation7 + $0x420] sm:$0xf]  ;;  %v4816_v26 = vld [vmem:[#allocation7 + $0x424] sm:$0xf0] }
 0x191   :  { %v4189_v63 = vor.u32 %v4816_v26, %v4188_v23  ;;  %v4422_v23 = vld [vmem:[#allocation7 + $0x5f8] sm:$0xf0] }
 0x192   :  { %2416 = vmatpush.bf16.msrb.mxu1 %v4293_v43  ;;  %2435 = vmatpush.bf16.msrb.mxu2 %v4357_v44  ;;  %v4325_v43 = vor.u32 %v4850_v20, %v4324_v40  ;;  %v4389_v44 = vor.u32 %v4866_v33, %v4388_v32  ;;  %v4857_v40 = vld [vmem:[#allocation7 + $0x574] sm:$0xf] }
 0x193   :  { %1907 = vmatmul.bf16.vlgmr.msra.gmra.mxu2 %v5732_v36  ;;  %1926 = vmatmul.bf16.vlgmr.msra.gmra.mxu3 %v5734_v51  ;;  %v4205_v36 = vor.u32 %v4820_v3, %v4204_v30  ;;  %v4862_v30 = vld [vmem:[#allocation7 + $0x594] sm:$0xf0]  ;;  %v4172_v3 = vld [vmem:[#allocation7 + $0x400] sm:$0xf] }
 0x194   :  { %2454 = vmatpush.bf16.msrb.mxu3 %v4421_v53  ;;  %2398 = vmatpush.bf16.msrb.mxu0 %v4221_v24  ;;  %v4252_v53 = vld [vmem:[#allocation7 + $0x4a0] sm:$0xf]  ;;  %v5762_v24 = vld [vmem:[#allocation2 + $0x18] sm:$0xff] }
 0x195   :  { %1869 = vmatmul.bf16.vlgmr.msra.gmra.mxu0 %v5728_v60  ;;  %1888 = vmatmul.bf16.vlgmr.msra.gmra.mxu1 %v5730_v62  ;;  %v4268_v60 = vld [vmem:[#allocation7 + $0x4c0] sm:$0xf]  ;;  %v4253_v56 = vor.u32 %v4832_v27, %v4252_v53 }
 0x196   :  { %2417 = vmatpush.bf16.msrb.mxu1 %v4285_v42  ;;  %2436 = vmatpush.bf16.msrb.mxu2 %v4349_v10  ;;  %v4332_v62 = vld [vmem:[#allocation7 + $0x540] sm:$0xf]  ;;  %v4269_v51 = vor.u32 %v4836_v50, %v4268_v60  ;;  %v1958_v42 = vrot.slane %v5762_v24, 5  ;;  %v4180_v10 = vld [vmem:[#allocation7 + $0x410] sm:$0xf]  ;;  %v1960_v60 = vrot.slane %v1954_v61, 4 }
 0x197   :  { %v4333_v6 = vor.u32 %v4852_v14, %v4332_v62  ;;  %v4167_v50 = vrot.slane %v1938_v4, 9  ;;  %v4245_v62 = vor.u32 %v4830_v13, %v4244_v8  ;;  %v4812_v14 = vld [vmem:[#allocation7 + $0x404] sm:$0xf0]  ;;  %v4823_v24 = vld [vmem:[#allocation7 + $0x464] sm:$0xf] }
 0x198   :  { %2455 = vmatpush.bf16.msrb.mxu3 %v4413_v2  ;;  %2399 = vmatpush.bf16.msrb.mxu0 %v4213_v9  ;;  %v4814_v2 = vld [vmem:[#allocation7 + $0x414] sm:$0xf0]  ;;  %v4173_v20 = vor.u32 %v4812_v14, %v4172_v3  ;;  %v4871_v8 = vld [vmem:[#allocation7 + $0x5e4] sm:$0xf]  ;;  %v4414_v13 = vld [vmem:[#allocation7 + $0x5e8] sm:$0xf0] }
 0x199   :  { %v4846_v9 = vld [vmem:[#allocation7 + $0x514] sm:$0xf0]  ;;  %v1959_v53 = vsel %vm5771_vm0, %v4167_v50, %v1958_v42  ;;  %v4214_v14 = vld [vmem:[#allocation7 + $0x458] sm:$0xf0] }
 0x19a   :  { %2418 = vmatpush.bf16.msrb.mxu1 %v4277_v11  ;;  %2437 = vmatpush.bf16.msrb.mxu2 %v4341_v28  ;;  %v4372_v11 = vld [vmem:[#allocation7 + $0x590] sm:$0xf]  ;;  %v2048_v34 = vunpack.c.h.b16 %v1959_v53  ;;  %v4966_v3 = vld [vmem:[#allocation2 + $0x58] sm:$0xff] }
 0x19b   :  { %v4373_v19 = vor.u32 %v4862_v30, %v4372_v11  ;;  %v4965_v11 = vld [vmem:[#allocation2 + $0x50] sm:$0xff] }
 0x19c   :  { %2456 = vmatpush.bf16.msrb.mxu3 %v4405_v41  ;;  %2400 = vmatpush.bf16.msrb.mxu0 %v4205_v36  ;;  %v4166_v41 = vrot.slane %v1937_v59, 9  ;;  %v4300_v36 = vld [vmem:[#allocation7 + $0x500] sm:$0xf]  ;;  %v1968_v30 = vrot.slane %v4965_v11, 5  ;;  %v4262_v11 = vld [vmem:[#allocation7 + $0x4b8] sm:$0xf0] }
 0x19e   :  { %2419 = vmatpush.bf16.msrb.mxu1 %v4269_v51  ;;  %2438 = vmatpush.bf16.msrb.mxu2 %v4333_v6  ;;  %v4844_v51 = vld [vmem:[#allocation7 + $0x504] sm:$0xf0]  ;;  %v4825_v6 = vld [vmem:[#allocation7 + $0x474] sm:$0xf]  ;;  %v1955_v33 = vsel %vm5771_vm0, %v4166_v41, %v1954_v61  ;;  %v1972_v41 = vrot.slane %v4966_v3, 5 }
 0x19f   :  { %v4301_v26 = vor.u32 %v4844_v51, %v4300_v36  ;;  %v2045_v59 = vunpack.c.l.b16 %v1955_v33  ;;  %v2046_v21 = vunpack.c.h.b16 %v1955_v33  ;;  %v4417_v36 = vor.u32 %v4871_v8, %v4414_v13  ;;  %v4837_v51 = vld [vmem:[#allocation7 + $0x4d4] sm:$0xf]  ;;  %v4968_v33 = vld [vmem:[#allocation2 + $0x68] sm:$0x11]  ;;  %v4198_v8 = vld [vmem:[#allocation7 + $0x438] sm:$0xf0] }
 0x1a0   :  { %2457 = vmatpush.bf16.msrb.mxu3 %v4397_v17  ;;  %2401 = vmatpush.bf16.msrb.mxu0 %v4197_v46  ;;  %v4230_v17 = vld [vmem:[#allocation7 + $0x478] sm:$0xf0] }
 0x1a1   :  { %v4358_v46 = vld [vmem:[#allocation7 + $0x578] sm:$0xf0]  ;;  %v4233_v38 = vor.u32 %v4825_v6, %v4230_v17  ;;  %v4869_v17 = vld [vmem:[#allocation7 + $0x5d4] sm:$0xf] }
 0x1a2   :  { %2420 = vmatpush.bf16.msrb.mxu1 %v4261_v47  ;;  %2439 = vmatpush.bf16.msrb.mxu2 %v4325_v43  ;;  %v4873_v47 = vld [vmem:[#allocation7 + $0x5f4] sm:$0xf]  ;;  %v4365_v43 = vor.u32 %v4860_v16, %v4364_v7  ;;  %v4361_v49 = vor.u32 %v4857_v40, %v4358_v46  ;;  %v4278_v7 = vld [vmem:[#allocation7 + $0x4d8] sm:$0xf0]  ;;  %v4967_v40 = vld [vmem:[#allocation2 + $0x60] sm:$0x11] }
 0x1a3   :  { %1912 = vmatmul.bf16.gmra.mxu2 %v5744_v35  ;;  %1931 = vmatmul.bf16.gmra.mxu3 %v5746_v54  ;;  %v4828_v35 = vld [vmem:[#allocation7 + $0x484] sm:$0xf0]  ;;  %v4309_v54 = vor.u32 %v4846_v9, %v4308_v31  ;;  %v4425_v57 = vor.u32 %v4873_v47, %v4422_v23  ;;  %v1939_v9 = vld [vmem:[#allocation2 + $0x40] sm:$0xee]  ;;  %v4853_v16 = vld [vmem:[#allocation7 + $0x554] sm:$0xf]  ;;  %v4281_v23 = vor.u32 %v4837_v51, %v4278_v7 }
 0x1a4   :  { %2458 = vmatpush.bf16.msrb.mxu3 %v4389_v44  ;;  %2402 = vmatpush.bf16.msrb.mxu0 %v4189_v63  ;;  %v4237_v32 = vor.u32 %v4828_v35, %v4236_v18  ;;  %v1962_v44 = vsel %vm5771_vm0, %v1960_v60, %v1961_v22  ;;  %v4222_v22 = vld [vmem:[#allocation7 + $0x468] sm:$0xf0]  ;;  %v4342_v6 = vld [vmem:[#allocation7 + $0x558] sm:$0xf0]  ;;  %v4168_v29 = vrot.slane %v1939_v9, 9  ;;  %v1978_v46 = vrot.slane %v4968_v33, 5 }
 0x1a5   :  { %1874 = vmatmul.bf16.gmra.mxu0 %v5740_v1  ;;  %1893 = vmatmul.bf16.gmra.mxu1 %v5742_v0  ;;  %v1963_v1 = vrot.slane %v1958_v42, 4  ;;  %v4181_v0 = vor.u32 %v4814_v2, %v4180_v10  ;;  %v2049_v25 = vunpack.c.l.b16 %v1962_v44  ;;  %v2050_v61 = vunpack.c.h.b16 %v1962_v44  ;;  %v4839_v10 = vld [vmem:[#allocation7 + $0x4e4] sm:$0xf]  ;;  %v1940_v18 = vld [vmem:[#allocation2 + $0x48] sm:$0xee] }
 0x1a6   :  { %2421 = vmatpush.bf16.msrb.mxu1 %v4253_v56  ;;  %2440 = vmatpush.bf16.msrb.mxu2 %v4317_v5  ;;  %v2047_v42 = vunpack.c.l.b16 %v1959_v53  ;;  %v4855_v2 = vld [vmem:[#allocation7 + $0x564] sm:$0xf]  ;;  %v1974_v44 = vrot.slane %v1968_v30, 4  ;;  %v1977_v53 = vrot.slane %v1972_v41, 4  ;;  %v4833_v9 = vld [vmem:[#allocation7 + $0x4b4] sm:$0xf] }
 0x1a7   :  { %v1965_v27 = vsel %vm5771_vm0, %v1963_v1, %v1964_v45  ;;  %v4286_v45 = vld [vmem:[#allocation7 + $0x4e8] sm:$0xf0]  ;;  %v5787_v60 = vpack.c.b16 %v2049_v25, %v2045_v59  ;;  %v5789_v50 = vpack.c.b16 %v2050_v61, %v2046_v21  ;;  %v4225_v1 = vor.u32 %v4823_v24, %v4222_v22  ;;  %v4851_v25 = vld [vmem:[#allocation7 + $0x544] sm:$0xf] }
 0x1a8   :  { %2459 = vmatpush.bf16.msrb.mxu3 %v4381_v58  ;;  %2403 = vmatpush.bf16.msrb.mxu0 %v4181_v0  ;;  %v2051_v63 = vunpack.c.l.b16 %v1965_v27  ;;  %v2052_v56 = vunpack.c.h.b16 %v1965_v27  ;;  %v4350_v58 = vld [vmem:[#allocation7 + $0x568] sm:$0xf0]  ;;  %v4289_v0 = vor.u32 %v4839_v10, %v4286_v45  ;;  %v1979_v45 = vsel %vm5771_vm0, %v1977_v53, %v1978_v46  ;;  %v4831_v33 = vld [vmem:[#allocation7 + $0x4a4] sm:$0xf] }
 0x1a9   :  { %v4270_v59 = vld [vmem:[#allocation7 + $0x4c8] sm:$0xf0]  ;;  %v4265_v7 = vor.u32 %v4833_v9, %v4262_v11 }
 0x1aa   :  { %2422 = vmatpush.bf16.msrb.mxu1 %v4245_v62  ;;  %2441 = vmatpush.bf16.msrb.mxu2 %v4309_v54  ;;  %v4821_v62 = vld [vmem:[#allocation7 + $0x454] sm:$0xf]  ;;  %v5791_v35 = vpack.c.b16 %v2051_v63, %v2047_v42  ;;  %v5793_v54 = vpack.c.b16 %v2052_v56, %v2048_v34  ;;  %v4334_v22 = vld [vmem:[#allocation7 + $0x548] sm:$0xf0]  ;;  %v4867_v42 = vld [vmem:[#allocation7 + $0x5c4] sm:$0xf]  ;;  %v1969_v34 = vsel %vm5771_vm0, %v4168_v29, %v1968_v30 }
 0x1ab   :  { %v4217_v47 = vor.u32 %v4821_v62, %v4214_v14  ;;  %v4398_v63 = vld [vmem:[#allocation7 + $0x5c8] sm:$0xf0]  ;;  %v4337_v13 = vor.u32 %v4851_v25, %v4334_v22  ;;  %v4849_v30 = vld [vmem:[#allocation7 + $0x534] sm:$0xf]  ;;  %v2053_v3 = vunpack.c.l.b16 %v1969_v34  ;;  %v4390_v62 = vld [vmem:[#allocation7 + $0x5b8] sm:$0xf0] }
 0x1ac   :  { %2460 = vmatpush.bf16.msrb.mxu3 %v4373_v19  ;;  %2404 = vmatpush.bf16.msrb.mxu0 %v4173_v20  ;;  %v4353_v19 = vor.u32 %v4855_v2, %v4350_v58  ;;  %v1975_v20 = vrot.slane %v4967_v40, 5  ;;  %v4817_v58 = vld [vmem:[#allocation7 + $0x434] sm:$0xf]  ;;  %v2060_v40 = vunpack.c.h.b16 %v1979_v45  ;;  %v4254_v46 = vld [vmem:[#allocation7 + $0x4a8] sm:$0xf0] }
 0x1ad   :  { %v4201_v51 = vor.u32 %v4817_v58, %v4198_v8  ;;  %v4813_v25 = vld [vmem:[#allocation7 + $0x414] sm:$0xf] }
 0x1ae   :  { %2423 = vmatpush.bf16.msrb.mxu1 %v4237_v32  ;;  %2442 = vmatpush.bf16.msrb.mxu2 %v4301_v26  ;;  %v4169_v32 = vrot.slane %v1940_v18, 9  ;;  %v4819_v26 = vld [vmem:[#allocation7 + $0x444] sm:$0xf]  ;;  %v1976_v56 = vsel %vm5771_vm0, %v1974_v44, %v1975_v20 }
 0x1af   :  { %v2057_v14 = vunpack.c.l.b16 %v1976_v56  ;;  %v2058_v18 = vunpack.c.h.b16 %v1976_v56  ;;  %v4246_v56 = vld [vmem:[#allocation7 + $0x498] sm:$0xf0] }
 0x1b0   :  { %2461 = vmatpush.bf16.msrb.mxu3 %v4365_v43  ;;  %2473 = vmatpush.bf16.msra.mxu0 %v4233_v38  ;;  %v4206_v43 = vld [vmem:[#allocation7 + $0x448] sm:$0xf0]  ;;  %v1973_v10 = vsel %vm5771_vm0, %v4169_v32, %v1972_v41  ;;  %v2054_v41 = vunpack.c.h.b16 %v1969_v34  ;;  %v4829_v34 = vld [vmem:[#allocation7 + $0x494] sm:$0xf] }
 0x1b1   :  { %v2056_v29 = vunpack.c.h.b16 %v1973_v10  ;;  %v4249_v8 = vor.u32 %v4829_v34, %v4246_v56 }
 0x1b2   :  { %v1282_v4 = vpop.f32.mrf.mxu0  ;;  %v1301_v5 = vpop.f32.mrf.mxu1  ;;  %2492 = vmatpush.bf16.msra.mxu1 %v4297_v55  ;;  %2511 = vmatpush.bf16.msra.mxu2 %v4361_v49  ;;  %v4345_v55 = vor.u32 %v4853_v16, %v4342_v6  ;;  %v4409_v49 = vor.u32 %v4869_v17, %v4406_v39  ;;  %v4815_v16 = vld [vmem:[#allocation7 + $0x424] sm:$0xf]  ;;  %v4190_v6 = vld [vmem:[#allocation7 + $0x428] sm:$0xf0] }
 0x1b3   :  { %v1302_v31 = vadd.f32 %v1301_v5, %v1282_v4  ;;  %2443 = vmatmul.bf16.vlgmr.msrb.gmra.mxu2 %v5791_v35  ;;  %2462 = vmatmul.bf16.vlgmr.msrb.gmra.mxu3 %v5793_v54  ;;  %v4209_v4 = vor.u32 %v4819_v26, %v4206_v43  ;;  %v4863_v26 = vld [vmem:[#allocation7 + $0x5a4] sm:$0xf]  ;;  %v4382_v43 = vld [vmem:[#allocation7 + $0x5a8] sm:$0xf0]  ;;  %v5823_v22 = vpack.c.b16 %v2060_v40, %v2056_v29 }
 0x1b4   :  { %2530 = vmatpush.bf16.msra.mxu3 %v4425_v57  ;;  %2474 = vmatpush.bf16.msra.mxu0 %v4225_v1  ;;  %v4835_v57 = vld [vmem:[#allocation7 + $0x4c4] sm:$0xf]  ;;  %v4326_v1 = vld [vmem:[#allocation7 + $0x538] sm:$0xf0] }
 0x1b5   :  { %2405 = vmatmul.bf16.vlgmr.msrb.gmra.mxu0 %v5787_v60  ;;  %2424 = vmatmul.bf16.vlgmr.msrb.gmra.mxu1 %v5789_v50  ;;  %v4273_v5 = vor.u32 %v4835_v57, %v4270_v59  ;;  %v4329_v20 = vor.u32 %v4849_v30, %v4326_v1  ;;  %v4193_v57 = vor.u32 %v4815_v16, %v4190_v6  ;;  %v4827_v30 = vld [vmem:[#allocation7 + $0x484] sm:$0xf] }
 0x1b6   :  { %2493 = vmatpush.bf16.msra.mxu1 %v4289_v0  ;;  %v1320_v27 = vpop.f32.mrf.mxu2  ;;  %v1339_v38 = vpop.f32.mrf.mxu3  ;;  %2512 = vmatpush.bf16.msra.mxu2 %v4353_v19  ;;  %v4865_v0 = vld [vmem:[#allocation7 + $0x5b4] sm:$0xf]  ;;  %v2055_v19 = vunpack.c.l.b16 %v1973_v10  ;;  %v4257_v59 = vor.u32 %v4831_v33, %v4254_v46 }
 0x1b7   :  { %v1321_v21 = vadd.f32 %v1320_v27, %v1302_v31  ;;  %v4401_v31 = vor.u32 %v4867_v42, %v4398_v63  ;;  %v4393_v32 = vor.u32 %v4865_v0, %v4390_v62  ;;  %v5817_v27 = vpack.c.b16 %v2057_v14, %v2053_v3  ;;  %v4845_v10 = vld [vmem:[#allocation7 + $0x514] sm:$0xf]  ;;  %v4238_v3 = vld [vmem:[#allocation7 + $0x488] sm:$0xf0]  ;;  %v4859_v14 = vld [vmem:[#allocation7 + $0x584] sm:$0xf] }
 0x1b8   :  { %2531 = vmatpush.bf16.msra.mxu3 %v4417_v36  ;;  %2475 = vmatpush.bf16.msra.mxu0 %v4217_v47  ;;  %v2059_v36 = vunpack.c.l.b16 %v1979_v45  ;;  %v4847_v47 = vld [vmem:[#allocation7 + $0x524] sm:$0xf]  ;;  %v4385_v63 = vor.u32 %v4863_v26, %v4382_v43  ;;  %v4310_v45 = vld [vmem:[#allocation7 + $0x518] sm:$0xf0]  ;;  %v4302_v62 = vld [vmem:[#allocation7 + $0x508] sm:$0xf0]  ;;  %v4241_v16 = vor.u32 %v4827_v30, %v4238_v3 }
 0x1b9   :  { %v5811_v2 = vadd.f32 %v1339_v38, %v1321_v21  ;;  %v5819_v38 = vpack.c.b16 %v2058_v18, %v2054_v41  ;;  %v4182_v21 = vld [vmem:[#allocation7 + $0x418] sm:$0xf0]  ;;  %v4313_v9 = vor.u32 %v4845_v10, %v4310_v45  ;;  %v4843_v41 = vld [vmem:[#allocation7 + $0x504] sm:$0xf]  ;;  %v4366_v18 = vld [vmem:[#allocation7 + $0x588] sm:$0xf0] }
 0x1ba   :  { %v5799_v61 = vpop.f32.mrf.mxu0  ;;  %v5801_v24 = vpop.f32.mrf.mxu1  ;;  %2494 = vmatpush.bf16.msra.mxu1 %v4281_v23  ;;  %2513 = vmatpush.bf16.msra.mxu2 %v4345_v55  ;;  %v4318_v23 = vld [vmem:[#allocation7 + $0x528] sm:$0xf0]  ;;  %v5821_v55 = vpack.c.b16 %v2059_v36, %v2055_v19  ;;  %v4185_v58 = vor.u32 %v4813_v25, %v4182_v21  ;;  %v4305_v29 = vor.u32 %v4843_v41, %v4302_v62 }
 0x1bb   :  { %v4321_v42 = vor.u32 %v4847_v47, %v4318_v23  ;;  %v4369_v40 = vor.u32 %v4859_v14, %v4366_v18 }
 0x1bc   :  { %2532 = vmatpush.bf16.msra.mxu3 %v4409_v49  ;;  %2476 = vmatpush.bf16.msra.mxu0 %v4209_v4  ;;  %v4861_v4 = vld [vmem:[#allocation7 + $0x594] sm:$0xf] }
 0x1be   :  { %2495 = vmatpush.bf16.msra.mxu1 %v4273_v5  ;;  %v5813_v17 = vpop.f32.mrf.mxu2  ;;  %v5815_v39 = vpop.f32.mrf.mxu3  ;;  %2514 = vmatpush.bf16.msra.mxu2 %v4337_v13  ;;  %v4374_v5 = vld [vmem:[#allocation7 + $0x598] sm:$0xf0]  ;;  %v4811_v13 = vld [vmem:[#allocation7 + $0x404] sm:$0xf] }
 0x1bf   :  { %v4377_v11 = vor.u32 %v4861_v4, %v4374_v5 }
 0x1c0   :  { %2533 = vmatpush.bf16.msra.mxu3 %v4401_v31  ;;  %2477 = vmatpush.bf16.msra.mxu0 %v4201_v51  ;;  %v4174_v31 = vld [vmem:[#allocation7 + $0x408] sm:$0xf0] }
 0x1c2   :  { %v1287_v44 = vpop.f32.mrf.mxu0  ;;  %v1306_v53 = vpop.f32.mrf.mxu1  ;;  %2496 = vmatpush.bf16.msra.mxu1 %v4265_v7  ;;  %2515 = vmatpush.bf16.msra.mxu2 %v4329_v20  ;;  %v4177_v7 = vor.u32 %v4811_v13, %v4174_v31 }
 0x1c3   :  { %v1307_v49 = vadd.f32 %v1306_v53, %v1287_v44  ;;  %2448 = vmatmul.bf16.gmra.mxu2 %v5821_v55  ;;  %2467 = vmatmul.bf16.gmra.mxu3 %v5823_v22 }
 0x1c4   :  { %2534 = vmatpush.bf16.msra.mxu3 %v4393_v32  ;;  %2478 = vmatpush.bf16.msra.mxu0 %v4193_v57 }
 0x1c5   :  { %2410 = vmatmul.bf16.gmra.mxu0 %v5817_v27  ;;  %2429 = vmatmul.bf16.gmra.mxu1 %v5819_v38 }
 0x1c6   :  { %2497 = vmatpush.bf16.msra.mxu1 %v4257_v59  ;;  %2516 = vmatpush.bf16.msra.mxu2 %v4321_v42  ;;  %v1325_v1 = vpop.f32.mrf.mxu2  ;;  %v1344_v0 = vpop.f32.mrf.mxu3 }
 0x1c7   :  { %v1326_v19 = vadd.f32 %v1325_v1, %v1307_v49 }
 0x1c8   :  { %2535 = vmatpush.bf16.msra.mxu3 %v4385_v63  ;;  %2479 = vmatpush.bf16.msra.mxu0 %v4185_v58 }
 0x1c9   :  { %v5833_v6 = vadd.f32 %v1344_v0, %v1326_v19 }
 0x1ca   :  { %v5829_v36 = vpop.f32.mrf.mxu0  ;;  %v5831_v51 = vpop.f32.mrf.mxu1  ;;  %2498 = vmatpush.bf16.msra.mxu1 %v4249_v8  ;;  %2517 = vmatpush.bf16.msra.mxu2 %v4313_v9 }
 0x1cc   :  { %2536 = vmatpush.bf16.msra.mxu3 %v4377_v11  ;;  %2480 = vmatpush.bf16.msra.mxu0 %v4177_v7 }
 0x1ce   :  { %2499 = vmatpush.bf16.msra.mxu1 %v4241_v16  ;;  %2518 = vmatpush.bf16.msra.mxu2 %v4305_v29  ;;  %v1327_v20 = vpop.f32.mrf.mxu2  ;;  %v1346_v32 = vpop.f32.mrf.mxu3 }
 0x1d0   :  { %2537 = vmatpush.bf16.msra.mxu3 %v4369_v40 }
 0x1d2   :  { %v1358_v33 = vpop.f32.mrf.mxu0  ;;  %v1377_v46 = vpop.f32.mrf.mxu1 }
 0x1d3   :  { %v1378_v47 = vadd.f32 %v1377_v46, %v1358_v33  ;;  %2519 = vmatmul.bf16.vlgmr.msra.gmra.mxu2 %v5791_v35  ;;  %2538 = vmatmul.bf16.vlgmr.msra.gmra.mxu3 %v5793_v54 }
 0x1d5   :  { %2481 = vmatmul.bf16.vlgmr.msra.gmra.mxu0 %v5787_v60  ;;  %2500 = vmatmul.bf16.vlgmr.msra.gmra.mxu1 %v5789_v50 }
 0x1d6   :  { %v1396_v23 = vpop.f32.mrf.mxu2  ;;  %v1415_v26 = vpop.f32.mrf.mxu3 }
 0x1d7   :  { %v1397_v43 = vadd.f32 %v1396_v23, %v1378_v47 }
 0x1d9   :  { %v1416_v49 = vadd.f32 %v1415_v26, %v1397_v43 }
 0x1da   :  { %v1360_v44 = vpop.f32.mrf.mxu0  ;;  %v1379_v53 = vpop.f32.mrf.mxu1 }
 0x1de   :  { %v1398_v57 = vpop.f32.mrf.mxu2  ;;  %v5839_v59 = vpop.f32.mrf.mxu3 }
 0x1e2   :  { %v1363_v25 = vpop.f32.mrf.mxu0  ;;  %v1382_v21 = vpop.f32.mrf.mxu1 }
 0x1e3   :  { %v1383_v42 = vadd.f32 %v1382_v21, %v1363_v25  ;;  %2524 = vmatmul.bf16.gmra.mxu2 %v5821_v55  ;;  %2543 = vmatmul.bf16.gmra.mxu3 %v5823_v22 }
 0x1e5   :  { %2486 = vmatmul.bf16.gmra.mxu0 %v5817_v27  ;;  %2505 = vmatmul.bf16.gmra.mxu1 %v5819_v38  ;;  %v1304_v27 = vadd.f32 %v5801_v24, %v5799_v61 }
 0x1e6   :  { %v1401_v60 = vpop.f32.mrf.mxu2  ;;  %v1420_v50 = vpop.f32.mrf.mxu3 }
 0x1e7   :  { %v1402_v35 = vadd.f32 %v1401_v60, %v1383_v42  ;;  %v1323_v22 = vadd.f32 %v5813_v17, %v1304_v27  ;;  %v1309_v17 = vadd.f32 %v5831_v51, %v5829_v36 }
 0x1e9   :  { %v5845_v34 = vadd.f32 %v1420_v50, %v1402_v35  ;;  %v1342_v13 = vadd.f32 %v5815_v39, %v1323_v22  ;;  %v1328_v19 = vadd.f32 %v1327_v20, %v1309_v17 }
 0x1ea   :  { %v1365_v54 = vpop.f32.mrf.mxu0  ;;  %v1384_v63 = vpop.f32.mrf.mxu1 }
 0x1eb   :  { %v1385_v56 = vadd.f32 %v1384_v63, %v1365_v54  ;;  %v1347_v16 = vadd.f32 %v1346_v32, %v1328_v19 }
 0x1ee   :  { %v1403_v10 = vpop.f32.mrf.mxu2  ;;  %v1422_v45 = vpop.f32.mrf.mxu3 }
 0x1ef   :  { %v1404_v4 = vadd.f32 %v1403_v10, %v1385_v56 }
 0x1f1   :  { %v5850_v55 = vadd.f32 %v1422_v45, %v1404_v4 }
 0x1f2   :  { %v1794_v5 = vpop.f32.mrf.mxu0  ;;  %v1813_v58 = vpop.f32.mrf.mxu1 }
 0x1f3   :  { %v1795_v38 = vadd.f32 %v1794_v5, %v5811_v2 }
 0x1f5   :  { %v1814_v8 = vadd.f32 %v1813_v58, %v1795_v38 }
 0x1f6   :  { %v1832_v31 = vpop.f32.mrf.mxu2  ;;  %v1851_v9 = vpop.f32.mrf.mxu3 }
 0x1f7   :  { %v1833_v11 = vadd.f32 %v1832_v31, %v1814_v8 }
 0x1f9   :  { %v5854_v1 = vadd.f32 %v1851_v9, %v1833_v11 }
 0x1fa   :  { %v1796_v30 = vpop.f32.mrf.mxu0  ;;  %v1815_v3 = vpop.f32.mrf.mxu1 }
 0x1fb   :  { %v1797_v41 = vadd.f32 %v1796_v30, %v1342_v13 }
 0x1fd   :  { %v1816_v0 = vadd.f32 %v1815_v3, %v1797_v41 }
 0x1fe   :  { %v1834_v62 = vpop.f32.mrf.mxu2  ;;  %v1853_v61 = vpop.f32.mrf.mxu3 }
 0x1ff   :  { %v1835_v24 = vadd.f32 %v1834_v62, %v1816_v0 }
 0x201   :  { %v5859_v39 = vadd.f32 %v1853_v61, %v1835_v24 }
 0x202   :  { %v1799_v2 = vpop.f32.mrf.mxu0  ;;  %v1818_v14 = vpop.f32.mrf.mxu1 }
 0x203   :  { %v1800_v18 = vadd.f32 %v1799_v2, %v5833_v6  ;;  %v1380_v6 = vadd.f32 %v1379_v53, %v1360_v44 }
 0x205   :  { %v1819_v7 = vadd.f32 %v1818_v14, %v1800_v18  ;;  %v1399_v20 = vadd.f32 %v1398_v57, %v1380_v6 }
 0x206   :  { %v1837_v29 = vpop.f32.mrf.mxu2  ;;  %v1856_v40 = vpop.f32.mrf.mxu3 }
 0x207   :  { %v1838_v33 = vadd.f32 %v1837_v29, %v1819_v7  ;;  %v1418_v35 = vadd.f32 %v5839_v59, %v1399_v20 }
 0x209   :  { %v5861_v26 = vadd.f32 %v1856_v40, %v1838_v33 }
 0x20a   :  { %v1801_v46 = vpop.f32.mrf.mxu0  ;;  %v1820_v47 = vpop.f32.mrf.mxu1 }
 0x20b   :  { %v1802_v23 = vadd.f32 %v1801_v46, %v1347_v16 }
 0x20d   :  { %v1821_v43 = vadd.f32 %v1820_v47, %v1802_v23 }
 0x20e   :  { %v1839_v25 = vpop.f32.mrf.mxu2  ;;  %v1858_v21 = vpop.f32.mrf.mxu3 }
 0x20f   :  { %v1840_v42 = vadd.f32 %v1839_v25, %v1821_v43 }
 0x211   :  { %v5863_v50 = vadd.f32 %v1858_v21, %v1840_v42 }
 0x212   :  { %v1870_v36 = vpop.f32.mrf.mxu0  ;;  %v1889_v51 = vpop.f32.mrf.mxu1 }
 0x213   :  { %v1871_v60 = vadd.f32 %v1870_v36, %v1416_v49 }
 0x215   :  { %v1890_v32 = vadd.f32 %v1889_v51, %v1871_v60 }
 0x216   :  { %v1908_v54 = vpop.f32.mrf.mxu2  ;;  %v1927_v63 = vpop.f32.mrf.mxu3 }
 0x217   :  { %v1909_v56 = vadd.f32 %v1908_v54, %v1890_v32 }
 0x219   :  { %v5866_v5 = vadd.f32 %v1927_v63, %v1909_v56 }
 0x21a   :  { %v1872_v10 = vpop.f32.mrf.mxu0  ;;  %v1891_v45 = vpop.f32.mrf.mxu1 }
 0x21b   :  { %v1873_v4 = vadd.f32 %v1872_v10, %v1418_v35 }
 0x21d   :  { %v1892_v58 = vadd.f32 %v1891_v45, %v1873_v4 }
 0x21e   :  { %v1910_v27 = vpop.f32.mrf.mxu2  ;;  %v1929_v38 = vpop.f32.mrf.mxu3 }
 0x21f   :  { %v1911_v22 = vadd.f32 %v1910_v27, %v1892_v58 }
 0x221   :  { %v5869_v57 = vadd.f32 %v1929_v38, %v1911_v22 }
 0x222   :  { %v1875_v44 = vpop.f32.mrf.mxu0  ;;  %v1894_v53 = vpop.f32.mrf.mxu1 }
 0x223   :  { %v1876_v49 = vadd.f32 %v1875_v44, %v5845_v34 }
 0x225   :  { %v1895_v8 = vadd.f32 %v1894_v53, %v1876_v49 }
 0x226   :  { %v1913_v59 = vpop.f32.mrf.mxu2  ;;  %v1932_v13 = vpop.f32.mrf.mxu3 }
 0x227   :  { %v1914_v31 = vadd.f32 %v1913_v59, %v1895_v8 }
 0x229   :  { %v5872_v3 = vadd.f32 %v1932_v13, %v1914_v31 }
 0x22a   :  { %v1877_v9 = vpop.f32.mrf.mxu0  ;;  %v1896_v11 = vpop.f32.mrf.mxu1 }
 0x22b   :  { %v1878_v30 = vadd.f32 %v1877_v9, %v5850_v55 }
 0x22d   :  { %v1897_v41 = vadd.f32 %v1896_v11, %v1878_v30 }
 0x22e   :  { %v1915_v0 = vpop.f32.mrf.mxu2  ;;  %v1934_v62 = vpop.f32.mrf.mxu3 }
 0x22f   :  { %v1916_v61 = vadd.f32 %v1915_v0, %v1897_v41 }
 0x231   :  { %v5874_v14 = vadd.f32 %v1934_v62, %v1916_v61 }
 0x232   :  { %v2406_v24 = vpop.f32.mrf.mxu0  ;;  %v2425_v2 = vpop.f32.mrf.mxu1 }
 0x233   :  { %v2426_v18 = vadd.f32 %v2425_v2, %v2406_v24 }
 0x236   :  { %v2444_v34 = vpop.f32.mrf.mxu2  ;;  %v2463_v17 = vpop.f32.mrf.mxu3 }
 0x237   :  { %v2445_v16 = vadd.f32 %v2444_v34, %v2426_v18 }
 0x239   :  { %v2464_v29 = vadd.f32 %v2463_v17, %v2445_v16 }
 0x23a   :  { %v2408_v19 = vpop.f32.mrf.mxu0  ;;  %v2427_v7 = vpop.f32.mrf.mxu1 }
 0x23b   :  { %v2428_v40 = vadd.f32 %v2427_v7, %v2408_v19  ;;  %v5877_v43 = vadd.f32 %v2464_v29, %v5854_v1 }
 0x23d   :  { %v2579_v42 = vmul.f32 %v5877_v43, %v5877_v43 }
 0x23e   :  { %v2446_v33 = vpop.f32.mrf.mxu2  ;;  %v2465_v55 = vpop.f32.mrf.mxu3 }
 0x23f   :  { %v2447_v46 = vadd.f32 %v2446_v33, %v2428_v40 }
 0x241   :  { %v2466_v25 = vadd.f32 %v2465_v55, %v2447_v46 }
 0x242   :  { %v2411_v47 = vpop.f32.mrf.mxu0  ;;  %v2430_v23 = vpop.f32.mrf.mxu1 }
 0x243   :  { %v5880_v21 = vadd.f32 %v2466_v25, %v5859_v39  ;;  %v2431_v6 = vadd.f32 %v2430_v23, %v2411_v47 }
 0x245   :  { %v2559_v36 = vadd.f32 %v5880_v21, %v5877_v43  ;;  %v2581_v51 = vmul.f32 %v5880_v21, %v5880_v21 }
 0x246   :  { %v2449_v60 = vpop.f32.mrf.mxu2  ;;  %v2468_v20 = vpop.f32.mrf.mxu3 }
 0x247   :  { %v2587_v32 = vadd.f32 %v2581_v51, %v2579_v42  ;;  %v2450_v35 = vadd.f32 %v2449_v60, %v2431_v6 }
 0x249   :  { %v2469_v1 = vadd.f32 %v2468_v20, %v2450_v35 }
 0x24a   :  { %v2413_v54 = vpop.f32.mrf.mxu0  ;;  %v2432_v63 = vpop.f32.mrf.mxu1 }
 0x24b   :  { %v5889_v39 = vadd.f32 %v2469_v1, %v5861_v26  ;;  %v2433_v45 = vadd.f32 %v2432_v63, %v2413_v54 }
 0x24d   :  { %v2560_v56 = vadd.f32 %v2559_v36, %v5889_v39  ;;  %v2583_v10 = vmul.f32 %v5889_v39, %v5889_v39 }
 0x24e   :  { %v2451_v4 = vpop.f32.mrf.mxu2  ;;  %v2470_v38 = vpop.f32.mrf.mxu3 }
 0x24f   :  { %v2588_v58 = vadd.f32 %v2587_v32, %v2583_v10  ;;  %v2452_v27 = vadd.f32 %v2451_v4, %v2433_v45 }
 0x251   :  { %v2471_v22 = vadd.f32 %v2470_v38, %v2452_v27 }
 0x252   :  { %v2482_v11 = vpop.f32.mrf.mxu0  ;;  %v2501_v30 = vpop.f32.mrf.mxu1 }
 0x253   :  { %v5895_v44 = vadd.f32 %v2471_v22, %v5863_v50  ;;  %v2502_v2 = vadd.f32 %v2501_v30, %v2482_v11 }
 0x255   :  { %v2561_v53 = vadd.f32 %v2560_v56, %v5895_v44  ;;  %v2585_v26 = vmul.f32 %v5895_v44, %v5895_v44 }
 0x256   :  { %v2520_v62 = vpop.f32.mrf.mxu2  ;;  %v2539_v61 = vpop.f32.mrf.mxu3 }
 0x257   :  { %v2562_v49 = vrot.slane %v2561_v53, 4  ;;  %v2589_v8 = vadd.f32 %v2588_v58, %v2585_v26  ;;  %v2521_v18 = vadd.f32 %v2520_v62, %v2502_v2 }
 0x259   :  { %v2563_v59 = vadd.f32 %v2562_v49, %v2561_v53  ;;  %v2590_v13 = vrot.slane %v2589_v8, 4  ;;  %v2540_v55 = vadd.f32 %v2539_v61, %v2521_v18 }
 0x25a   :  { %v2484_v16 = vpop.f32.mrf.mxu0  ;;  %v2503_v29 = vpop.f32.mrf.mxu1 }
 0x25b   :  { %v2564_v31 = vrot.slane %v2563_v59, 2  ;;  %v2591_v9 = vadd.f32 %v2590_v13, %v2589_v8  ;;  %v2504_v46 = vadd.f32 %v2503_v29, %v2484_v16  ;;  %v5905_v36 = vadd.f32 %v2540_v55, %v5866_v5 }
 0x25d   :  { %v2565_v41 = vadd.f32 %v2564_v31, %v2563_v59  ;;  %v2592_v0 = vrot.slane %v2591_v9, 2  ;;  %v2580_v32 = vmul.f32 %v5905_v36, %v5905_v36 }
 0x25e   :  { %v2522_v47 = vpop.f32.mrf.mxu2  ;;  %v2541_v23 = vpop.f32.mrf.mxu3 }
 0x25f   :  { %v2566_v24 = vrot.slane %v2565_v41, 1  ;;  %v2593_v50 = vadd.f32 %v2592_v0, %v2591_v9  ;;  %v2523_v42 = vadd.f32 %v2522_v47, %v2504_v46 }
 0x261   :  { %v2567_v34 = vadd.f32 %v2566_v24, %v2565_v41  ;;  %v2594_v17 = vrot.slane %v2593_v50, 1  ;;  %v2542_v51 = vadd.f32 %v2541_v23, %v2523_v42 }
 0x262   :  { %v2487_v60 = vpop.f32.mrf.mxu0  ;;  %v2506_v20 = vpop.f32.mrf.mxu1 }
 0x263   :  { %v5900_v19 = vmul.f32 0.03125, %v2567_v34  ;;  %v2595_v7 = vadd.f32 %v2594_v17, %v2593_v50  ;;  %v5908_v6 = vadd.f32 %v2542_v51, %v5869_v57  ;;  %v2507_v63 = vadd.f32 %v2506_v20, %v2487_v60 }
 0x265   :  { %v2605_v40 = vmul.f32 0.03125, %v2595_v7  ;;  %v2607_v33 = vmul.f32 %v5900_v19, %v5900_v19  ;;  %v2568_v35 = vadd.f32 %v5908_v6, %v5905_v36  ;;  %v2582_v1 = vmul.f32 %v5908_v6, %v5908_v6 }
 0x266   :  { %v2525_v54 = vpop.f32.mrf.mxu2  ;;  %v2544_v56 = vpop.f32.mrf.mxu3 }
 0x267   :  { %v2609_v25 = vsub.f32 %v2605_v40, %v2607_v33  ;;  %v2596_v5 = vadd.f32 %v2582_v1, %v2580_v32  ;;  %v2526_v10 = vadd.f32 %v2525_v54, %v2507_v63  ;;  %v2702_v32 = vld [vmem:[#allocation3 + $0x20] sm:$0x11] }
 0x268   :  { %v2703_v63 = vsel %vm6077_vm2, 0, %v2702_v32 }
 0x269   :  { %v2545_v45 = vadd.f32 %v2544_v56, %v2526_v10  ;;  %v2611_v0 = vmax.f32 %v2609_v25, 0.0  ;;  %2704 = vst [vmem:[#allocation3 + $0x20] sm:$0x11] %v2703_v63 }
 0x26a   :  { %v2489_v4 = vpop.f32.mrf.mxu0  ;;  %v2508_v58 = vpop.f32.mrf.mxu1 }
 0x26b   :  { %v5917_v57 = vadd.f32 %v2545_v45, %v5872_v3  ;;  %v2509_v27 = vadd.f32 %v2508_v58, %v2489_v4  ;;  %v2613_v2 = vadd.f32 1e-05, %v2611_v0  ;;  %v2557_v58 = vld [vmem:[%s6044_s6] sm:$0x3] }
 0x26d   :  { %v2569_v22 = vadd.f32 %v2568_v35, %v5917_v57  ;;  %v2584_v53 = vmul.f32 %v5917_v57, %v5917_v57  ;;  %4955 = vrsqrt.f32 %v2613_v2  ;;  %v2708_v35 = vld [vmem:[#allocation3 + $0x30] sm:$0x11]  ;;  %vm2621_vm13 = vweird.f32 %v2613_v2 }
 0x26e   :  { %v2527_v38 = vpop.f32.mrf.mxu2  ;;  %v2546_v8 = vpop.f32.mrf.mxu3  ;;  %v2709_v56 = vsel %vm6078_vm3, 0, %v2708_v35  ;;  %vm6084_vm3 = vmmov %vm6083_vm4 }
 0x26f   :  { %v2528_v26 = vadd.f32 %v2527_v38, %v2509_v27  ;;  %v2597_v49 = vadd.f32 %v2596_v5, %v2584_v53  ;;  %2710 = vst [vmem:[#allocation3 + $0x30] sm:$0x11] %v2709_v56 }
 0x271   :  { %v2547_v59 = vadd.f32 %v2546_v8, %v2528_v26  ;;  %v4894_v8 = vld [vmem:[#allocation9 + $0x78] sm:$0xff] }
 0x272   :  { %3173 = vmatpush.bf16.msrb.mxu3 %v4894_v8 }
 0x273   :  { %v5923_v13 = vadd.f32 %v2547_v59, %v5874_v14  ;;  %v4956_v55 = vpop.eup %4955 }
 0x274   :  { %v2616_v23 = vmul.f32 %v4956_v55, %v2613_v2  ;;  %vm2622_vm7 = vweird.f32 %v4956_v55 }
 0x275   :  { %v2570_v31 = vadd.f32 %v2569_v22, %v5923_v13  ;;  %v2586_v3 = vmul.f32 %v5923_v13, %v5923_v13  ;;  %vm2623_vm14 = vmor %vm2621_vm13, %vm2622_vm7 }
 0x276   :  { %v2617_v25 = vmul.f32 %v4956_v55, %v2616_v23 }
 0x277   :  { %v2571_v9 = vrot.slane %v2570_v31, 4  ;;  %v2598_v11 = vadd.f32 %v2597_v49, %v2586_v3  ;;  %v4886_v49 = vld [vmem:[#allocation9 + $0x38] sm:$0xff] }
 0x278   :  { %v2618_v51 = vmul.f32 0.5, %v2617_v25  ;;  %3154 = vmatpush.bf16.msrb.mxu2 %v4886_v49  ;;  %v4891_v25 = vld [vmem:[#allocation9 + $0x60] sm:$0xff] }
 0x279   :  { %v2572_v30 = vadd.f32 %v2571_v9, %v2570_v31  ;;  %v2599_v41 = vrot.slane %v2598_v11, 4 }
 0x27a   :  { %v2619_v1 = vsub.f32 1.5, %v2618_v51  ;;  %v4907_v51 = vld [vmem:[#allocation9 + $0xe0] sm:$0xff] }
 0x27b   :  { %v2573_v62 = vrot.slane %v2572_v30, 2  ;;  %v2600_v61 = vadd.f32 %v2599_v41, %v2598_v11 }
 0x27c   :  { %v2620_v10 = vmul.f32 %v4956_v55, %v2619_v1 }
 0x27d   :  { %v2574_v24 = vadd.f32 %v2573_v62, %v2572_v30  ;;  %v2601_v50 = vrot.slane %v2600_v61, 2  ;;  %v4885_v62 = vld [vmem:[#allocation9 + $0x30] sm:$0xff] }
 0x27e   :  { %v2624_v38 = vsel %vm2623_vm14, %v4956_v55, %v2620_v10  ;;  %3155 = vmatpush.bf16.msrb.mxu2 %v4885_v62  ;;  %v4905_v62 = vld [vmem:[#allocation9 + $0xd0] sm:$0xff] }
 0x27f   :  { %v2575_v34 = vrot.slane %v2574_v24, 1  ;;  %v2602_v17 = vadd.f32 %v2601_v50, %v2600_v61  ;;  %v4902_v61 = vld [vmem:[#allocation9 + $0xb8] sm:$0xff] }
 0x280   :  { %3000 = vmatpush.bf16.msrb.mxu0 %v4902_v61 }
 0x281   :  { %v2576_v18 = vadd.f32 %v2575_v34, %v2574_v24  ;;  %v2603_v14 = vrot.slane %v2602_v17, 1  ;;  %v4910_v24 = vld [vmem:[#allocation9 + $0xf8] sm:$0xff]  ;;  %v4884_v34 = vld [vmem:[#allocation9 + $0x28] sm:$0xff] }
 0x282   :  { %3019 = vmatpush.bf16.msrb.mxu1 %v4910_v24  ;;  %3156 = vmatpush.bf16.msrb.mxu2 %v4884_v34 }
 0x283   :  { %v2578_v7 = vmul.f32 0.03125, %v2576_v18  ;;  %v2604_v16 = vadd.f32 %v2603_v14, %v2602_v17  ;;  %v4892_v17 = vld [vmem:[#allocation9 + $0x68] sm:$0xff] }
 0x285   :  { %v2606_v29 = vmul.f32 0.03125, %v2604_v16  ;;  %v2608_v40 = vmul.f32 %v2578_v7, %v2578_v7 }
 0x287   :  { %v2610_v33 = vsub.f32 %v2606_v29, %v2608_v40 }
 0x289   :  { %v2612_v46 = vmax.f32 %v2610_v33, 0.0  ;;  %v4883_v33 = vld [vmem:[#allocation9 + $0x20] sm:$0xff] }
 0x28a   :  { %3157 = vmatpush.bf16.msrb.mxu2 %v4883_v33  ;;  %v4904_v33 = vld [vmem:[#allocation9 + $0xc8] sm:$0xff] }
 0x28b   :  { %v2614_v47 = vadd.f32 1e-05, %v2612_v46 }
 0x28d   :  { %4957 = vrsqrt.f32 %v2614_v47  ;;  %vm2631_vm8 = vweird.f32 %v2614_v47 }
 0x293   :  { %v4958_v42 = vpop.eup %4957 }
 0x294   :  { %v2626_v60 = vmul.f32 %v4958_v42, %v2614_v47  ;;  %vm2632_vm5 = vweird.f32 %v4958_v42 }
 0x295   :  { %vm2633_vm12 = vmor %vm2631_vm8, %vm2632_vm5 }
 0x296   :  { %v2627_v20 = vmul.f32 %v4958_v42, %v2626_v60  ;;  %v4882_v60 = vld [vmem:[#allocation9 + $0x18] sm:$0xff] }
 0x297   :  { %3158 = vmatpush.bf16.msrb.mxu2 %v4882_v60  ;;  %v4879_v60 = vld [vmem:[#allocation9] sm:$0xff] }
 0x298   :  { %v2628_v54 = vmul.f32 0.5, %v2627_v20  ;;  %v4890_v20 = vld [vmem:[#allocation9 + $0x58] sm:$0xff] }
 0x29a   :  { %v2629_v5 = vsub.f32 1.5, %v2628_v54 }
 0x29c   :  { %v2630_v45 = vmul.f32 %v4958_v42, %v2629_v5 }
 0x29e   :  { %v2634_v4 = vsel %vm2633_vm12, %v4958_v42, %v2630_v45  ;;  %v4899_v42 = vld [vmem:[#allocation9 + $0xa0] sm:$0xff] }
 0x29f   :  { %v2637_v27 = vrot.slane %v2634_v4, 7 }
 0x2a1   :  { %v2638_v52 = vsel %vm6083_vm4, %v2624_v38, %v2637_v27  ;;  %v4906_v27 = vld [vmem:[#allocation9 + $0xd8] sm:$0xff] }
 0x2a2   :  { %v2640_v22 = vmul.f32 %v2638_v52, %v2557_v58  ;;  %v4898_v58 = vld [vmem:[#allocation9 + $0x98] sm:$0xff] }
 0x2a4   :  { %v2642_v53 = vperm.slane %v2640_v22, 0  ;;  %v2643_v26 = vperm.slane %v2640_v22, 1 }
 0x2a6   :  { %v2646_v59 = vmul.f32 %v2642_v53, %v5900_v19  ;;  %v2647_v31 = vmul.f32 %v2643_v26, %v2578_v7  ;;  %v2654_v3 = vmul.f32 %v2642_v53, %v5877_v43  ;;  %v2655_v9 = vmul.f32 %v2643_v26, %v5905_v36  ;;  %v2558_v19 = vld [vmem:[%s6045_s7] sm:$0x3]  ;;  %v4908_v7 = vld [vmem:[#allocation9 + $0xe8] sm:$0xff] }
 0x2a7   :  { %v2656_v11 = vmul.f32 %v2642_v53, %v5880_v21  ;;  %v2657_v30 = vmul.f32 %v2643_v26, %v5908_v6  ;;  %v2658_v41 = vmul.f32 %v2642_v53, %v5889_v39  ;;  %v2659_v0 = vmul.f32 %v2643_v26, %v5917_v57  ;;  %v4893_v21 = vld [vmem:[#allocation9 + $0x70] sm:$0xff] }
 0x2a8   :  { %v2650_v50 = vrot.slane %v2647_v31, 7  ;;  %v2660_v43 = vmul.f32 %v2642_v53, %v5895_v44  ;;  %v2661_v36 = vmul.f32 %v2643_v26, %v5923_v13  ;;  %v4901_v39 = vld [vmem:[#allocation9 + $0xb0] sm:$0xff]  ;;  %3174 = vmatpush.bf16.msrb.mxu3 %v4893_v21  ;;  %v4900_v44 = vld [vmem:[#allocation9 + $0xa8] sm:$0xff] }
 0x2a9   :  { %v4909_v6 = vld [vmem:[#allocation9 + $0xf0] sm:$0xff]  ;;  %3001 = vmatpush.bf16.msrb.mxu0 %v4901_v39  ;;  %v2755_v39 = vld [vmem:[#allocation3] sm:$0xff] }
 0x2aa   :  { %v2651_v57 = vsel %vm6084_vm3, %v2646_v59, %v2650_v50  ;;  %3020 = vmatpush.bf16.msrb.mxu1 %v4909_v6  ;;  %v4881_v31 = vld [vmem:[#allocation9 + $0x10] sm:$0xff]  ;;  %v4880_v6 = vld [vmem:[#allocation9 + $0x8] sm:$0xff]  ;;  %vm3471_vm3 = vcmask 261120  }
 0x2ab   :  { %v2653_v2 = vsub.f32 %v2558_v19, %v2651_v57  ;;  %v2759_v19 = vld [vmem:[#allocation3 + $0x10] sm:$0x11]  ;;  %3159 = vmatpush.bf16.msrb.mxu2 %v4881_v31 }
 0x2ac   :  { %3175 = vmatpush.bf16.msrb.mxu3 %v4892_v17 }
 0x2ad   :  { %v2663_v18 = vperm.slane %v2653_v2, 0  ;;  %v2664_v14 = vperm.slane %v2653_v2, 1  ;;  %3002 = vmatpush.bf16.msrb.mxu0 %v4900_v44 }
 0x2ae   :  { %3021 = vmatpush.bf16.msrb.mxu1 %v4908_v7 }
 0x2af   :  { %v2667_v13 = vadd.f32 %v2663_v18, %v2654_v3  ;;  %v2668_v16 = vadd.f32 %v2664_v14, %v2655_v9  ;;  %v2669_v29 = vadd.f32 %v2663_v18, %v2656_v11  ;;  %v2670_v40 = vadd.f32 %v2664_v14, %v2657_v30  ;;  %v4889_v11 = vld [vmem:[#allocation9 + $0x50] sm:$0xff]  ;;  %3160 = vmatpush.bf16.msrb.mxu2 %v4880_v6 }
 0x2b0   :  { %v2671_v55 = vadd.f32 %v2663_v18, %v2658_v41  ;;  %v2672_v46 = vadd.f32 %v2664_v14, %v2659_v0  ;;  %v2673_v47 = vadd.f32 %v2663_v18, %v2660_v43  ;;  %v2674_v23 = vadd.f32 %v2664_v14, %v2661_v36  ;;  %3176 = vmatpush.bf16.msrb.mxu3 %v4891_v25  ;;  %v4897_v0 = vld [vmem:[#allocation9 + $0x90] sm:$0xff]  ;;  %v2762_v18 = vld [vmem:[#allocation3 + $0x20] sm:$0xff]  ;;  %v4888_v14 = vld [vmem:[#allocation9 + $0x48] sm:$0xff] }
 0x2b1   :  { %vm2675_vm6 = vcmp.gt.f32.partialorder %v2667_v13, 0.0  ;;  %vm2676_vm10 = vcmp.gt.f32.partialorder %v2668_v16, 0.0  ;;  %vm2677_vm11 = vcmp.gt.f32.partialorder %v2669_v29, 0.0  ;;  %vm2678_vm5 = vcmp.gt.f32.partialorder %v2670_v40, 0.0  ;;  %3003 = vmatpush.bf16.msrb.mxu0 %v4899_v42 }
 0x2b2   :  { %vm2679_vm7 = vcmp.gt.f32.partialorder %v2671_v55, 0.0  ;;  %vm2680_vm8 = vcmp.gt.f32.partialorder %v2672_v46, 0.0  ;;  %vm2681_vm12 = vcmp.gt.f32.partialorder %v2673_v47, 0.0  ;;  %vm2682_vm13 = vcmp.gt.f32.partialorder %v2674_v23, 0.0  ;;  %3022 = vmatpush.bf16.msrb.mxu1 %v4907_v51 }
 0x2b3   :  { %v2683_v32 = vmul.f32 0.01, %v2667_v13  ;;  %v2684_v35 = vmul.f32 0.01, %v2668_v16  ;;  %v2685_v1 = vmul.f32 0.01, %v2669_v29  ;;  %3161 = vmatpush.bf16.msrb.mxu2 %v4879_v60 }
 0x2b4   :  { %v2686_v54 = vmul.f32 0.01, %v2670_v40  ;;  %v2687_v63 = vmul.f32 0.01, %v2671_v55  ;;  %v2688_v56 = vmul.f32 0.01, %v2672_v46  ;;  %3177 = vmatpush.bf16.msrb.mxu3 %v4890_v20 }
 0x2b5   :  { %v2689_v5 = vmul.f32 0.01, %v2673_v47  ;;  %v2690_v10 = vmul.f32 0.01, %v2674_v23  ;;  %v2691_v45 = vsel %vm2675_vm6, %v2667_v13, %v2683_v32  ;;  %v2692_v4 = vsel %vm2676_vm10, %v2668_v16, %v2684_v35  ;;  %3004 = vmatpush.bf16.msrb.mxu0 %v4898_v58  ;;  %v4887_v20 = vld [vmem:[#allocation9 + $0x40] sm:$0xff]  ;;  %v4926_v58 = vld [vmem:[#allocation9 + $0x178] sm:$0xff] }
 0x2b6   :  { %v2693_v38 = vsel %vm2677_vm11, %v2669_v29, %v2685_v1  ;;  %v2694_v52 = vsel %vm2678_vm5, %v2670_v40, %v2686_v54  ;;  %v2695_v22 = vsel %vm2679_vm7, %v2671_v55, %v2687_v63  ;;  %v2696_v53 = vsel %vm2680_vm8, %v2672_v46, %v2688_v56  ;;  %3023 = vmatpush.bf16.msrb.mxu1 %v4906_v27  ;;  %v2766_v29 = vld [vmem:[#allocation3 + $0x30] sm:$0x11]  ;;  %v4896_v40 = vld [vmem:[#allocation9 + $0x88] sm:$0xff]  ;;  %v4895_v54 = vld [vmem:[#allocation9 + $0x80] sm:$0xff] }
 0x2b7   :  { %v2697_v26 = vsel %vm2681_vm12, %v2673_v47, %v2689_v5  ;;  %v2698_v49 = vsel %vm2682_vm13, %v2674_v23, %v2690_v10  ;;  %v2711_v8 = vpack.c.bf16 %v2692_v4, %v2691_v45  ;;  %v2712_v59 = vpack.c.bf16 %v2694_v52, %v2693_v38  ;;  %v4903_v63 = vld [vmem:[#allocation9 + $0xc0] sm:$0xff]  ;;  %v4918_v5 = vld [vmem:[#allocation9 + $0x138] sm:$0xff] }
 0x2b8   :  { %v2713_v3 = vpack.c.bf16 %v2696_v53, %v2695_v22  ;;  %v2714_v9 = vpack.c.bf16 %v2698_v49, %v2697_v26  ;;  %3178 = vmatpush.bf16.msrb.mxu3 %v4889_v11  ;;  %v4925_v11 = vld [vmem:[#allocation9 + $0x170] sm:$0xff] }
 0x2b9   :  { %v2716_v30 = vshrl.u32 %v2711_v8, 16  ;;  %v2724_v41 = vshrl.u32 %v2712_v59, 16  ;;  %v2719_v43 = vshll.u32 %v2711_v8, 16  ;;  %v2727_v21 = vshll.u32 %v2712_v59, 16  ;;  %3005 = vmatpush.bf16.msrb.mxu0 %v4897_v0 }
 0x2ba   :  { %v2733_v61 = vshrl.u32 %v2713_v3, 16  ;;  %v2741_v24 = vshrl.u32 %v2714_v9, 16  ;;  %v2736_v2 = vshll.u32 %v2713_v3, 16  ;;  %v2744_v17 = vshll.u32 %v2714_v9, 16  ;;  %3024 = vmatpush.bf16.msrb.mxu1 %v4905_v62  ;;  %v4917_v9 = vld [vmem:[#allocation9 + $0x130] sm:$0xff] }
 0x2bb   :  { %v2718_v50 = vrot.slane %v2716_v30, 7  ;;  %v2726_v36 = vrot.slane %v2724_v41, 7 }
 0x2bc   :  { %v2735_v57 = vrot.slane %v2733_v61, 7  ;;  %v2743_v34 = vrot.slane %v2741_v24, 7  ;;  %3179 = vmatpush.bf16.msrb.mxu3 %v4888_v14 }
 0x2bd   :  { %v2721_v44 = vor.u32 %v2719_v43, %v2718_v50  ;;  %v2722_v7 = vrot.slane %v2718_v50, 4  ;;  %v2729_v13 = vor.u32 %v2727_v21, %v2726_v36  ;;  %v2731_v16 = vrot.slane %v2726_v36, 4  ;;  %3006 = vmatpush.bf16.msrb.mxu0 %v4896_v40  ;;  %v4916_v21 = vld [vmem:[#allocation9 + $0x128] sm:$0xff] }
 0x2be   :  { %v2738_v55 = vor.u32 %v2736_v2, %v2735_v57  ;;  %v2739_v46 = vrot.slane %v2735_v57, 4  ;;  %v2746_v47 = vor.u32 %v2744_v17, %v2743_v34  ;;  %v2748_v23 = vrot.slane %v2743_v34, 4  ;;  %3025 = vmatpush.bf16.msrb.mxu1 %v4904_v33 }
 0x2bf   :  { %v5959_v25 = vsel %vm5399_vm15, %v2722_v7, %v2729_v13  ;;  %v2756_v42 = vsel %vm5410_vm1, %v2721_v44, %v2755_v39  ;;  %v2760_v51 = vsel %vm6077_vm2, %v2731_v16, %v2759_v19  ;;  %v4924_v39 = vld [vmem:[#allocation9 + $0x168] sm:$0xff] }
 0x2c0   :  { %v5967_v32 = vsel %vm5399_vm15, %v2739_v46, %v2746_v47  ;;  %2758 = vst [vmem:[#allocation3 + $0x8] sm:$0xff] %v5959_v25  ;;  %v2763_v35 = vsel %vm5410_vm1, %v2738_v55, %v2762_v18  ;;  %v2767_v1 = vsel %vm6077_vm2, %v2748_v23, %v2766_v29  ;;  %v2808_v56 = vshrl.u32 %v2756_v42, 16  ;;  %3180 = vmatpush.bf16.msrb.mxu3 %v4887_v20  ;;  %v4915_v46 = vld [vmem:[#allocation9 + $0x120] sm:$0xff] }
 0x2c1   :  { %2761 = vst [vmem:[#allocation3 + $0x10] sm:$0x11] %v2760_v51  ;;  %v2811_v10 = vshll.u32 %v2756_v42, 16  ;;  %v2817_v15 = vshll.u32 %v5959_v25, 16  ;;  %v2821_v45 = vshrl.u32 %v5959_v25, 16  ;;  %v2832_v4 = vshrl.u32 %v2763_v35, 16  ;;  %3007 = vmatpush.bf16.msrb.mxu0 %v4895_v54 }
 0x2c2   :  { %2765 = vst [vmem:[#allocation3 + $0x28] sm:$0xff] %v5967_v32  ;;  %v2810_v12 = vrot.slane %v2808_v56, 4  ;;  %v2835_v37 = vshll.u32 %v2763_v35, 16  ;;  %v2841_v27 = vshll.u32 %v5967_v32, 16  ;;  %v2845_v38 = vshrl.u32 %v5967_v32, 16  ;;  %3026 = vmatpush.bf16.msrb.mxu1 %v4903_v63  ;;  %v4923_v47 = vld [vmem:[#allocation9 + $0x160] sm:$0xff] }
 0x2c3   :  { %2768 = vst [vmem:[#allocation3 + $0x30] sm:$0x11] %v2767_v1  ;;  %v2813_v52 = vrot.slane %v2811_v10, 5  ;;  %v2819_v22 = vrot.slane %v2817_v15, 5  ;;  %v2823_v53 = vrot.slane %v2821_v45, 4  ;;  %v2834_v26 = vrot.slane %v2832_v4, 4 }
 0x2c4   :  { %2757 = vst [vmem:[#allocation3] sm:$0xff] %v2756_v42  ;;  %v2837_v49 = vrot.slane %v2835_v37, 5  ;;  %v2843_v59 = vrot.slane %v2841_v27, 5  ;;  %v2847_v31 = vrot.slane %v2845_v38, 4  ;;  %v4914_v56 = vld [vmem:[#allocation9 + $0x118] sm:$0xff]  ;;  %v4913_v10 = vld [vmem:[#allocation9 + $0x110] sm:$0xff] }
 0x2c5   :  { %2764 = vst [vmem:[#allocation3 + $0x20] sm:$0xff] %v2763_v35  ;;  %v2814_v8 = vor.u32 %v2813_v52, %v2810_v12  ;;  %v2824_v3 = vor.u32 %v2823_v53, %v2819_v22  ;;  %3357 = vmatpush.bf16.msra.mxu0 %v4918_v5  ;;  %v4922_v5 = vld [vmem:[#allocation9 + $0x158] sm:$0xff]  ;;  %v4921_v15 = vld [vmem:[#allocation9 + $0x150] sm:$0xff]  ;;  %v4920_v37 = vld [vmem:[#allocation9 + $0x148] sm:$0xff] }
 0x2c6   :  { %3376 = vmatpush.bf16.msra.mxu1 %v4926_v58  ;;  %v2838_v30 = vor.u32 %v2837_v49, %v2834_v26  ;;  %v2848_v43 = vor.u32 %v2847_v31, %v2843_v59  ;;  %v4912_v58 = vld [vmem:[#allocation9 + $0x108] sm:$0xff]  ;;  %v4911_v52 = vld [vmem:[#allocation9 + $0x100] sm:$0xff]  ;;  %v3200_v26 = vrot.slane %v5959_v25, 5  ;;  %v3207_v25 = vrot.slane %v5967_v32, 5 }
 0x2c7   :  { %v2815_v41 = vrot.slane %v2814_v8, 4  ;;  %v4876_v61 = vld [vmem:[#allocation3 + $0x4] sm:$0xf0]  ;;  %v4494_v24 = vld [vmem:[#allocation3 + $0x8] sm:$0xf0]  ;;  %v2825_v36 = vrot.slane %v2824_v3, 4 }
 0x2c8   :  { %v5979_v0 = vld [vmem:[#allocation3 + $0x10] sm:$0x11]  ;;  %v2839_v62 = vrot.slane %v2838_v30, 4  ;;  %v2849_v13 = vrot.slane %v2848_v43, 4 }
 0x2c9   :  { %v2820_v19 = vsel %vm5611_vm9, %v2815_v41, %v2819_v22  ;;  %v2827_v50 = vshll.u32 %v5979_v0, 16  ;;  %3358 = vmatpush.bf16.msra.mxu0 %v4917_v9  ;;  %v4878_v48 = vld [vmem:[#allocation3 + $0x24] sm:$0xf0]  ;;  %v4502_v12 = vld [vmem:[#allocation3 + $0x28] sm:$0xf0]  ;;  %v4919_v22 = vld [vmem:[#allocation9 + $0x140] sm:$0xff] }
 0x2ca   :  { %3377 = vmatpush.bf16.msra.mxu1 %v4925_v11  ;;  %v5984_v6 = vld [vmem:[#allocation3 + $0x30] sm:$0x11]  ;;  %v2844_v57 = vsel %vm5611_vm9, %v2839_v62, %v2843_v59  ;;  %v2888_v29 = vunpack.c.l.b16 %v2820_v19  ;;  %v2889_v33 = vunpack.c.h.b16 %v2820_v19  ;;  %v3203_v8 = vrot.slane %v5979_v0, 5 }
 0x2cb   :  { %v4492_v2 = vld [vmem:[#allocation3] sm:$0xf]  ;;  %v4875_v34 = vld [vmem:[#allocation3 + $0x4] sm:$0xf]  ;;  %v2829_v17 = vrot.slane %v2827_v50, 5  ;;  %v2851_v18 = vshll.u32 %v5984_v6, 16  ;;  %v2892_v42 = vunpack.c.l.b16 %v2844_v57  ;;  %v2893_v51 = vunpack.c.h.b16 %v2844_v57 }
 0x2cc   :  { %v4493_v14 = vor.u32 %v4876_v61, %v4492_v2  ;;  %v4497_v44 = vor.u32 %v4875_v34, %v4494_v24  ;;  %v4500_v45 = vld [vmem:[#allocation3 + $0x20] sm:$0xf]  ;;  %v4877_v4 = vld [vmem:[#allocation3 + $0x24] sm:$0xf]  ;;  %v3202_v59 = vrot.slane %v3200_v26, 4  ;;  %v3210_v0 = vrot.slane %v5984_v6, 5 }
 0x2cd   :  { %v2830_v7 = vsel %vm5611_vm9, %v2825_v36, %v2829_v17  ;;  %v2853_v16 = vrot.slane %v2851_v18, 5  ;;  %3359 = vmatpush.bf16.msra.mxu0 %v4916_v21  ;;  %v4501_v27 = vor.u32 %v4878_v48, %v4500_v45  ;;  %v4505_v38 = vor.u32 %v4877_v4, %v4502_v12  ;;  %v3192_v53 = vld [vmem:[#allocation3] sm:$0xee] }
 0x2ce   :  { %3162 = vmatmul.bf16.vlgmr.msrb.gmra.mxu2 %v4493_v14  ;;  %3181 = vmatmul.bf16.vlgmr.msrb.gmra.mxu3 %v4497_v44  ;;  %v2890_v40 = vunpack.c.l.b16 %v2830_v7  ;;  %v2891_v55 = vunpack.c.h.b16 %v2830_v7  ;;  %v4570_v49 = vrot.slane %v3192_v53, 9  ;;  %v3204_v3 = vsel %vm5771_vm0, %v3202_v59, %v3203_v8  ;;  %v3193_v24 = vld [vmem:[#allocation3 + $0x20] sm:$0xee] }
 0x2cf   :  { %3378 = vmatpush.bf16.msra.mxu1 %v4924_v39  ;;  %v2854_v23 = vsel %vm5611_vm9, %v2849_v13, %v2853_v16  ;;  %v3247_v11 = vunpack.c.l.b16 %v3204_v3  ;;  %v3248_v41 = vunpack.c.h.b16 %v3204_v3  ;;  %v4571_v19 = vrot.slane %v3193_v24, 9 }
 0x2d0   :  { %v2896_v60 = vpack.c.b16 %v2890_v40, %v2888_v29  ;;  %v2897_v20 = vpack.c.b16 %v2891_v55, %v2889_v33  ;;  %v2894_v35 = vunpack.c.l.b16 %v2854_v23  ;;  %v2895_v1 = vunpack.c.h.b16 %v2854_v23 }
 0x2d1   :  { %3360 = vmatpush.bf16.msra.mxu0 %v4915_v46  ;;  %v3201_v31 = vsel %vm5771_vm0, %v4570_v49, %v3200_v26  ;;  %v3209_v50 = vrot.slane %v3207_v25, 4  ;;  %v3208_v43 = vsel %vm5771_vm0, %v4571_v19, %v3207_v25 }
 0x2d2   :  { %3008 = vmatmul.bf16.vlgmr.msrb.gmra.mxu0 %v2896_v60  ;;  %3027 = vmatmul.bf16.vlgmr.msrb.gmra.mxu1 %v2897_v20  ;;  %v2898_v54 = vpack.c.b16 %v2894_v35, %v2892_v42  ;;  %v2899_v63 = vpack.c.b16 %v2895_v1, %v2893_v51  ;;  %v3245_v9 = vunpack.c.l.b16 %v3201_v31  ;;  %v3246_v30 = vunpack.c.h.b16 %v3201_v31 }
 0x2d3   :  { %3379 = vmatpush.bf16.msra.mxu1 %v4923_v47  ;;  %v3211_v36 = vsel %vm5771_vm0, %v3209_v50, %v3210_v0  ;;  %v3249_v21 = vunpack.c.l.b16 %v3208_v43  ;;  %v3250_v57 = vunpack.c.h.b16 %v3208_v43 }
 0x2d4   :  { %v3253_v62 = vpack.c.b16 %v3247_v11, %v3245_v9  ;;  %v3254_v61 = vpack.c.b16 %v3248_v41, %v3246_v30  ;;  %v3251_v39 = vunpack.c.l.b16 %v3211_v36  ;;  %v3252_v2 = vunpack.c.h.b16 %v3211_v36 }
 0x2d5   :  { %3361 = vmatpush.bf16.msra.mxu0 %v4914_v56 }
 0x2d6   :  { %v3255_v34 = vpack.c.b16 %v3251_v39, %v3249_v21  ;;  %v3256_v17 = vpack.c.b16 %v3252_v2, %v3250_v57 }
 0x2d7   :  { %3380 = vmatpush.bf16.msra.mxu1 %v4922_v5 }
 0x2d9   :  { %3362 = vmatpush.bf16.msra.mxu0 %v4913_v10 }
 0x2db   :  { %3381 = vmatpush.bf16.msra.mxu1 %v4921_v15 }
 0x2dd   :  { %3363 = vmatpush.bf16.msra.mxu0 %v4912_v58 }
 0x2de   :  { %3167 = vmatmul.bf16.gmra.mxu2 %v4501_v27  ;;  %3186 = vmatmul.bf16.gmra.mxu3 %v4505_v38 }
 0x2df   :  { %3382 = vmatpush.bf16.msra.mxu1 %v4920_v37 }
 0x2e1   :  { %3364 = vmatpush.bf16.msra.mxu0 %v4911_v52 }
 0x2e2   :  { %3013 = vmatmul.bf16.gmra.mxu0 %v2898_v54  ;;  %3032 = vmatmul.bf16.gmra.mxu1 %v2899_v63 }
 0x2e3   :  { %3383 = vmatpush.bf16.msra.mxu1 %v4919_v22 }
 0x2f2   :  { %3365 = vmatmul.bf16.vlgmr.msra.gmra.mxu0 %v3253_v62  ;;  %3384 = vmatmul.bf16.vlgmr.msra.gmra.mxu1 %v3254_v61 }
 0x302   :  { %3370 = vmatmul.bf16.gmra.mxu0 %v3255_v34  ;;  %3389 = vmatmul.bf16.gmra.mxu1 %v3256_v17 }
 0x34f   :  { %v3009_v18 = vpop.f32.mrf.mxu0  ;;  %v3028_v32 = vpop.f32.mrf.mxu1 }
 0x350   :  { %v3029_v60 = vadd.f32 %v3028_v32, %v3009_v18 }
 0x351   :  { %v3163_v13 = vpop.f32.mrf.mxu2  ;;  %v3182_v40 = vpop.f32.mrf.mxu3 }
 0x352   :  { %v3164_v54 = vadd.f32 %v3163_v13, %v3029_v60 }
 0x354   :  { %v3183_v58 = vadd.f32 %v3182_v40, %v3164_v54 }
 0x357   :  { %v3011_v14 = vpop.f32.mrf.mxu0  ;;  %v3030_v44 = vpop.f32.mrf.mxu1 }
 0x358   :  { %v3031_v42 = vadd.f32 %v3030_v44, %v3011_v14 }
 0x359   :  { %v3165_v28 = vpop.f32.mrf.mxu2  ;;  %v3184_v46 = vpop.f32.mrf.mxu3 }
 0x35a   :  { %v3166_v35 = vadd.f32 %v3165_v28, %v3031_v42  ;;  %v4934_v28 = vld [vmem:[#allocation10 + $0x38] sm:$0xff]  ;;  %v3399_v42 = vld [vmem:[%s6047_s9] sm:$0x1] }
 0x35b   :  { %3557 = vmatpush.bf16.msra.mxu3 %v4934_v28 }
 0x35c   :  { %v3185_v45 = vadd.f32 %v3184_v46, %v3166_v35  ;;  %v4931_v35 = vld [vmem:[#allocation10 + $0x20] sm:$0xff] }
 0x35f   :  { %v3014_v6 = vpop.f32.mrf.mxu0  ;;  %v3033_v7 = vpop.f32.mrf.mxu1 }
 0x360   :  { %v3034_v20 = vadd.f32 %v3033_v7, %v3014_v6 }
 0x361   :  { %v3168_v51 = vpop.f32.mrf.mxu2  ;;  %v3187_v1 = vpop.f32.mrf.mxu3 }
 0x362   :  { %v3169_v63 = vadd.f32 %v3168_v51, %v3034_v20 }
 0x364   :  { %v3188_v27 = vadd.f32 %v3187_v1, %v3169_v63  ;;  %v3400_v1 = vld [vmem:[%s6048_s10] sm:$0x1] }
 0x367   :  { %v3016_v16 = vpop.f32.mrf.mxu0  ;;  %v3035_v29 = vpop.f32.mrf.mxu1 }
 0x368   :  { %v3036_v5 = vadd.f32 %v3035_v29, %v3016_v16 }
 0x369   :  { %v3170_v12 = vpop.f32.mrf.mxu2  ;;  %v3189_v53 = vpop.f32.mrf.mxu3 }
 0x36a   :  { %v3171_v38 = vadd.f32 %v3170_v12, %v3036_v5  ;;  %v4930_v5 = vld [vmem:[#allocation10 + $0x18] sm:$0xff] }
 0x36c   :  { %v3190_v8 = vadd.f32 %v3189_v53, %v3171_v38  ;;  %v4929_v53 = vld [vmem:[#allocation10 + $0x10] sm:$0xff] }
 0x36f   :  { %v3366_v33 = vpop.f32.mrf.mxu0  ;;  %v3385_v55 = vpop.f32.mrf.mxu1 }
 0x370   :  { %v3386_v48 = vadd.f32 %v3385_v55, %v3366_v33  ;;  %v4933_v55 = vld [vmem:[#allocation10 + $0x30] sm:$0xff] }
 0x371   :  { %3558 = vmatpush.bf16.msra.mxu3 %v4933_v55 }
 0x372   :  { %v6007_v52 = vadd.f32 %v3386_v48, %v3183_v58 }
 0x374   :  { %v3411_v31 = vmul.f32 %v6007_v52, %v6007_v52 }
 0x377   :  { %v3368_v47 = vpop.f32.mrf.mxu0  ;;  %v3387_v23 = vpop.f32.mrf.mxu1 }
 0x378   :  { %v3388_v56 = vadd.f32 %v3387_v23, %v3368_v47  ;;  %v4932_v23 = vld [vmem:[#allocation10 + $0x28] sm:$0xff] }
 0x379   :  { %3559 = vmatpush.bf16.msra.mxu3 %v4932_v23 }
 0x37a   :  { %v6005_v37 = vadd.f32 %v3388_v56, %v3185_v45 }
 0x37c   :  { %v3412_v26 = vmul.f32 %v6005_v37, %v6005_v37  ;;  %v3401_v3 = vadd.f32 %v6005_v37, %v6007_v52 }
 0x37d   :  { %3560 = vmatpush.bf16.msra.mxu3 %v4931_v35 }
 0x37e   :  { %v3415_v30 = vadd.f32 %v3412_v26, %v3411_v31 }
 0x37f   :  { %v3371_v10 = vpop.f32.mrf.mxu0  ;;  %v3390_v15 = vpop.f32.mrf.mxu1 }
 0x380   :  { %v3391_v4 = vadd.f32 %v3390_v15, %v3371_v10 }
 0x381   :  { %3561 = vmatpush.bf16.msra.mxu3 %v4930_v5 }
 0x382   :  { %v6009_v22 = vadd.f32 %v3391_v4, %v3188_v27 }
 0x384   :  { %v3413_v9 = vmul.f32 %v6009_v22, %v6009_v22  ;;  %v3402_v41 = vadd.f32 %v3401_v3, %v6009_v22 }
 0x385   :  { %3562 = vmatpush.bf16.msra.mxu3 %v4929_v53 }
 0x386   :  { %v3416_v61 = vadd.f32 %v3415_v30, %v3413_v9  ;;  %v3468_v30 = vld [vmem:[%s6039_s1] sm:$0x1] }
 0x387   :  { %v3373_v49 = vpop.f32.mrf.mxu0  ;;  %v3392_v59 = vpop.f32.mrf.mxu1 }
 0x388   :  { %v3393_v11 = vadd.f32 %v3392_v59, %v3373_v49 }
 0x38a   :  { %v3398_v62 = vadd.f32 %v3393_v11, %v3190_v8 }
 0x38c   :  { %v3403_v24 = vadd.f32 %v3402_v41, %v3398_v62  ;;  %v3414_v25 = vmul.f32 %v3398_v62, %v3398_v62  ;;  %v4927_v41 = vld [vmem:[#allocation10] sm:$0xff] }
 0x38e   :  { %v3404_v19 = vrot.slane %v3403_v24, 4  ;;  %v3417_v0 = vadd.f32 %v3416_v61, %v3414_v25  ;;  %v4946_v25 = vld [vmem:[%s6050_s12] ss:$0 sm:$0xff] }
 0x390   :  { %v3405_v50 = vadd.f32 %v3404_v19, %v3403_v24  ;;  %v3418_v43 = vrot.slane %v3417_v0, 4 }
 0x392   :  { %v3406_v36 = vrot.slane %v3405_v50, 2  ;;  %v3419_v21 = vadd.f32 %v3418_v43, %v3417_v0 }
 0x394   :  { %v3407_v39 = vadd.f32 %v3406_v36, %v3405_v50  ;;  %v3420_v57 = vrot.slane %v3419_v21, 2 }
 0x396   :  { %v3408_v2 = vrot.slane %v3407_v39, 1  ;;  %v3421_v34 = vadd.f32 %v3420_v57, %v3419_v21 }
 0x398   :  { %v3409_v17 = vadd.f32 %v3408_v2, %v3407_v39  ;;  %v3422_v18 = vrot.slane %v3421_v34, 1 }
 0x39a   :  { %v3410_v32 = vmul.f32 0.03125, %v3409_v17  ;;  %v3423_v14 = vadd.f32 %v3422_v18, %v3421_v34 }
 0x39c   :  { %v3424_v44 = vmul.f32 0.03125, %v3423_v14  ;;  %v3425_v6 = vmul.f32 %v3410_v32, %v3410_v32 }
 0x39e   :  { %v3426_v7 = vsub.f32 %v3424_v44, %v3425_v6 }
 0x3a0   :  { %v3427_v13 = vmax.f32 %v3426_v7, 0.0 }
 0x3a2   :  { %v3428_v16 = vadd.f32 1e-05, %v3427_v13 }
 0x3a4   :  { %4959 = vrsqrt.f32 %v3428_v16  ;;  %vm3435_vm1 = vweird.f32 %v3428_v16 }
 0x3aa   :  { %v4960_v29 = vpop.eup %4959 }
 0x3ab   :  { %v3430_v40 = vmul.f32 %v4960_v29, %v3428_v16  ;;  %vm3436_vm15 = vweird.f32 %v4960_v29 }
 0x3ac   :  { %vm3437_vm2 = vmor %vm3435_vm1, %vm3436_vm15 }
 0x3ad   :  { %v3431_v33 = vmul.f32 %v4960_v29, %v3430_v40 }
 0x3af   :  { %v3432_v46 = vmul.f32 0.5, %v3431_v33 }
 0x3b1   :  { %v3433_v47 = vsub.f32 1.5, %v3432_v46 }
 0x3b3   :  { %v3434_v51 = vmul.f32 %v4960_v29, %v3433_v47 }
 0x3b5   :  { %v3438_v60 = vsel %vm3437_vm2, %v4960_v29, %v3434_v51 }
 0x3b6   :  { %v3439_v20 = vmul.f32 %v3438_v60, %v3399_v42 }
 0x3b8   :  { %v3440_v54 = vmul.f32 %v3439_v20, %v3410_v32  ;;  %v3443_v63 = vperm.slane %v3439_v20, 0 }
 0x3ba   :  { %v3441_v56 = vsub.f32 %v3400_v1, %v3440_v54  ;;  %v3448_v10 = vmul.f32 %v3443_v63, %v3398_v62  ;;  %v3447_v48 = vmul.f32 %v3443_v63, %v6009_v22  ;;  %v3445_v45 = vmul.f32 %v3443_v63, %v6007_v52  ;;  %v4928_v52 = vld [vmem:[#allocation10 + $0x8] sm:$0xff] }
 0x3bb   :  { %v3446_v4 = vmul.f32 %v3443_v63, %v6005_v37  ;;  %3563 = vmatpush.bf16.msra.mxu3 %v4928_v52 }
 0x3bc   :  { %v3450_v15 = vperm.slane %v3441_v56, 0 }
 0x3be   :  { %v3455_v12 = vadd.f32 %v3450_v15, %v3448_v10  ;;  %v3454_v58 = vadd.f32 %v3450_v15, %v3447_v48  ;;  %v3452_v27 = vadd.f32 %v3450_v15, %v3445_v45  ;;  %v3453_v38 = vadd.f32 %v3450_v15, %v3446_v4 }
 0x3bf   :  { %3564 = vmatpush.bf16.msra.mxu3 %v4927_v41 }
 0x3c0   :  { %vm3458_vm9 = vcmp.gt.f32.partialorder %v3454_v58, 0.0  ;;  %vm3459_vm0 = vcmp.gt.f32.partialorder %v3455_v12, 0.0  ;;  %v3462_v26 = vmul.f32 0.01, %v3454_v58  ;;  %v3463_v49 = vmul.f32 0.01, %v3455_v12 }
 0x3c1   :  { %vm3456_vm14 = vcmp.gt.f32.partialorder %v3452_v27, 0.0  ;;  %vm3457_vm4 = vcmp.gt.f32.partialorder %v3453_v38, 0.0  ;;  %v3460_v8 = vmul.f32 0.01, %v3452_v27  ;;  %v3461_v59 = vmul.f32 0.01, %v3453_v38 }
 0x3c2   :  { %v3466_v31 = vsel %vm3458_vm9, %v3454_v58, %v3462_v26  ;;  %v3467_v22 = vsel %vm3459_vm0, %v3455_v12, %v3463_v49 }
 0x3c3   :  { %v3470_v3 = vpack.c.bf16 %v3467_v22, %v3466_v31  ;;  %v3464_v37 = vsel %vm3456_vm14, %v3452_v27, %v3460_v8  ;;  %v3465_v9 = vsel %vm3457_vm4, %v3453_v38, %v3461_v59 }
 0x3c4   :  { %v3469_v11 = vpack.c.bf16 %v3465_v9, %v3464_v37 }
 0x3c5   :  { %3481 = vmatpush.bf16.msra.mxu2 %v3470_v3 }
 0x3c9   :  { %3482 = vmatpush.bf16.msra.mxu2 %v3469_v11 }
 0x3cc   :  { %4636 = vmatmul.msk.bf16.vlgmr.msra.gmra.mxu2 %vm3471_vm3, %v3468_v30 }
 0x44f   :  { %v3484_v62 = vpop.f32.mrf.mxu2 }
 0x450   :  { %v3488_v61 = vpack.c.bf16 %v3484_v62, %v3484_v62 }
 0x452   :  { %3565 = vmatmul.bf16.vlgmr.msra.gmra.mxu3 %v3488_v61 }
 0x457   :  { %v3486_v24 = vpop.f32.mrf.mxu2 }
 0x4d5   :  { %v3566_v19 = vpop.f32.mrf.mxu3 }
 0x4d6   :  { %v3567_v0 = vadd.f32 %v4946_v25, %v3566_v19 }
 0x4d8   :  { %3570 = vst [vmem:[#allocation12] sm:$0x3] %v3567_v0 }
 0x4d9   :  { %3581 = dma.vmem_to_hbm [thread:$0]  %s3577_s26, 32, %s3579_s27, [#allocation6]  }
 0x4dd   :  { %v3568_v50 = vpop.f32.mrf.mxu3 }
 0x4de   :  { %5095 = dma.done.wait [#allocation6], 32  }
 0x4df   :  { %5096 = vsyncadd [#allocation6], 4294967264 }
 0x4e0   :  { %3586 = vsyncpa [#allocation5], 1 }
 0x4e1   :  { %3587 = vsyncpa [#allocation8], 1 }
 0x4e2   :  { %3588 = vsyncpa [#allocation11], 1 }
 0x4e3   :  { %3589 = vsyncpa [#allocation6], 1 }

</bundles_post_ra>
